<compile_context>
chip_gen: v7x
topology: tpu7x:2x2x1
jax: 0.10.0
libtpu: 0.0.40
codegen_flags: <defaults>
</compile_context>

<pallas_src>
import functools

import numpy as np
import jax
import jax.numpy as jnp
from jax.experimental import pallas as pl
from jax.experimental.pallas import tpu as pltpu


def _round_up(x, m):
    return (x + m - 1) // m * m


# --------------------------------- kernel ---------------------------------

def _acam_kernel(feat_ref,
                 w_att1_ref, b_att1_ref, w_inp1_ref, b_inp1_ref,
                 w_enc2_ref, b_enc2_ref,
                 w_lstm_ref, b_lstm_ref, ln_g_ref, ln_b_ref,
                 w_dec_ref, b_dec_ref,
                 w_a1_ref, b_a1_ref, w_a2_ref, b_a2_ref,
                 w_cls_ref, b_cls_ref,
                 out_ref, *, num_steps, feature_size):
    feat = feat_ref[...]                          # (TB, W*F) f32
    TB, WF = feat.shape
    H = ln_g_ref.shape[1]                         # core hidden size
    inv_f = 1.0 / float(feature_size)

    # Hoist every parameter load out of the unrolled recurrence (loaded once,
    # reused by all 7 steps -> no repeated vld / broadcast work).
    w_att1 = w_att1_ref[...]; b_att1 = b_att1_ref[...]
    w_inp1 = w_inp1_ref[...]; b_inp1 = b_inp1_ref[...]
    w_enc2 = w_enc2_ref[...]; b_enc2 = b_enc2_ref[...]
    w_lstm = w_lstm_ref[...]; b_lstm = b_lstm_ref[...]
    ln_g = ln_g_ref[...]; ln_b = ln_b_ref[...]
    w_dec = w_dec_ref[...]; b_dec = b_dec_ref[...]

    def mm(x, w):
        # bf16 x bf16 on the MXU, f32 accumulation; activations stay f32
        # everywhere else.
        return jnp.dot(x.astype(w.dtype), w, preferred_element_type=jnp.float32)

    def layer_norm(x):                            # LayerNorm over the lane (H) axis
        mu = jnp.mean(x, axis=-1, keepdims=True)
        var = jnp.mean((x - mu) ** 2, axis=-1, keepdims=True)
        return (x - mu) * jax.lax.rsqrt(var + 1e-5) * ln_g + ln_b

    att_rep = jnp.zeros((TB, WF), jnp.float32)    # attention, replicated per feature
    h = jnp.zeros((TB, H), jnp.float32)
    c = jnp.zeros((TB, H), jnp.float32)

    for step in range(num_steps):                 # static, fully unrolled recurrence
        # Attention: pure VPU elementwise multiply (expand matmul eliminated).
        x_flat = feat * att_rep                   # (TB, W*F)

        # Encoder (Linear + BatchNorm(eval) fused into the weights):
        # layer-1 = two independent MXU pushes, layer-2 = one stacked matmul
        # over an aligned (TB, 2E) concat.
        hid_a = jnp.maximum(mm(att_rep, w_att1) + b_att1, 0.0)   # (TB, E)
        hid_i = jnp.maximum(mm(x_flat, w_inp1) + b_inp1, 0.0)    # (TB, E)
        hid = jnp.concatenate([hid_a, hid_i], axis=-1)           # (TB, 2E), aligned
        agg = jnp.maximum(mm(hid, w_enc2) + b_enc2, 0.0)         # (TB, E)

        # Core: LayerNorm (+ Dropout = identity in eval) of the previous state,
        # then one single-step LSTM with stacked [W_ih; W_hh] weights
        # (PyTorch gate order i, f, g, o along the 4H axis).
        if step == 0:
            h_in, c_in = h, c                     # state is None -> zeros
        else:
            h_in, c_in = layer_norm(h), layer_norm(c)
        gates = mm(jnp.concatenate([agg, h_in], axis=-1), w_lstm) + b_lstm
        ig = jax.nn.sigmoid(gates[:, 0:H])
        fg = jax.nn.sigmoid(gates[:, H:2 * H])
        gg = jnp.tanh(gates[:, 2 * H:3 * H])
        og = jax.nn.sigmoid(gates[:, 3 * H:4 * H])
        c = fg * c_in + ig * gg
        h = og * jnp.tanh(c)                      # core_output == h

        # Decoder -> SmoothSoftmax (skipped on the last step).  w_dec columns
        # are pre-replicated per feature, so the normalised attention comes out
        # already broadcast; sum over lanes = feature_size * sum over windows.
        if step != num_steps - 1:
            s_rep = jax.nn.sigmoid(mm(h, w_dec) + b_dec)          # (TB, W*F)
            denom = jnp.sum(s_rep, axis=-1, keepdims=True) * inv_f
            att_rep = s_rep * pl.reciprocal(denom, approx=True)   # EUP vrcp

    # Action network + classifier + final sigmoid.  The classifier weight is
    # zero-padded to 128 output lanes -> single unmasked (TB, 128) store.
    a1 = jnp.maximum(mm(h, w_a1_ref[...]) + b_a1_ref[...], 0.0)
    a2 = jnp.maximum(mm(a1, w_a2_ref[...]) + b_a2_ref[...], 0.0)
    out_ref[...] = jax.nn.sigmoid(mm(a2, w_cls_ref[...]) + b_cls_ref[...])


KERNEL_PARAM_ORDER = ("w_att1", "b_att1", "w_inp1", "b_inp1", "w_enc2", "b_enc2",
                      "w_lstm", "b_lstm", "ln_g", "ln_b", "w_dec", "b_dec",
                      "w_a1", "b_a1", "w_a2", "b_a2", "w_cls", "b_cls")


def acam_forward(features, params, num_steps=7, batch_tile=128):
    """Pallas entry point.  features: (B, W, F) or (B, 1, W, F) float32."""
    if features.ndim == 4 and features.shape[1] == 1:
        features = jnp.squeeze(features, axis=1)
    B, W, F = features.shape
    WF = W * F
    feat = features.reshape(B, WF).astype(jnp.float32)

    # 1-D batch grid: 8-row-aligned batch tiles, padded batch.  With the
    # default tile of 128 the per-tile VMEM footprint (double-buffered feat /
    # out tiles + ~0.8 MB of resident bf16 weights) is far below v7x's 64 MiB.
    tb = max(8, min(batch_tile, _round_up(B, 8)))
    tb = _round_up(tb, 8)
    B_pad = _round_up(B, tb)
    if B_pad != B:
        feat = jnp.pad(feat, ((0, B_pad - B), (0, 0)))

    n_out = params["w_cls"].shape[1]              # lane-padded classifier width

    weight_specs = [pl.BlockSpec(params[k].shape, lambda i: (0, 0))
                    for k in KERNEL_PARAM_ORDER]
    out = pl.pallas_call(
        functools.partial(_acam_kernel, num_steps=num_steps, feature_size=F),
        grid=(B_pad // tb,),
        out_shape=jax.ShapeDtypeStruct((B_pad, n_out), jnp.float32),
        in_specs=[pl.BlockSpec((tb, WF), lambda i: (i, 0))] + weight_specs,
        out_specs=pl.BlockSpec((tb, n_out), lambda i: (i, 0)),
        compiler_params=pltpu.CompilerParams(
            dimension_semantics=("parallel",)),   # shard batch tiles over TCs
    )(feat, *[params[k] for k in KERNEL_PARAM_ORDER])
    return out[:B, :W]


# ------------------------- parameter init & packing -------------------------

def _uniform(key, shape, bound):
    return jax.random.uniform(key, shape, jnp.float32, -bound, bound)


def init_raw_params(key, feature_size, window_size=7, core_hidden=128,
                    enc_hidden=128, enc_out=128, act_hidden_1=256, act_hidden_2=256):
    """Per-module parameters, PyTorch default init, eval-mode BatchNorm fused.
    Weights stored as (in_features, out_features), float32."""
    eps = 1e-5
    bn_scale = 1.0 / float(np.sqrt(1.0 + eps))    # BN eval with default stats
    keys = iter(jax.random.split(key, 32))

    def linear_pt(fan_in, fan_out):               # nn.Linear default init
        bound = 1.0 / float(np.sqrt(fan_in))
        w = _uniform(next(keys), (fan_out, fan_in), bound)
        b = _uniform(next(keys), (fan_out,), bound)
        return w, b

    def linear_bn(fan_in, fan_out):               # Linear + BatchNorm1d(eval) fused
        w, b = linear_pt(fan_in, fan_out)
        return w.T * bn_scale, (b * bn_scale).reshape(1, fan_out)

    def linear_plain(fan_in, fan_out):
        w, b = linear_pt(fan_in, fan_out)
        return w.T, b.reshape(1, fan_out)

    WF = feature_size * window_size
    p = {}
    # Encoder
    p["wa1"], p["ba1"] = linear_bn(window_size, enc_hidden)
    p["wa2"], p["ba2"] = linear_bn(enc_hidden, enc_out)
    p["wi1"], p["bi1"] = linear_bn(WF, enc_hidden)
    p["wi2"], p["bi2"] = linear_bn(enc_hidden, enc_out)
    # LSTM (stored (in, 4H); PyTorch gate order i,f,g,o along 4H)
    bound = 1.0 / float(np.sqrt(core_hidden))
    w_ih = _uniform(next(keys), (4 * core_hidden, enc_out), bound)
    w_hh = _uniform(next(keys), (4 * core_hidden, core_hidden), bound)
    b_ih = _uniform(next(keys), (4 * core_hidden,), bound)
    b_hh = _uniform(next(keys), (4 * core_hidden,), bound)
    p["wih"] = w_ih.T
    p["whh"] = w_hh.T
    p["blstm"] = (b_ih + b_hh).reshape(1, 4 * core_hidden)
    # LayerNorm on the recurrent state
    p["ln_g"] = jnp.ones((1, core_hidden), jnp.float32)
    p["ln_b"] = jnp.zeros((1, core_hidden), jnp.float32)
    # Decoder (Linear + BN fused)
    p["wd"], p["bd"] = linear_bn(core_hidden, window_size)
    # Action network + classifier
    p["wn1"], p["bn1"] = linear_bn(core_hidden, act_hidden_1)
    p["wn2"], p["bn2"] = linear_bn(act_hidden_1, act_hidden_2)
    p["wc"], p["bc"] = linear_plain(act_hidden_2, window_size)
    return p


def pack_params(raw, feature_size, window_size, weight_dtype=jnp.bfloat16,
                out_lanes=128):
    """Repack raw per-module params for the fused kernel:
       * attention-branch layer-1 weight expanded per feature (and /F) so the
         recurrent attention can stay pre-broadcast as (B, W*F)
       * encoder layer-2 and LSTM input/recurrent weights stacked
       * decoder weight/bias columns replicated per feature
       * classifier zero-padded to `out_lanes` lanes (unmasked lane-dense store)
       * matmul weights cast to `weight_dtype`; biases / LayerNorm stay f32
    """
    F, W = feature_size, window_size
    inv_f = 1.0 / float(F)
    w_att1 = jnp.repeat(raw["wa1"], F, axis=0) * inv_f            # (W*F, E)
    w_enc2 = jnp.concatenate([raw["wa2"], raw["wi2"]], axis=0)    # (2E, E)
    b_enc2 = raw["ba2"] + raw["bi2"]
    w_lstm = jnp.concatenate([raw["wih"], raw["whh"]], axis=0)    # (E+H, 4H)
    w_dec = jnp.repeat(raw["wd"], F, axis=1)                      # (H, W*F)
    b_dec = jnp.repeat(raw["bd"], F, axis=1)                      # (1, W*F)
    n_out = _round_up(max(out_lanes, W), 128)
    w_cls = jnp.zeros((raw["wc"].shape[0], n_out), jnp.float32)
    w_cls = w_cls.at[:, :W].set(raw["wc"])
    b_cls = jnp.zeros((1, n_out), jnp.float32).at[:, :W].set(raw["bc"])

    cast = lambda w: w.astype(weight_dtype)
    return {
        "w_att1": cast(w_att1), "b_att1": raw["ba1"],
        "w_inp1": cast(raw["wi1"]), "b_inp1": raw["bi1"],
        "w_enc2": cast(w_enc2), "b_enc2": b_enc2,
        "w_lstm": cast(w_lstm), "b_lstm": raw["blstm"],
        "ln_g": raw["ln_g"], "ln_b": raw["ln_b"],
        "w_dec": cast(w_dec), "b_dec": b_dec,
        "w_a1": cast(raw["wn1"]), "b_a1": raw["bn1"],
        "w_a2": cast(raw["wn2"]), "b_a2": raw["bn2"],
        "w_cls": cast(w_cls), "b_cls": b_cls,
    }


# ------------------------- pure-JAX reference -------------------------
# Faithful eval-mode translation of the original (unfused) PyTorch module.
# It applies the same bf16 quantisation points (weights + matmul inputs, f32
# accumulation) as the kernel so the check isolates the kernel's structural
# fusions/repacking rather than the storage-dtype choice.

def acam_ref(features, raw, num_steps=7, weight_dtype=jnp.bfloat16):
    if features.ndim == 4 and features.shape[1] == 1:
        features = jnp.squeeze(features, axis=1)
    B, W, F = features.shape
    H = raw["whh"].shape[0]
    feat = features.astype(jnp.float32)

    q = lambda a: a.astype(weight_dtype).astype(jnp.float32)
    mm = lambda x, w: jnp.dot(q(x), q(w))

    def ln(x):
        mu = x.mean(-1, keepdims=True)
        var = ((x - mu) ** 2).mean(-1, keepdims=True)
        return (x - mu) * jax.lax.rsqrt(var + 1e-5) * raw["ln_g"] + raw["ln_b"]

    att = jnp.zeros((B, W), jnp.float32)
    h = jnp.zeros((B, H), jnp.float32)
    c = jnp.zeros((B, H), jnp.float32)
    for i in range(num_steps):
        x_flat = (feat * att[:, :, None]).reshape(B, W * F)
        ea = mm(jax.nn.relu(mm(att, raw["wa1"]) + raw["ba1"]), raw["wa2"]) + raw["ba2"]
        ei = mm(jax.nn.relu(mm(x_flat, raw["wi1"]) + raw["bi1"]), raw["wi2"]) + raw["bi2"]
        agg = jax.nn.relu(ea + ei)
        h_in, c_in = (h, c) if i == 0 else (ln(h), ln(c))
        gates = mm(agg, raw["wih"]) + mm(h_in, raw["whh"]) + raw["blstm"]
        ig = jax.nn.sigmoid(gates[:, :H])
        fg = jax.nn.sigmoid(gates[:, H:2 * H])
        gg = jnp.tanh(gates[:, 2 * H:3 * H])
        og = jax.nn.sigmoid(gates[:, 3 * H:])
        c = fg * c_in + ig * gg
        h = og * jnp.tanh(c)
        if i != num_steps - 1:
            s = jax.nn.sigmoid(mm(h, raw["wd"]) + raw["bd"])
            att = s / s.sum(-1, keepdims=True)
    a1 = jax.nn.relu(mm(h, raw["wn1"]) + raw["bn1"])
    a2 = jax.nn.relu(mm(a1, raw["wn2"]) + raw["bn2"])
    return jax.nn.sigmoid(mm(a2, raw["wc"]) + raw["bc"])


# --------------------------------- test ---------------------------------

if __name__ == "__main__":
    key = jax.random.PRNGKey(0)
    k_param, k_x = jax.random.split(key)

    B, W, F = 4, 7, 16                            # batch, window_size, feature_size
    raw = init_raw_params(k_param, feature_size=F, window_size=W)
    params = pack_params(raw, feature_size=F, window_size=W,
                         weight_dtype=jnp.bfloat16)

    # (B, 1, W, F): exercises the 4-D squeeze branch of the PyTorch forward.
    x = jax.random.normal(k_x, (B, 1, W, F), jnp.float32)

    out = jax.block_until_ready(acam_forward(x, params, num_steps=7))
    ref = jax.block_until_ready(acam_ref(x, raw, num_steps=7,
                                         weight_dtype=jnp.bfloat16))

    assert out.shape == (B, W)
    assert bool(jnp.all(jnp.isfinite(out)))
    np.testing.assert_allclose(np.asarray(out), np.asarray(ref), rtol=2e-2, atol=2e-2)
    print("KERNEL_OK")
</pallas_src>

<mosaic_0001>
module attributes {stable_mosaic.version = 11 : i64} {
  func.func @_acam_kernel(%arg0: i32, %arg1: memref<8x112xf32, #tpu.memory_space<vmem>>, %arg2: memref<112x128xbf16, #tpu.memory_space<vmem>>, %arg3: memref<1x128xf32, #tpu.memory_space<vmem>>, %arg4: memref<112x128xbf16, #tpu.memory_space<vmem>>, %arg5: memref<1x128xf32, #tpu.memory_space<vmem>>, %arg6: memref<256x128xbf16, #tpu.memory_space<vmem>>, %arg7: memref<1x128xf32, #tpu.memory_space<vmem>>, %arg8: memref<256x512xbf16, #tpu.memory_space<vmem>>, %arg9: memref<1x512xf32, #tpu.memory_space<vmem>>, %arg10: memref<1x128xf32, #tpu.memory_space<vmem>>, %arg11: memref<1x128xf32, #tpu.memory_space<vmem>>, %arg12: memref<128x112xbf16, #tpu.memory_space<vmem>>, %arg13: memref<1x112xf32, #tpu.memory_space<vmem>>, %arg14: memref<128x256xbf16, #tpu.memory_space<vmem>>, %arg15: memref<1x256xf32, #tpu.memory_space<vmem>>, %arg16: memref<256x256xbf16, #tpu.memory_space<vmem>>, %arg17: memref<1x256xf32, #tpu.memory_space<vmem>>, %arg18: memref<256x128xbf16, #tpu.memory_space<vmem>>, %arg19: memref<1x128xf32, #tpu.memory_space<vmem>>, %arg20: memref<8x128xf32, #tpu.memory_space<vmem>>) attributes {dimension_semantics = [#tpu.dimension_semantics<parallel>], iteration_bounds = array<i64: 1>, scalar_prefetch = 0 : i64, scratch_operands = 0 : i64, tpu.core_type = #tpu.core_type<tc>, window_params = [{transform_indices = @transform_0, window_bounds = array<i64: 8, 112>}, {pipeline_mode = #tpu.pipeline_mode<synchronous>, transform_indices = @transform_1, window_bounds = array<i64: 112, 128>}, {pipeline_mode = #tpu.pipeline_mode<synchronous>, transform_indices = @transform_2, window_bounds = array<i64: 1, 128>}, {pipeline_mode = #tpu.pipeline_mode<synchronous>, transform_indices = @transform_3, window_bounds = array<i64: 112, 128>}, {pipeline_mode = #tpu.pipeline_mode<synchronous>, transform_indices = @transform_4, window_bounds = array<i64: 1, 128>}, {pipeline_mode = #tpu.pipeline_mode<synchronous>, transform_indices = @transform_5, window_bounds = array<i64: 256, 128>}, {pipeline_mode = #tpu.pipeline_mode<synchronous>, transform_indices = @transform_6, window_bounds = array<i64: 1, 128>}, {pipeline_mode = #tpu.pipeline_mode<synchronous>, transform_indices = @transform_7, window_bounds = array<i64: 256, 512>}, {pipeline_mode = #tpu.pipeline_mode<synchronous>, transform_indices = @transform_8, window_bounds = array<i64: 1, 512>}, {pipeline_mode = #tpu.pipeline_mode<synchronous>, transform_indices = @transform_9, window_bounds = array<i64: 1, 128>}, {pipeline_mode = #tpu.pipeline_mode<synchronous>, transform_indices = @transform_10, window_bounds = array<i64: 1, 128>}, {pipeline_mode = #tpu.pipeline_mode<synchronous>, transform_indices = @transform_11, window_bounds = array<i64: 128, 112>}, {pipeline_mode = #tpu.pipeline_mode<synchronous>, transform_indices = @transform_12, window_bounds = array<i64: 1, 112>}, {pipeline_mode = #tpu.pipeline_mode<synchronous>, transform_indices = @transform_13, window_bounds = array<i64: 128, 256>}, {pipeline_mode = #tpu.pipeline_mode<synchronous>, transform_indices = @transform_14, window_bounds = array<i64: 1, 256>}, {pipeline_mode = #tpu.pipeline_mode<synchronous>, transform_indices = @transform_15, window_bounds = array<i64: 256, 256>}, {pipeline_mode = #tpu.pipeline_mode<synchronous>, transform_indices = @transform_16, window_bounds = array<i64: 1, 256>}, {pipeline_mode = #tpu.pipeline_mode<synchronous>, transform_indices = @transform_17, window_bounds = array<i64: 256, 128>}, {pipeline_mode = #tpu.pipeline_mode<synchronous>, transform_indices = @transform_18, window_bounds = array<i64: 1, 128>}, {transform_indices = @transform_19, window_bounds = array<i64: 8, 128>}]} {
    %c0 = arith.constant 0 : index
    %c0_0 = arith.constant 0 : index
    %0 = vector.load %arg1[%c0, %c0_0] : memref<8x112xf32, #tpu.memory_space<vmem>>, vector<8x112xf32>
    %c0_1 = arith.constant 0 : index
    %c0_2 = arith.constant 0 : index
    %1 = vector.load %arg2[%c0_1, %c0_2] : memref<112x128xbf16, #tpu.memory_space<vmem>>, vector<112x128xbf16>
    %c0_3 = arith.constant 0 : index
    %c0_4 = arith.constant 0 : index
    %2 = vector.load %arg3[%c0_3, %c0_4] : memref<1x128xf32, #tpu.memory_space<vmem>>, vector<1x128xf32>
    %c0_5 = arith.constant 0 : index
    %c0_6 = arith.constant 0 : index
    %3 = vector.load %arg4[%c0_5, %c0_6] : memref<112x128xbf16, #tpu.memory_space<vmem>>, vector<112x128xbf16>
    %c0_7 = arith.constant 0 : index
    %c0_8 = arith.constant 0 : index
    %4 = vector.load %arg5[%c0_7, %c0_8] : memref<1x128xf32, #tpu.memory_space<vmem>>, vector<1x128xf32>
    %c0_9 = arith.constant 0 : index
    %c0_10 = arith.constant 0 : index
    %5 = vector.load %arg6[%c0_9, %c0_10] : memref<256x128xbf16, #tpu.memory_space<vmem>>, vector<256x128xbf16>
    %c0_11 = arith.constant 0 : index
    %c0_12 = arith.constant 0 : index
    %6 = vector.load %arg7[%c0_11, %c0_12] : memref<1x128xf32, #tpu.memory_space<vmem>>, vector<1x128xf32>
    %c0_13 = arith.constant 0 : index
    %c0_14 = arith.constant 0 : index
    %7 = vector.load %arg8[%c0_13, %c0_14] : memref<256x512xbf16, #tpu.memory_space<vmem>>, vector<256x512xbf16>
    %c0_15 = arith.constant 0 : index
    %c0_16 = arith.constant 0 : index
    %8 = vector.load %arg9[%c0_15, %c0_16] : memref<1x512xf32, #tpu.memory_space<vmem>>, vector<1x512xf32>
    %c0_17 = arith.constant 0 : index
    %c0_18 = arith.constant 0 : index
    %9 = vector.load %arg10[%c0_17, %c0_18] : memref<1x128xf32, #tpu.memory_space<vmem>>, vector<1x128xf32>
    %c0_19 = arith.constant 0 : index
    %c0_20 = arith.constant 0 : index
    %10 = vector.load %arg11[%c0_19, %c0_20] : memref<1x128xf32, #tpu.memory_space<vmem>>, vector<1x128xf32>
    %c0_21 = arith.constant 0 : index
    %c0_22 = arith.constant 0 : index
    %11 = vector.load %arg12[%c0_21, %c0_22] : memref<128x112xbf16, #tpu.memory_space<vmem>>, vector<128x112xbf16>
    %c0_23 = arith.constant 0 : index
    %c0_24 = arith.constant 0 : index
    %12 = vector.load %arg13[%c0_23, %c0_24] : memref<1x112xf32, #tpu.memory_space<vmem>>, vector<1x112xf32>
    %cst = arith.constant 0.000000e+00 : f32
    %13 = vector.broadcast %cst : f32 to vector<8x112xf32>
    %cst_25 = arith.constant 0.000000e+00 : f32
    %14 = vector.broadcast %cst_25 : f32 to vector<8x128xf32>
    %cst_26 = arith.constant 0.000000e+00 : f32
    %15 = vector.broadcast %cst_26 : f32 to vector<8x128xf32>
    %16 = arith.mulf %0, %13 : vector<8x112xf32>
    %17 = arith.truncf %13 : vector<8x112xf32> to vector<8x112xbf16>
    %cst_27 = arith.constant dense<0.000000e+00> : vector<8x128xf32>
    %18 = tpu.matmul %17, %1, %cst_27 {dimension_numbers = #tpu.dot_dimension_numbers<[1], [0], [0], [1], [0, 0, 1, 1], [], []>} : vector<8x112xbf16>, vector<112x128xbf16>, vector<8x128xf32> -> vector<8x128xf32>
    %19 = vector.broadcast %2 : vector<1x128xf32> to vector<8x128xf32>
    %20 = arith.addf %18, %19 : vector<8x128xf32>
    %cst_28 = arith.constant 0.000000e+00 : f32
    %21 = vector.broadcast %cst_28 : f32 to vector<8x128xf32>
    %22 = arith.maximumf %20, %21 : vector<8x128xf32>
    %23 = arith.truncf %16 : vector<8x112xf32> to vector<8x112xbf16>
    %cst_29 = arith.constant dense<0.000000e+00> : vector<8x128xf32>
    %24 = tpu.matmul %23, %3, %cst_29 {dimension_numbers = #tpu.dot_dimension_numbers<[1], [0], [0], [1], [0, 0, 1, 1], [], []>} : vector<8x112xbf16>, vector<112x128xbf16>, vector<8x128xf32> -> vector<8x128xf32>
    %25 = vector.broadcast %4 : vector<1x128xf32> to vector<8x128xf32>
    %26 = arith.addf %24, %25 : vector<8x128xf32>
    %cst_30 = arith.constant 0.000000e+00 : f32
    %27 = vector.broadcast %cst_30 : f32 to vector<8x128xf32>
    %28 = arith.maximumf %26, %27 : vector<8x128xf32>
    %29 = tpu.concatenate %22, %28 in 1 : vector<8x128xf32>, vector<8x128xf32> -> vector<8x256xf32>
    %30 = arith.truncf %29 : vector<8x256xf32> to vector<8x256xbf16>
    %cst_31 = arith.constant dense<0.000000e+00> : vector<8x128xf32>
    %31 = tpu.matmul %30, %5, %cst_31 {dimension_numbers = #tpu.dot_dimension_numbers<[1], [0], [0], [1], [0, 0, 1, 1], [], []>} : vector<8x256xbf16>, vector<256x128xbf16>, vector<8x128xf32> -> vector<8x128xf32>
    %32 = vector.broadcast %6 : vector<1x128xf32> to vector<8x128xf32>
    %33 = arith.addf %31, %32 : vector<8x128xf32>
    %cst_32 = arith.constant 0.000000e+00 : f32
    %34 = vector.broadcast %cst_32 : f32 to vector<8x128xf32>
    %35 = arith.maximumf %33, %34 : vector<8x128xf32>
    %36 = tpu.concatenate %35, %14 in 1 : vector<8x128xf32>, vector<8x128xf32> -> vector<8x256xf32>
    %37 = arith.truncf %36 : vector<8x256xf32> to vector<8x256xbf16>
    %cst_33 = arith.constant dense<0.000000e+00> : vector<8x512xf32>
    %38 = tpu.matmul %37, %7, %cst_33 {dimension_numbers = #tpu.dot_dimension_numbers<[1], [0], [0], [1], [0, 0, 1, 1], [], []>} : vector<8x256xbf16>, vector<256x512xbf16>, vector<8x512xf32> -> vector<8x512xf32>
    %39 = vector.broadcast %8 : vector<1x512xf32> to vector<8x512xf32>
    %40 = arith.addf %38, %39 : vector<8x512xf32>
    %41 = vector.extract_strided_slice %40 {offsets = [0, 0], sizes = [8, 128], strides = [1, 1]} : vector<8x512xf32> to vector<8x128xf32>
    %42 = arith.negf %41 : vector<8x128xf32>
    %43 = math.exp %42 : vector<8x128xf32>
    %cst_34 = arith.constant 1.000000e+00 : f32
    %44 = vector.broadcast %cst_34 : f32 to vector<8x128xf32>
    %45 = arith.addf %44, %43 : vector<8x128xf32>
    %46 = arith.divf %44, %45 : vector<8x128xf32>
    %47 = vector.extract_strided_slice %40 {offsets = [0, 128], sizes = [8, 128], strides = [1, 1]} : vector<8x512xf32> to vector<8x128xf32>
    %48 = arith.negf %47 : vector<8x128xf32>
    %49 = math.exp %48 : vector<8x128xf32>
    %cst_35 = arith.constant 1.000000e+00 : f32
    %50 = vector.broadcast %cst_35 : f32 to vector<8x128xf32>
    %51 = arith.addf %50, %49 : vector<8x128xf32>
    %52 = arith.divf %50, %51 : vector<8x128xf32>
    %53 = vector.extract_strided_slice %40 {offsets = [0, 256], sizes = [8, 128], strides = [1, 1]} : vector<8x512xf32> to vector<8x128xf32>
    %54 = math.tanh %53 : vector<8x128xf32>
    %55 = vector.extract_strided_slice %40 {offsets = [0, 384], sizes = [8, 128], strides = [1, 1]} : vector<8x512xf32> to vector<8x128xf32>
    %56 = arith.negf %55 : vector<8x128xf32>
    %57 = math.exp %56 : vector<8x128xf32>
    %cst_36 = arith.constant 1.000000e+00 : f32
    %58 = vector.broadcast %cst_36 : f32 to vector<8x128xf32>
    %59 = arith.addf %58, %57 : vector<8x128xf32>
    %60 = arith.divf %58, %59 : vector<8x128xf32>
    %61 = arith.mulf %52, %15 : vector<8x128xf32>
    %62 = arith.mulf %46, %54 : vector<8x128xf32>
    %63 = arith.addf %61, %62 : vector<8x128xf32>
    %64 = math.tanh %63 : vector<8x128xf32>
    %65 = arith.mulf %60, %64 : vector<8x128xf32>
    %66 = arith.truncf %65 : vector<8x128xf32> to vector<8x128xbf16>
    %cst_37 = arith.constant dense<0.000000e+00> : vector<8x112xf32>
    %67 = tpu.matmul %66, %11, %cst_37 {dimension_numbers = #tpu.dot_dimension_numbers<[1], [0], [0], [1], [0, 0, 1, 1], [], []>} : vector<8x128xbf16>, vector<128x112xbf16>, vector<8x112xf32> -> vector<8x112xf32>
    %68 = vector.broadcast %12 : vector<1x112xf32> to vector<8x112xf32>
    %69 = arith.addf %67, %68 : vector<8x112xf32>
    %70 = arith.negf %69 : vector<8x112xf32>
    %71 = math.exp %70 : vector<8x112xf32>
    %cst_38 = arith.constant 1.000000e+00 : f32
    %72 = vector.broadcast %cst_38 : f32 to vector<8x112xf32>
    %73 = arith.addf %72, %71 : vector<8x112xf32>
    %74 = arith.divf %72, %73 : vector<8x112xf32>
    %cst_39 = arith.constant dense<0.000000e+00> : vector<8xf32>
    %75 = vector.multi_reduction <add>, %74, %cst_39 [1] : vector<8x112xf32> to vector<8xf32>
    %76 = vector.shape_cast %75 : vector<8xf32> to vector<8x1xf32>
    %cst_40 = arith.constant 6.250000e-02 : f32
    %77 = vector.broadcast %cst_40 : f32 to vector<8x1xf32>
    %78 = arith.mulf %76, %77 : vector<8x1xf32>
    %79 = tpu.reciprocal %78 {approx = true} : vector<8x1xf32> -> vector<8x1xf32>
    %80 = vector.broadcast %79 : vector<8x1xf32> to vector<8x112xf32>
    %81 = arith.mulf %74, %80 : vector<8x112xf32>
    %82 = arith.mulf %0, %81 : vector<8x112xf32>
    %83 = arith.truncf %81 : vector<8x112xf32> to vector<8x112xbf16>
    %cst_41 = arith.constant dense<0.000000e+00> : vector<8x128xf32>
    %84 = tpu.matmul %83, %1, %cst_41 {dimension_numbers = #tpu.dot_dimension_numbers<[1], [0], [0], [1], [0, 0, 1, 1], [], []>} : vector<8x112xbf16>, vector<112x128xbf16>, vector<8x128xf32> -> vector<8x128xf32>
    %85 = vector.broadcast %2 : vector<1x128xf32> to vector<8x128xf32>
    %86 = arith.addf %84, %85 : vector<8x128xf32>
    %cst_42 = arith.constant 0.000000e+00 : f32
    %87 = vector.broadcast %cst_42 : f32 to vector<8x128xf32>
    %88 = arith.maximumf %86, %87 : vector<8x128xf32>
    %89 = arith.truncf %82 : vector<8x112xf32> to vector<8x112xbf16>
    %cst_43 = arith.constant dense<0.000000e+00> : vector<8x128xf32>
    %90 = tpu.matmul %89, %3, %cst_43 {dimension_numbers = #tpu.dot_dimension_numbers<[1], [0], [0], [1], [0, 0, 1, 1], [], []>} : vector<8x112xbf16>, vector<112x128xbf16>, vector<8x128xf32> -> vector<8x128xf32>
    %91 = vector.broadcast %4 : vector<1x128xf32> to vector<8x128xf32>
    %92 = arith.addf %90, %91 : vector<8x128xf32>
    %cst_44 = arith.constant 0.000000e+00 : f32
    %93 = vector.broadcast %cst_44 : f32 to vector<8x128xf32>
    %94 = arith.maximumf %92, %93 : vector<8x128xf32>
    %95 = tpu.concatenate %88, %94 in 1 : vector<8x128xf32>, vector<8x128xf32> -> vector<8x256xf32>
    %96 = arith.truncf %95 : vector<8x256xf32> to vector<8x256xbf16>
    %cst_45 = arith.constant dense<0.000000e+00> : vector<8x128xf32>
    %97 = tpu.matmul %96, %5, %cst_45 {dimension_numbers = #tpu.dot_dimension_numbers<[1], [0], [0], [1], [0, 0, 1, 1], [], []>} : vector<8x256xbf16>, vector<256x128xbf16>, vector<8x128xf32> -> vector<8x128xf32>
    %98 = vector.broadcast %6 : vector<1x128xf32> to vector<8x128xf32>
    %99 = arith.addf %97, %98 : vector<8x128xf32>
    %cst_46 = arith.constant 0.000000e+00 : f32
    %100 = vector.broadcast %cst_46 : f32 to vector<8x128xf32>
    %101 = arith.maximumf %99, %100 : vector<8x128xf32>
    %cst_47 = arith.constant dense<0.000000e+00> : vector<8xf32>
    %102 = vector.multi_reduction <add>, %65, %cst_47 [1] : vector<8x128xf32> to vector<8xf32>
    %103 = vector.shape_cast %102 : vector<8xf32> to vector<8x1xf32>
    %cst_48 = arith.constant 1.280000e+02 : f32
    %104 = vector.broadcast %cst_48 : f32 to vector<8x1xf32>
    %105 = arith.divf %103, %104 : vector<8x1xf32>
    %106 = vector.broadcast %105 : vector<8x1xf32> to vector<8x128xf32>
    %107 = arith.subf %65, %106 : vector<8x128xf32>
    %108 = arith.mulf %107, %107 : vector<8x128xf32>
    %cst_49 = arith.constant dense<0.000000e+00> : vector<8xf32>
    %109 = vector.multi_reduction <add>, %108, %cst_49 [1] : vector<8x128xf32> to vector<8xf32>
    %110 = vector.shape_cast %109 : vector<8xf32> to vector<8x1xf32>
    %cst_50 = arith.constant 1.280000e+02 : f32
    %111 = vector.broadcast %cst_50 : f32 to vector<8x1xf32>
    %112 = arith.divf %110, %111 : vector<8x1xf32>
    %113 = vector.broadcast %105 : vector<8x1xf32> to vector<8x128xf32>
    %114 = arith.subf %65, %113 : vector<8x128xf32>
    %cst_51 = arith.constant 9.99999974E-6 : f32
    %115 = vector.broadcast %cst_51 : f32 to vector<8x1xf32>
    %116 = arith.addf %112, %115 : vector<8x1xf32>
    %117 = math.rsqrt %116 : vector<8x1xf32>
    %118 = vector.broadcast %117 : vector<8x1xf32> to vector<8x128xf32>
    %119 = arith.mulf %114, %118 : vector<8x128xf32>
    %120 = vector.broadcast %9 : vector<1x128xf32> to vector<8x128xf32>
    %121 = arith.mulf %119, %120 : vector<8x128xf32>
    %122 = vector.broadcast %10 : vector<1x128xf32> to vector<8x128xf32>
    %123 = arith.addf %121, %122 : vector<8x128xf32>
    %cst_52 = arith.constant dense<0.000000e+00> : vector<8xf32>
    %124 = vector.multi_reduction <add>, %63, %cst_52 [1] : vector<8x128xf32> to vector<8xf32>
    %125 = vector.shape_cast %124 : vector<8xf32> to vector<8x1xf32>
    %cst_53 = arith.constant 1.280000e+02 : f32
    %126 = vector.broadcast %cst_53 : f32 to vector<8x1xf32>
    %127 = arith.divf %125, %126 : vector<8x1xf32>
    %128 = vector.broadcast %127 : vector<8x1xf32> to vector<8x128xf32>
    %129 = arith.subf %63, %128 : vector<8x128xf32>
    %130 = arith.mulf %129, %129 : vector<8x128xf32>
    %cst_54 = arith.constant dense<0.000000e+00> : vector<8xf32>
    %131 = vector.multi_reduction <add>, %130, %cst_54 [1] : vector<8x128xf32> to vector<8xf32>
    %132 = vector.shape_cast %131 : vector<8xf32> to vector<8x1xf32>
    %cst_55 = arith.constant 1.280000e+02 : f32
    %133 = vector.broadcast %cst_55 : f32 to vector<8x1xf32>
    %134 = arith.divf %132, %133 : vector<8x1xf32>
    %135 = vector.broadcast %127 : vector<8x1xf32> to vector<8x128xf32>
    %136 = arith.subf %63, %135 : vector<8x128xf32>
    %cst_56 = arith.constant 9.99999974E-6 : f32
    %137 = vector.broadcast %cst_56 : f32 to vector<8x1xf32>
    %138 = arith.addf %134, %137 : vector<8x1xf32>
    %139 = math.rsqrt %138 : vector<8x1xf32>
    %140 = vector.broadcast %139 : vector<8x1xf32> to vector<8x128xf32>
    %141 = arith.mulf %136, %140 : vector<8x128xf32>
    %142 = vector.broadcast %9 : vector<1x128xf32> to vector<8x128xf32>
    %143 = arith.mulf %141, %142 : vector<8x128xf32>
    %144 = vector.broadcast %10 : vector<1x128xf32> to vector<8x128xf32>
    %145 = arith.addf %143, %144 : vector<8x128xf32>
    %146 = tpu.concatenate %101, %123 in 1 : vector<8x128xf32>, vector<8x128xf32> -> vector<8x256xf32>
    %147 = arith.truncf %146 : vector<8x256xf32> to vector<8x256xbf16>
    %cst_57 = arith.constant dense<0.000000e+00> : vector<8x512xf32>
    %148 = tpu.matmul %147, %7, %cst_57 {dimension_numbers = #tpu.dot_dimension_numbers<[1], [0], [0], [1], [0, 0, 1, 1], [], []>} : vector<8x256xbf16>, vector<256x512xbf16>, vector<8x512xf32> -> vector<8x512xf32>
    %149 = vector.broadcast %8 : vector<1x512xf32> to vector<8x512xf32>
    %150 = arith.addf %148, %149 : vector<8x512xf32>
    %151 = vector.extract_strided_slice %150 {offsets = [0, 0], sizes = [8, 128], strides = [1, 1]} : vector<8x512xf32> to vector<8x128xf32>
    %152 = arith.negf %151 : vector<8x128xf32>
    %153 = math.exp %152 : vector<8x128xf32>
    %cst_58 = arith.constant 1.000000e+00 : f32
    %154 = vector.broadcast %cst_58 : f32 to vector<8x128xf32>
    %155 = arith.addf %154, %153 : vector<8x128xf32>
    %156 = arith.divf %154, %155 : vector<8x128xf32>
    %157 = vector.extract_strided_slice %150 {offsets = [0, 128], sizes = [8, 128], strides = [1, 1]} : vector<8x512xf32> to vector<8x128xf32>
    %158 = arith.negf %157 : vector<8x128xf32>
    %159 = math.exp %158 : vector<8x128xf32>
    %cst_59 = arith.constant 1.000000e+00 : f32
    %160 = vector.broadcast %cst_59 : f32 to vector<8x128xf32>
    %161 = arith.addf %160, %159 : vector<8x128xf32>
    %162 = arith.divf %160, %161 : vector<8x128xf32>
    %163 = vector.extract_strided_slice %150 {offsets = [0, 256], sizes = [8, 128], strides = [1, 1]} : vector<8x512xf32> to vector<8x128xf32>
    %164 = math.tanh %163 : vector<8x128xf32>
    %165 = vector.extract_strided_slice %150 {offsets = [0, 384], sizes = [8, 128], strides = [1, 1]} : vector<8x512xf32> to vector<8x128xf32>
    %166 = arith.negf %165 : vector<8x128xf32>
    %167 = math.exp %166 : vector<8x128xf32>
    %cst_60 = arith.constant 1.000000e+00 : f32
    %168 = vector.broadcast %cst_60 : f32 to vector<8x128xf32>
    %169 = arith.addf %168, %167 : vector<8x128xf32>
    %170 = arith.divf %168, %169 : vector<8x128xf32>
    %171 = arith.mulf %162, %145 : vector<8x128xf32>
    %172 = arith.mulf %156, %164 : vector<8x128xf32>
    %173 = arith.addf %171, %172 : vector<8x128xf32>
    %174 = math.tanh %173 : vector<8x128xf32>
    %175 = arith.mulf %170, %174 : vector<8x128xf32>
    %176 = arith.truncf %175 : vector<8x128xf32> to vector<8x128xbf16>
    %cst_61 = arith.constant dense<0.000000e+00> : vector<8x112xf32>
    %177 = tpu.matmul %176, %11, %cst_61 {dimension_numbers = #tpu.dot_dimension_numbers<[1], [0], [0], [1], [0, 0, 1, 1], [], []>} : vector<8x128xbf16>, vector<128x112xbf16>, vector<8x112xf32> -> vector<8x112xf32>
    %178 = vector.broadcast %12 : vector<1x112xf32> to vector<8x112xf32>
    %179 = arith.addf %177, %178 : vector<8x112xf32>
    %180 = arith.negf %179 : vector<8x112xf32>
    %181 = math.exp %180 : vector<8x112xf32>
    %cst_62 = arith.constant 1.000000e+00 : f32
    %182 = vector.broadcast %cst_62 : f32 to vector<8x112xf32>
    %183 = arith.addf %182, %181 : vector<8x112xf32>
    %184 = arith.divf %182, %183 : vector<8x112xf32>
    %cst_63 = arith.constant dense<0.000000e+00> : vector<8xf32>
    %185 = vector.multi_reduction <add>, %184, %cst_63 [1] : vector<8x112xf32> to vector<8xf32>
    %186 = vector.shape_cast %185 : vector<8xf32> to vector<8x1xf32>
    %cst_64 = arith.constant 6.250000e-02 : f32
    %187 = vector.broadcast %cst_64 : f32 to vector<8x1xf32>
    %188 = arith.mulf %186, %187 : vector<8x1xf32>
    %189 = tpu.reciprocal %188 {approx = true} : vector<8x1xf32> -> vector<8x1xf32>
    %190 = vector.broadcast %189 : vector<8x1xf32> to vector<8x112xf32>
    %191 = arith.mulf %184, %190 : vector<8x112xf32>
    %192 = arith.mulf %0, %191 : vector<8x112xf32>
    %193 = arith.truncf %191 : vector<8x112xf32> to vector<8x112xbf16>
    %cst_65 = arith.constant dense<0.000000e+00> : vector<8x128xf32>
    %194 = tpu.matmul %193, %1, %cst_65 {dimension_numbers = #tpu.dot_dimension_numbers<[1], [0], [0], [1], [0, 0, 1, 1], [], []>} : vector<8x112xbf16>, vector<112x128xbf16>, vector<8x128xf32> -> vector<8x128xf32>
    %195 = vector.broadcast %2 : vector<1x128xf32> to vector<8x128xf32>
    %196 = arith.addf %194, %195 : vector<8x128xf32>
    %cst_66 = arith.constant 0.000000e+00 : f32
    %197 = vector.broadcast %cst_66 : f32 to vector<8x128xf32>
    %198 = arith.maximumf %196, %197 : vector<8x128xf32>
    %199 = arith.truncf %192 : vector<8x112xf32> to vector<8x112xbf16>
    %cst_67 = arith.constant dense<0.000000e+00> : vector<8x128xf32>
    %200 = tpu.matmul %199, %3, %cst_67 {dimension_numbers = #tpu.dot_dimension_numbers<[1], [0], [0], [1], [0, 0, 1, 1], [], []>} : vector<8x112xbf16>, vector<112x128xbf16>, vector<8x128xf32> -> vector<8x128xf32>
    %201 = vector.broadcast %4 : vector<1x128xf32> to vector<8x128xf32>
    %202 = arith.addf %200, %201 : vector<8x128xf32>
    %cst_68 = arith.constant 0.000000e+00 : f32
    %203 = vector.broadcast %cst_68 : f32 to vector<8x128xf32>
    %204 = arith.maximumf %202, %203 : vector<8x128xf32>
    %205 = tpu.concatenate %198, %204 in 1 : vector<8x128xf32>, vector<8x128xf32> -> vector<8x256xf32>
    %206 = arith.truncf %205 : vector<8x256xf32> to vector<8x256xbf16>
    %cst_69 = arith.constant dense<0.000000e+00> : vector<8x128xf32>
    %207 = tpu.matmul %206, %5, %cst_69 {dimension_numbers = #tpu.dot_dimension_numbers<[1], [0], [0], [1], [0, 0, 1, 1], [], []>} : vector<8x256xbf16>, vector<256x128xbf16>, vector<8x128xf32> -> vector<8x128xf32>
    %208 = vector.broadcast %6 : vector<1x128xf32> to vector<8x128xf32>
    %209 = arith.addf %207, %208 : vector<8x128xf32>
    %cst_70 = arith.constant 0.000000e+00 : f32
    %210 = vector.broadcast %cst_70 : f32 to vector<8x128xf32>
    %211 = arith.maximumf %209, %210 : vector<8x128xf32>
    %cst_71 = arith.constant dense<0.000000e+00> : vector<8xf32>
    %212 = vector.multi_reduction <add>, %175, %cst_71 [1] : vector<8x128xf32> to vector<8xf32>
    %213 = vector.shape_cast %212 : vector<8xf32> to vector<8x1xf32>
    %cst_72 = arith.constant 1.280000e+02 : f32
    %214 = vector.broadcast %cst_72 : f32 to vector<8x1xf32>
    %215 = arith.divf %213, %214 : vector<8x1xf32>
    %216 = vector.broadcast %215 : vector<8x1xf32> to vector<8x128xf32>
    %217 = arith.subf %175, %216 : vector<8x128xf32>
    %218 = arith.mulf %217, %217 : vector<8x128xf32>
    %cst_73 = arith.constant dense<0.000000e+00> : vector<8xf32>
    %219 = vector.multi_reduction <add>, %218, %cst_73 [1] : vector<8x128xf32> to vector<8xf32>
    %220 = vector.shape_cast %219 : vector<8xf32> to vector<8x1xf32>
    %cst_74 = arith.constant 1.280000e+02 : f32
    %221 = vector.broadcast %cst_74 : f32 to vector<8x1xf32>
    %222 = arith.divf %220, %221 : vector<8x1xf32>
    %223 = vector.broadcast %215 : vector<8x1xf32> to vector<8x128xf32>
    %224 = arith.subf %175, %223 : vector<8x128xf32>
    %cst_75 = arith.constant 9.99999974E-6 : f32
    %225 = vector.broadcast %cst_75 : f32 to vector<8x1xf32>
    %226 = arith.addf %222, %225 : vector<8x1xf32>
    %227 = math.rsqrt %226 : vector<8x1xf32>
    %228 = vector.broadcast %227 : vector<8x1xf32> to vector<8x128xf32>
    %229 = arith.mulf %224, %228 : vector<8x128xf32>
    %230 = vector.broadcast %9 : vector<1x128xf32> to vector<8x128xf32>
    %231 = arith.mulf %229, %230 : vector<8x128xf32>
    %232 = vector.broadcast %10 : vector<1x128xf32> to vector<8x128xf32>
    %233 = arith.addf %231, %232 : vector<8x128xf32>
    %cst_76 = arith.constant dense<0.000000e+00> : vector<8xf32>
    %234 = vector.multi_reduction <add>, %173, %cst_76 [1] : vector<8x128xf32> to vector<8xf32>
    %235 = vector.shape_cast %234 : vector<8xf32> to vector<8x1xf32>
    %cst_77 = arith.constant 1.280000e+02 : f32
    %236 = vector.broadcast %cst_77 : f32 to vector<8x1xf32>
    %237 = arith.divf %235, %236 : vector<8x1xf32>
    %238 = vector.broadcast %237 : vector<8x1xf32> to vector<8x128xf32>
    %239 = arith.subf %173, %238 : vector<8x128xf32>
    %240 = arith.mulf %239, %239 : vector<8x128xf32>
    %cst_78 = arith.constant dense<0.000000e+00> : vector<8xf32>
    %241 = vector.multi_reduction <add>, %240, %cst_78 [1] : vector<8x128xf32> to vector<8xf32>
    %242 = vector.shape_cast %241 : vector<8xf32> to vector<8x1xf32>
    %cst_79 = arith.constant 1.280000e+02 : f32
    %243 = vector.broadcast %cst_79 : f32 to vector<8x1xf32>
    %244 = arith.divf %242, %243 : vector<8x1xf32>
    %245 = vector.broadcast %237 : vector<8x1xf32> to vector<8x128xf32>
    %246 = arith.subf %173, %245 : vector<8x128xf32>
    %cst_80 = arith.constant 9.99999974E-6 : f32
    %247 = vector.broadcast %cst_80 : f32 to vector<8x1xf32>
    %248 = arith.addf %244, %247 : vector<8x1xf32>
    %249 = math.rsqrt %248 : vector<8x1xf32>
    %250 = vector.broadcast %249 : vector<8x1xf32> to vector<8x128xf32>
    %251 = arith.mulf %246, %250 : vector<8x128xf32>
    %252 = vector.broadcast %9 : vector<1x128xf32> to vector<8x128xf32>
    %253 = arith.mulf %251, %252 : vector<8x128xf32>
    %254 = vector.broadcast %10 : vector<1x128xf32> to vector<8x128xf32>
    %255 = arith.addf %253, %254 : vector<8x128xf32>
    %256 = tpu.concatenate %211, %233 in 1 : vector<8x128xf32>, vector<8x128xf32> -> vector<8x256xf32>
    %257 = arith.truncf %256 : vector<8x256xf32> to vector<8x256xbf16>
    %cst_81 = arith.constant dense<0.000000e+00> : vector<8x512xf32>
    %258 = tpu.matmul %257, %7, %cst_81 {dimension_numbers = #tpu.dot_dimension_numbers<[1], [0], [0], [1], [0, 0, 1, 1], [], []>} : vector<8x256xbf16>, vector<256x512xbf16>, vector<8x512xf32> -> vector<8x512xf32>
    %259 = vector.broadcast %8 : vector<1x512xf32> to vector<8x512xf32>
    %260 = arith.addf %258, %259 : vector<8x512xf32>
    %261 = vector.extract_strided_slice %260 {offsets = [0, 0], sizes = [8, 128], strides = [1, 1]} : vector<8x512xf32> to vector<8x128xf32>
    %262 = arith.negf %261 : vector<8x128xf32>
    %263 = math.exp %262 : vector<8x128xf32>
    %cst_82 = arith.constant 1.000000e+00 : f32
    %264 = vector.broadcast %cst_82 : f32 to vector<8x128xf32>
    %265 = arith.addf %264, %263 : vector<8x128xf32>
    %266 = arith.divf %264, %265 : vector<8x128xf32>
    %267 = vector.extract_strided_slice %260 {offsets = [0, 128], sizes = [8, 128], strides = [1, 1]} : vector<8x512xf32> to vector<8x128xf32>
    %268 = arith.negf %267 : vector<8x128xf32>
    %269 = math.exp %268 : vector<8x128xf32>
    %cst_83 = arith.constant 1.000000e+00 : f32
    %270 = vector.broadcast %cst_83 : f32 to vector<8x128xf32>
    %271 = arith.addf %270, %269 : vector<8x128xf32>
    %272 = arith.divf %270, %271 : vector<8x128xf32>
    %273 = vector.extract_strided_slice %260 {offsets = [0, 256], sizes = [8, 128], strides = [1, 1]} : vector<8x512xf32> to vector<8x128xf32>
    %274 = math.tanh %273 : vector<8x128xf32>
    %275 = vector.extract_strided_slice %260 {offsets = [0, 384], sizes = [8, 128], strides = [1, 1]} : vector<8x512xf32> to vector<8x128xf32>
    %276 = arith.negf %275 : vector<8x128xf32>
    %277 = math.exp %276 : vector<8x128xf32>
    %cst_84 = arith.constant 1.000000e+00 : f32
    %278 = vector.broadcast %cst_84 : f32 to vector<8x128xf32>
    %279 = arith.addf %278, %277 : vector<8x128xf32>
    %280 = arith.divf %278, %279 : vector<8x128xf32>
    %281 = arith.mulf %272, %255 : vector<8x128xf32>
    %282 = arith.mulf %266, %274 : vector<8x128xf32>
    %283 = arith.addf %281, %282 : vector<8x128xf32>
    %284 = math.tanh %283 : vector<8x128xf32>
    %285 = arith.mulf %280, %284 : vector<8x128xf32>
    %286 = arith.truncf %285 : vector<8x128xf32> to vector<8x128xbf16>
    %cst_85 = arith.constant dense<0.000000e+00> : vector<8x112xf32>
    %287 = tpu.matmul %286, %11, %cst_85 {dimension_numbers = #tpu.dot_dimension_numbers<[1], [0], [0], [1], [0, 0, 1, 1], [], []>} : vector<8x128xbf16>, vector<128x112xbf16>, vector<8x112xf32> -> vector<8x112xf32>
    %288 = vector.broadcast %12 : vector<1x112xf32> to vector<8x112xf32>
    %289 = arith.addf %287, %288 : vector<8x112xf32>
    %290 = arith.negf %289 : vector<8x112xf32>
    %291 = math.exp %290 : vector<8x112xf32>
    %cst_86 = arith.constant 1.000000e+00 : f32
    %292 = vector.broadcast %cst_86 : f32 to vector<8x112xf32>
    %293 = arith.addf %292, %291 : vector<8x112xf32>
    %294 = arith.divf %292, %293 : vector<8x112xf32>
    %cst_87 = arith.constant dense<0.000000e+00> : vector<8xf32>
    %295 = vector.multi_reduction <add>, %294, %cst_87 [1] : vector<8x112xf32> to vector<8xf32>
    %296 = vector.shape_cast %295 : vector<8xf32> to vector<8x1xf32>
    %cst_88 = arith.constant 6.250000e-02 : f32
    %297 = vector.broadcast %cst_88 : f32 to vector<8x1xf32>
    %298 = arith.mulf %296, %297 : vector<8x1xf32>
    %299 = tpu.reciprocal %298 {approx = true} : vector<8x1xf32> -> vector<8x1xf32>
    %300 = vector.broadcast %299 : vector<8x1xf32> to vector<8x112xf32>
    %301 = arith.mulf %294, %300 : vector<8x112xf32>
    %302 = arith.mulf %0, %301 : vector<8x112xf32>
    %303 = arith.truncf %301 : vector<8x112xf32> to vector<8x112xbf16>
    %cst_89 = arith.constant dense<0.000000e+00> : vector<8x128xf32>
    %304 = tpu.matmul %303, %1, %cst_89 {dimension_numbers = #tpu.dot_dimension_numbers<[1], [0], [0], [1], [0, 0, 1, 1], [], []>} : vector<8x112xbf16>, vector<112x128xbf16>, vector<8x128xf32> -> vector<8x128xf32>
    %305 = vector.broadcast %2 : vector<1x128xf32> to vector<8x128xf32>
    %306 = arith.addf %304, %305 : vector<8x128xf32>
    %cst_90 = arith.constant 0.000000e+00 : f32
    %307 = vector.broadcast %cst_90 : f32 to vector<8x128xf32>
    %308 = arith.maximumf %306, %307 : vector<8x128xf32>
    %309 = arith.truncf %302 : vector<8x112xf32> to vector<8x112xbf16>
    %cst_91 = arith.constant dense<0.000000e+00> : vector<8x128xf32>
    %310 = tpu.matmul %309, %3, %cst_91 {dimension_numbers = #tpu.dot_dimension_numbers<[1], [0], [0], [1], [0, 0, 1, 1], [], []>} : vector<8x112xbf16>, vector<112x128xbf16>, vector<8x128xf32> -> vector<8x128xf32>
    %311 = vector.broadcast %4 : vector<1x128xf32> to vector<8x128xf32>
    %312 = arith.addf %310, %311 : vector<8x128xf32>
    %cst_92 = arith.constant 0.000000e+00 : f32
    %313 = vector.broadcast %cst_92 : f32 to vector<8x128xf32>
    %314 = arith.maximumf %312, %313 : vector<8x128xf32>
    %315 = tpu.concatenate %308, %314 in 1 : vector<8x128xf32>, vector<8x128xf32> -> vector<8x256xf32>
    %316 = arith.truncf %315 : vector<8x256xf32> to vector<8x256xbf16>
    %cst_93 = arith.constant dense<0.000000e+00> : vector<8x128xf32>
    %317 = tpu.matmul %316, %5, %cst_93 {dimension_numbers = #tpu.dot_dimension_numbers<[1], [0], [0], [1], [0, 0, 1, 1], [], []>} : vector<8x256xbf16>, vector<256x128xbf16>, vector<8x128xf32> -> vector<8x128xf32>
    %318 = vector.broadcast %6 : vector<1x128xf32> to vector<8x128xf32>
    %319 = arith.addf %317, %318 : vector<8x128xf32>
    %cst_94 = arith.constant 0.000000e+00 : f32
    %320 = vector.broadcast %cst_94 : f32 to vector<8x128xf32>
    %321 = arith.maximumf %319, %320 : vector<8x128xf32>
    %cst_95 = arith.constant dense<0.000000e+00> : vector<8xf32>
    %322 = vector.multi_reduction <add>, %285, %cst_95 [1] : vector<8x128xf32> to vector<8xf32>
    %323 = vector.shape_cast %322 : vector<8xf32> to vector<8x1xf32>
    %cst_96 = arith.constant 1.280000e+02 : f32
    %324 = vector.broadcast %cst_96 : f32 to vector<8x1xf32>
    %325 = arith.divf %323, %324 : vector<8x1xf32>
    %326 = vector.broadcast %325 : vector<8x1xf32> to vector<8x128xf32>
    %327 = arith.subf %285, %326 : vector<8x128xf32>
    %328 = arith.mulf %327, %327 : vector<8x128xf32>
    %cst_97 = arith.constant dense<0.000000e+00> : vector<8xf32>
    %329 = vector.multi_reduction <add>, %328, %cst_97 [1] : vector<8x128xf32> to vector<8xf32>
    %330 = vector.shape_cast %329 : vector<8xf32> to vector<8x1xf32>
    %cst_98 = arith.constant 1.280000e+02 : f32
    %331 = vector.broadcast %cst_98 : f32 to vector<8x1xf32>
    %332 = arith.divf %330, %331 : vector<8x1xf32>
    %333 = vector.broadcast %325 : vector<8x1xf32> to vector<8x128xf32>
    %334 = arith.subf %285, %333 : vector<8x128xf32>
    %cst_99 = arith.constant 9.99999974E-6 : f32
    %335 = vector.broadcast %cst_99 : f32 to vector<8x1xf32>
    %336 = arith.addf %332, %335 : vector<8x1xf32>
    %337 = math.rsqrt %336 : vector<8x1xf32>
    %338 = vector.broadcast %337 : vector<8x1xf32> to vector<8x128xf32>
    %339 = arith.mulf %334, %338 : vector<8x128xf32>
    %340 = vector.broadcast %9 : vector<1x128xf32> to vector<8x128xf32>
    %341 = arith.mulf %339, %340 : vector<8x128xf32>
    %342 = vector.broadcast %10 : vector<1x128xf32> to vector<8x128xf32>
    %343 = arith.addf %341, %342 : vector<8x128xf32>
    %cst_100 = arith.constant dense<0.000000e+00> : vector<8xf32>
    %344 = vector.multi_reduction <add>, %283, %cst_100 [1] : vector<8x128xf32> to vector<8xf32>
    %345 = vector.shape_cast %344 : vector<8xf32> to vector<8x1xf32>
    %cst_101 = arith.constant 1.280000e+02 : f32
    %346 = vector.broadcast %cst_101 : f32 to vector<8x1xf32>
    %347 = arith.divf %345, %346 : vector<8x1xf32>
    %348 = vector.broadcast %347 : vector<8x1xf32> to vector<8x128xf32>
    %349 = arith.subf %283, %348 : vector<8x128xf32>
    %350 = arith.mulf %349, %349 : vector<8x128xf32>
    %cst_102 = arith.constant dense<0.000000e+00> : vector<8xf32>
    %351 = vector.multi_reduction <add>, %350, %cst_102 [1] : vector<8x128xf32> to vector<8xf32>
    %352 = vector.shape_cast %351 : vector<8xf32> to vector<8x1xf32>
    %cst_103 = arith.constant 1.280000e+02 : f32
    %353 = vector.broadcast %cst_103 : f32 to vector<8x1xf32>
    %354 = arith.divf %352, %353 : vector<8x1xf32>
    %355 = vector.broadcast %347 : vector<8x1xf32> to vector<8x128xf32>
    %356 = arith.subf %283, %355 : vector<8x128xf32>
    %cst_104 = arith.constant 9.99999974E-6 : f32
    %357 = vector.broadcast %cst_104 : f32 to vector<8x1xf32>
    %358 = arith.addf %354, %357 : vector<8x1xf32>
    %359 = math.rsqrt %358 : vector<8x1xf32>
    %360 = vector.broadcast %359 : vector<8x1xf32> to vector<8x128xf32>
    %361 = arith.mulf %356, %360 : vector<8x128xf32>
    %362 = vector.broadcast %9 : vector<1x128xf32> to vector<8x128xf32>
    %363 = arith.mulf %361, %362 : vector<8x128xf32>
    %364 = vector.broadcast %10 : vector<1x128xf32> to vector<8x128xf32>
    %365 = arith.addf %363, %364 : vector<8x128xf32>
    %366 = tpu.concatenate %321, %343 in 1 : vector<8x128xf32>, vector<8x128xf32> -> vector<8x256xf32>
    %367 = arith.truncf %366 : vector<8x256xf32> to vector<8x256xbf16>
    %cst_105 = arith.constant dense<0.000000e+00> : vector<8x512xf32>
    %368 = tpu.matmul %367, %7, %cst_105 {dimension_numbers = #tpu.dot_dimension_numbers<[1], [0], [0], [1], [0, 0, 1, 1], [], []>} : vector<8x256xbf16>, vector<256x512xbf16>, vector<8x512xf32> -> vector<8x512xf32>
    %369 = vector.broadcast %8 : vector<1x512xf32> to vector<8x512xf32>
    %370 = arith.addf %368, %369 : vector<8x512xf32>
    %371 = vector.extract_strided_slice %370 {offsets = [0, 0], sizes = [8, 128], strides = [1, 1]} : vector<8x512xf32> to vector<8x128xf32>
    %372 = arith.negf %371 : vector<8x128xf32>
    %373 = math.exp %372 : vector<8x128xf32>
    %cst_106 = arith.constant 1.000000e+00 : f32
    %374 = vector.broadcast %cst_106 : f32 to vector<8x128xf32>
    %375 = arith.addf %374, %373 : vector<8x128xf32>
    %376 = arith.divf %374, %375 : vector<8x128xf32>
    %377 = vector.extract_strided_slice %370 {offsets = [0, 128], sizes = [8, 128], strides = [1, 1]} : vector<8x512xf32> to vector<8x128xf32>
    %378 = arith.negf %377 : vector<8x128xf32>
    %379 = math.exp %378 : vector<8x128xf32>
    %cst_107 = arith.constant 1.000000e+00 : f32
    %380 = vector.broadcast %cst_107 : f32 to vector<8x128xf32>
    %381 = arith.addf %380, %379 : vector<8x128xf32>
    %382 = arith.divf %380, %381 : vector<8x128xf32>
    %383 = vector.extract_strided_slice %370 {offsets = [0, 256], sizes = [8, 128], strides = [1, 1]} : vector<8x512xf32> to vector<8x128xf32>
    %384 = math.tanh %383 : vector<8x128xf32>
    %385 = vector.extract_strided_slice %370 {offsets = [0, 384], sizes = [8, 128], strides = [1, 1]} : vector<8x512xf32> to vector<8x128xf32>
    %386 = arith.negf %385 : vector<8x128xf32>
    %387 = math.exp %386 : vector<8x128xf32>
    %cst_108 = arith.constant 1.000000e+00 : f32
    %388 = vector.broadcast %cst_108 : f32 to vector<8x128xf32>
    %389 = arith.addf %388, %387 : vector<8x128xf32>
    %390 = arith.divf %388, %389 : vector<8x128xf32>
    %391 = arith.mulf %382, %365 : vector<8x128xf32>
    %392 = arith.mulf %376, %384 : vector<8x128xf32>
    %393 = arith.addf %391, %392 : vector<8x128xf32>
    %394 = math.tanh %393 : vector<8x128xf32>
    %395 = arith.mulf %390, %394 : vector<8x128xf32>
    %396 = arith.truncf %395 : vector<8x128xf32> to vector<8x128xbf16>
    %cst_109 = arith.constant dense<0.000000e+00> : vector<8x112xf32>
    %397 = tpu.matmul %396, %11, %cst_109 {dimension_numbers = #tpu.dot_dimension_numbers<[1], [0], [0], [1], [0, 0, 1, 1], [], []>} : vector<8x128xbf16>, vector<128x112xbf16>, vector<8x112xf32> -> vector<8x112xf32>
    %398 = vector.broadcast %12 : vector<1x112xf32> to vector<8x112xf32>
    %399 = arith.addf %397, %398 : vector<8x112xf32>
    %400 = arith.negf %399 : vector<8x112xf32>
    %401 = math.exp %400 : vector<8x112xf32>
    %cst_110 = arith.constant 1.000000e+00 : f32
    %402 = vector.broadcast %cst_110 : f32 to vector<8x112xf32>
    %403 = arith.addf %402, %401 : vector<8x112xf32>
    %404 = arith.divf %402, %403 : vector<8x112xf32>
    %cst_111 = arith.constant dense<0.000000e+00> : vector<8xf32>
    %405 = vector.multi_reduction <add>, %404, %cst_111 [1] : vector<8x112xf32> to vector<8xf32>
    %406 = vector.shape_cast %405 : vector<8xf32> to vector<8x1xf32>
    %cst_112 = arith.constant 6.250000e-02 : f32
    %407 = vector.broadcast %cst_112 : f32 to vector<8x1xf32>
    %408 = arith.mulf %406, %407 : vector<8x1xf32>
    %409 = tpu.reciprocal %408 {approx = true} : vector<8x1xf32> -> vector<8x1xf32>
    %410 = vector.broadcast %409 : vector<8x1xf32> to vector<8x112xf32>
    %411 = arith.mulf %404, %410 : vector<8x112xf32>
    %412 = arith.mulf %0, %411 : vector<8x112xf32>
    %413 = arith.truncf %411 : vector<8x112xf32> to vector<8x112xbf16>
    %cst_113 = arith.constant dense<0.000000e+00> : vector<8x128xf32>
    %414 = tpu.matmul %413, %1, %cst_113 {dimension_numbers = #tpu.dot_dimension_numbers<[1], [0], [0], [1], [0, 0, 1, 1], [], []>} : vector<8x112xbf16>, vector<112x128xbf16>, vector<8x128xf32> -> vector<8x128xf32>
    %415 = vector.broadcast %2 : vector<1x128xf32> to vector<8x128xf32>
    %416 = arith.addf %414, %415 : vector<8x128xf32>
    %cst_114 = arith.constant 0.000000e+00 : f32
    %417 = vector.broadcast %cst_114 : f32 to vector<8x128xf32>
    %418 = arith.maximumf %416, %417 : vector<8x128xf32>
    %419 = arith.truncf %412 : vector<8x112xf32> to vector<8x112xbf16>
    %cst_115 = arith.constant dense<0.000000e+00> : vector<8x128xf32>
    %420 = tpu.matmul %419, %3, %cst_115 {dimension_numbers = #tpu.dot_dimension_numbers<[1], [0], [0], [1], [0, 0, 1, 1], [], []>} : vector<8x112xbf16>, vector<112x128xbf16>, vector<8x128xf32> -> vector<8x128xf32>
    %421 = vector.broadcast %4 : vector<1x128xf32> to vector<8x128xf32>
    %422 = arith.addf %420, %421 : vector<8x128xf32>
    %cst_116 = arith.constant 0.000000e+00 : f32
    %423 = vector.broadcast %cst_116 : f32 to vector<8x128xf32>
    %424 = arith.maximumf %422, %423 : vector<8x128xf32>
    %425 = tpu.concatenate %418, %424 in 1 : vector<8x128xf32>, vector<8x128xf32> -> vector<8x256xf32>
    %426 = arith.truncf %425 : vector<8x256xf32> to vector<8x256xbf16>
    %cst_117 = arith.constant dense<0.000000e+00> : vector<8x128xf32>
    %427 = tpu.matmul %426, %5, %cst_117 {dimension_numbers = #tpu.dot_dimension_numbers<[1], [0], [0], [1], [0, 0, 1, 1], [], []>} : vector<8x256xbf16>, vector<256x128xbf16>, vector<8x128xf32> -> vector<8x128xf32>
    %428 = vector.broadcast %6 : vector<1x128xf32> to vector<8x128xf32>
    %429 = arith.addf %427, %428 : vector<8x128xf32>
    %cst_118 = arith.constant 0.000000e+00 : f32
    %430 = vector.broadcast %cst_118 : f32 to vector<8x128xf32>
    %431 = arith.maximumf %429, %430 : vector<8x128xf32>
    %cst_119 = arith.constant dense<0.000000e+00> : vector<8xf32>
    %432 = vector.multi_reduction <add>, %395, %cst_119 [1] : vector<8x128xf32> to vector<8xf32>
    %433 = vector.shape_cast %432 : vector<8xf32> to vector<8x1xf32>
    %cst_120 = arith.constant 1.280000e+02 : f32
    %434 = vector.broadcast %cst_120 : f32 to vector<8x1xf32>
    %435 = arith.divf %433, %434 : vector<8x1xf32>
    %436 = vector.broadcast %435 : vector<8x1xf32> to vector<8x128xf32>
    %437 = arith.subf %395, %436 : vector<8x128xf32>
    %438 = arith.mulf %437, %437 : vector<8x128xf32>
    %cst_121 = arith.constant dense<0.000000e+00> : vector<8xf32>
    %439 = vector.multi_reduction <add>, %438, %cst_121 [1] : vector<8x128xf32> to vector<8xf32>
    %440 = vector.shape_cast %439 : vector<8xf32> to vector<8x1xf32>
    %cst_122 = arith.constant 1.280000e+02 : f32
    %441 = vector.broadcast %cst_122 : f32 to vector<8x1xf32>
    %442 = arith.divf %440, %441 : vector<8x1xf32>
    %443 = vector.broadcast %435 : vector<8x1xf32> to vector<8x128xf32>
    %444 = arith.subf %395, %443 : vector<8x128xf32>
    %cst_123 = arith.constant 9.99999974E-6 : f32
    %445 = vector.broadcast %cst_123 : f32 to vector<8x1xf32>
    %446 = arith.addf %442, %445 : vector<8x1xf32>
    %447 = math.rsqrt %446 : vector<8x1xf32>
    %448 = vector.broadcast %447 : vector<8x1xf32> to vector<8x128xf32>
    %449 = arith.mulf %444, %448 : vector<8x128xf32>
    %450 = vector.broadcast %9 : vector<1x128xf32> to vector<8x128xf32>
    %451 = arith.mulf %449, %450 : vector<8x128xf32>
    %452 = vector.broadcast %10 : vector<1x128xf32> to vector<8x128xf32>
    %453 = arith.addf %451, %452 : vector<8x128xf32>
    %cst_124 = arith.constant dense<0.000000e+00> : vector<8xf32>
    %454 = vector.multi_reduction <add>, %393, %cst_124 [1] : vector<8x128xf32> to vector<8xf32>
    %455 = vector.shape_cast %454 : vector<8xf32> to vector<8x1xf32>
    %cst_125 = arith.constant 1.280000e+02 : f32
    %456 = vector.broadcast %cst_125 : f32 to vector<8x1xf32>
    %457 = arith.divf %455, %456 : vector<8x1xf32>
    %458 = vector.broadcast %457 : vector<8x1xf32> to vector<8x128xf32>
    %459 = arith.subf %393, %458 : vector<8x128xf32>
    %460 = arith.mulf %459, %459 : vector<8x128xf32>
    %cst_126 = arith.constant dense<0.000000e+00> : vector<8xf32>
    %461 = vector.multi_reduction <add>, %460, %cst_126 [1] : vector<8x128xf32> to vector<8xf32>
    %462 = vector.shape_cast %461 : vector<8xf32> to vector<8x1xf32>
    %cst_127 = arith.constant 1.280000e+02 : f32
    %463 = vector.broadcast %cst_127 : f32 to vector<8x1xf32>
    %464 = arith.divf %462, %463 : vector<8x1xf32>
    %465 = vector.broadcast %457 : vector<8x1xf32> to vector<8x128xf32>
    %466 = arith.subf %393, %465 : vector<8x128xf32>
    %cst_128 = arith.constant 9.99999974E-6 : f32
    %467 = vector.broadcast %cst_128 : f32 to vector<8x1xf32>
    %468 = arith.addf %464, %467 : vector<8x1xf32>
    %469 = math.rsqrt %468 : vector<8x1xf32>
    %470 = vector.broadcast %469 : vector<8x1xf32> to vector<8x128xf32>
    %471 = arith.mulf %466, %470 : vector<8x128xf32>
    %472 = vector.broadcast %9 : vector<1x128xf32> to vector<8x128xf32>
    %473 = arith.mulf %471, %472 : vector<8x128xf32>
    %474 = vector.broadcast %10 : vector<1x128xf32> to vector<8x128xf32>
    %475 = arith.addf %473, %474 : vector<8x128xf32>
    %476 = tpu.concatenate %431, %453 in 1 : vector<8x128xf32>, vector<8x128xf32> -> vector<8x256xf32>
    %477 = arith.truncf %476 : vector<8x256xf32> to vector<8x256xbf16>
    %cst_129 = arith.constant dense<0.000000e+00> : vector<8x512xf32>
    %478 = tpu.matmul %477, %7, %cst_129 {dimension_numbers = #tpu.dot_dimension_numbers<[1], [0], [0], [1], [0, 0, 1, 1], [], []>} : vector<8x256xbf16>, vector<256x512xbf16>, vector<8x512xf32> -> vector<8x512xf32>
    %479 = vector.broadcast %8 : vector<1x512xf32> to vector<8x512xf32>
    %480 = arith.addf %478, %479 : vector<8x512xf32>
    %481 = vector.extract_strided_slice %480 {offsets = [0, 0], sizes = [8, 128], strides = [1, 1]} : vector<8x512xf32> to vector<8x128xf32>
    %482 = arith.negf %481 : vector<8x128xf32>
    %483 = math.exp %482 : vector<8x128xf32>
    %cst_130 = arith.constant 1.000000e+00 : f32
    %484 = vector.broadcast %cst_130 : f32 to vector<8x128xf32>
    %485 = arith.addf %484, %483 : vector<8x128xf32>
    %486 = arith.divf %484, %485 : vector<8x128xf32>
    %487 = vector.extract_strided_slice %480 {offsets = [0, 128], sizes = [8, 128], strides = [1, 1]} : vector<8x512xf32> to vector<8x128xf32>
    %488 = arith.negf %487 : vector<8x128xf32>
    %489 = math.exp %488 : vector<8x128xf32>
    %cst_131 = arith.constant 1.000000e+00 : f32
    %490 = vector.broadcast %cst_131 : f32 to vector<8x128xf32>
    %491 = arith.addf %490, %489 : vector<8x128xf32>
    %492 = arith.divf %490, %491 : vector<8x128xf32>
    %493 = vector.extract_strided_slice %480 {offsets = [0, 256], sizes = [8, 128], strides = [1, 1]} : vector<8x512xf32> to vector<8x128xf32>
    %494 = math.tanh %493 : vector<8x128xf32>
    %495 = vector.extract_strided_slice %480 {offsets = [0, 384], sizes = [8, 128], strides = [1, 1]} : vector<8x512xf32> to vector<8x128xf32>
    %496 = arith.negf %495 : vector<8x128xf32>
    %497 = math.exp %496 : vector<8x128xf32>
    %cst_132 = arith.constant 1.000000e+00 : f32
    %498 = vector.broadcast %cst_132 : f32 to vector<8x128xf32>
    %499 = arith.addf %498, %497 : vector<8x128xf32>
    %500 = arith.divf %498, %499 : vector<8x128xf32>
    %501 = arith.mulf %492, %475 : vector<8x128xf32>
    %502 = arith.mulf %486, %494 : vector<8x128xf32>
    %503 = arith.addf %501, %502 : vector<8x128xf32>
    %504 = math.tanh %503 : vector<8x128xf32>
    %505 = arith.mulf %500, %504 : vector<8x128xf32>
    %506 = arith.truncf %505 : vector<8x128xf32> to vector<8x128xbf16>
    %cst_133 = arith.constant dense<0.000000e+00> : vector<8x112xf32>
    %507 = tpu.matmul %506, %11, %cst_133 {dimension_numbers = #tpu.dot_dimension_numbers<[1], [0], [0], [1], [0, 0, 1, 1], [], []>} : vector<8x128xbf16>, vector<128x112xbf16>, vector<8x112xf32> -> vector<8x112xf32>
    %508 = vector.broadcast %12 : vector<1x112xf32> to vector<8x112xf32>
    %509 = arith.addf %507, %508 : vector<8x112xf32>
    %510 = arith.negf %509 : vector<8x112xf32>
    %511 = math.exp %510 : vector<8x112xf32>
    %cst_134 = arith.constant 1.000000e+00 : f32
    %512 = vector.broadcast %cst_134 : f32 to vector<8x112xf32>
    %513 = arith.addf %512, %511 : vector<8x112xf32>
    %514 = arith.divf %512, %513 : vector<8x112xf32>
    %cst_135 = arith.constant dense<0.000000e+00> : vector<8xf32>
    %515 = vector.multi_reduction <add>, %514, %cst_135 [1] : vector<8x112xf32> to vector<8xf32>
    %516 = vector.shape_cast %515 : vector<8xf32> to vector<8x1xf32>
    %cst_136 = arith.constant 6.250000e-02 : f32
    %517 = vector.broadcast %cst_136 : f32 to vector<8x1xf32>
    %518 = arith.mulf %516, %517 : vector<8x1xf32>
    %519 = tpu.reciprocal %518 {approx = true} : vector<8x1xf32> -> vector<8x1xf32>
    %520 = vector.broadcast %519 : vector<8x1xf32> to vector<8x112xf32>
    %521 = arith.mulf %514, %520 : vector<8x112xf32>
    %522 = arith.mulf %0, %521 : vector<8x112xf32>
    %523 = arith.truncf %521 : vector<8x112xf32> to vector<8x112xbf16>
    %cst_137 = arith.constant dense<0.000000e+00> : vector<8x128xf32>
    %524 = tpu.matmul %523, %1, %cst_137 {dimension_numbers = #tpu.dot_dimension_numbers<[1], [0], [0], [1], [0, 0, 1, 1], [], []>} : vector<8x112xbf16>, vector<112x128xbf16>, vector<8x128xf32> -> vector<8x128xf32>
    %525 = vector.broadcast %2 : vector<1x128xf32> to vector<8x128xf32>
    %526 = arith.addf %524, %525 : vector<8x128xf32>
    %cst_138 = arith.constant 0.000000e+00 : f32
    %527 = vector.broadcast %cst_138 : f32 to vector<8x128xf32>
    %528 = arith.maximumf %526, %527 : vector<8x128xf32>
    %529 = arith.truncf %522 : vector<8x112xf32> to vector<8x112xbf16>
    %cst_139 = arith.constant dense<0.000000e+00> : vector<8x128xf32>
    %530 = tpu.matmul %529, %3, %cst_139 {dimension_numbers = #tpu.dot_dimension_numbers<[1], [0], [0], [1], [0, 0, 1, 1], [], []>} : vector<8x112xbf16>, vector<112x128xbf16>, vector<8x128xf32> -> vector<8x128xf32>
    %531 = vector.broadcast %4 : vector<1x128xf32> to vector<8x128xf32>
    %532 = arith.addf %530, %531 : vector<8x128xf32>
    %cst_140 = arith.constant 0.000000e+00 : f32
    %533 = vector.broadcast %cst_140 : f32 to vector<8x128xf32>
    %534 = arith.maximumf %532, %533 : vector<8x128xf32>
    %535 = tpu.concatenate %528, %534 in 1 : vector<8x128xf32>, vector<8x128xf32> -> vector<8x256xf32>
    %536 = arith.truncf %535 : vector<8x256xf32> to vector<8x256xbf16>
    %cst_141 = arith.constant dense<0.000000e+00> : vector<8x128xf32>
    %537 = tpu.matmul %536, %5, %cst_141 {dimension_numbers = #tpu.dot_dimension_numbers<[1], [0], [0], [1], [0, 0, 1, 1], [], []>} : vector<8x256xbf16>, vector<256x128xbf16>, vector<8x128xf32> -> vector<8x128xf32>
    %538 = vector.broadcast %6 : vector<1x128xf32> to vector<8x128xf32>
    %539 = arith.addf %537, %538 : vector<8x128xf32>
    %cst_142 = arith.constant 0.000000e+00 : f32
    %540 = vector.broadcast %cst_142 : f32 to vector<8x128xf32>
    %541 = arith.maximumf %539, %540 : vector<8x128xf32>
    %cst_143 = arith.constant dense<0.000000e+00> : vector<8xf32>
    %542 = vector.multi_reduction <add>, %505, %cst_143 [1] : vector<8x128xf32> to vector<8xf32>
    %543 = vector.shape_cast %542 : vector<8xf32> to vector<8x1xf32>
    %cst_144 = arith.constant 1.280000e+02 : f32
    %544 = vector.broadcast %cst_144 : f32 to vector<8x1xf32>
    %545 = arith.divf %543, %544 : vector<8x1xf32>
    %546 = vector.broadcast %545 : vector<8x1xf32> to vector<8x128xf32>
    %547 = arith.subf %505, %546 : vector<8x128xf32>
    %548 = arith.mulf %547, %547 : vector<8x128xf32>
    %cst_145 = arith.constant dense<0.000000e+00> : vector<8xf32>
    %549 = vector.multi_reduction <add>, %548, %cst_145 [1] : vector<8x128xf32> to vector<8xf32>
    %550 = vector.shape_cast %549 : vector<8xf32> to vector<8x1xf32>
    %cst_146 = arith.constant 1.280000e+02 : f32
    %551 = vector.broadcast %cst_146 : f32 to vector<8x1xf32>
    %552 = arith.divf %550, %551 : vector<8x1xf32>
    %553 = vector.broadcast %545 : vector<8x1xf32> to vector<8x128xf32>
    %554 = arith.subf %505, %553 : vector<8x128xf32>
    %cst_147 = arith.constant 9.99999974E-6 : f32
    %555 = vector.broadcast %cst_147 : f32 to vector<8x1xf32>
    %556 = arith.addf %552, %555 : vector<8x1xf32>
    %557 = math.rsqrt %556 : vector<8x1xf32>
    %558 = vector.broadcast %557 : vector<8x1xf32> to vector<8x128xf32>
    %559 = arith.mulf %554, %558 : vector<8x128xf32>
    %560 = vector.broadcast %9 : vector<1x128xf32> to vector<8x128xf32>
    %561 = arith.mulf %559, %560 : vector<8x128xf32>
    %562 = vector.broadcast %10 : vector<1x128xf32> to vector<8x128xf32>
    %563 = arith.addf %561, %562 : vector<8x128xf32>
    %cst_148 = arith.constant dense<0.000000e+00> : vector<8xf32>
    %564 = vector.multi_reduction <add>, %503, %cst_148 [1] : vector<8x128xf32> to vector<8xf32>
    %565 = vector.shape_cast %564 : vector<8xf32> to vector<8x1xf32>
    %cst_149 = arith.constant 1.280000e+02 : f32
    %566 = vector.broadcast %cst_149 : f32 to vector<8x1xf32>
    %567 = arith.divf %565, %566 : vector<8x1xf32>
    %568 = vector.broadcast %567 : vector<8x1xf32> to vector<8x128xf32>
    %569 = arith.subf %503, %568 : vector<8x128xf32>
    %570 = arith.mulf %569, %569 : vector<8x128xf32>
    %cst_150 = arith.constant dense<0.000000e+00> : vector<8xf32>
    %571 = vector.multi_reduction <add>, %570, %cst_150 [1] : vector<8x128xf32> to vector<8xf32>
    %572 = vector.shape_cast %571 : vector<8xf32> to vector<8x1xf32>
    %cst_151 = arith.constant 1.280000e+02 : f32
    %573 = vector.broadcast %cst_151 : f32 to vector<8x1xf32>
    %574 = arith.divf %572, %573 : vector<8x1xf32>
    %575 = vector.broadcast %567 : vector<8x1xf32> to vector<8x128xf32>
    %576 = arith.subf %503, %575 : vector<8x128xf32>
    %cst_152 = arith.constant 9.99999974E-6 : f32
    %577 = vector.broadcast %cst_152 : f32 to vector<8x1xf32>
    %578 = arith.addf %574, %577 : vector<8x1xf32>
    %579 = math.rsqrt %578 : vector<8x1xf32>
    %580 = vector.broadcast %579 : vector<8x1xf32> to vector<8x128xf32>
    %581 = arith.mulf %576, %580 : vector<8x128xf32>
    %582 = vector.broadcast %9 : vector<1x128xf32> to vector<8x128xf32>
    %583 = arith.mulf %581, %582 : vector<8x128xf32>
    %584 = vector.broadcast %10 : vector<1x128xf32> to vector<8x128xf32>
    %585 = arith.addf %583, %584 : vector<8x128xf32>
    %586 = tpu.concatenate %541, %563 in 1 : vector<8x128xf32>, vector<8x128xf32> -> vector<8x256xf32>
    %587 = arith.truncf %586 : vector<8x256xf32> to vector<8x256xbf16>
    %cst_153 = arith.constant dense<0.000000e+00> : vector<8x512xf32>
    %588 = tpu.matmul %587, %7, %cst_153 {dimension_numbers = #tpu.dot_dimension_numbers<[1], [0], [0], [1], [0, 0, 1, 1], [], []>} : vector<8x256xbf16>, vector<256x512xbf16>, vector<8x512xf32> -> vector<8x512xf32>
    %589 = vector.broadcast %8 : vector<1x512xf32> to vector<8x512xf32>
    %590 = arith.addf %588, %589 : vector<8x512xf32>
    %591 = vector.extract_strided_slice %590 {offsets = [0, 0], sizes = [8, 128], strides = [1, 1]} : vector<8x512xf32> to vector<8x128xf32>
    %592 = arith.negf %591 : vector<8x128xf32>
    %593 = math.exp %592 : vector<8x128xf32>
    %cst_154 = arith.constant 1.000000e+00 : f32
    %594 = vector.broadcast %cst_154 : f32 to vector<8x128xf32>
    %595 = arith.addf %594, %593 : vector<8x128xf32>
    %596 = arith.divf %594, %595 : vector<8x128xf32>
    %597 = vector.extract_strided_slice %590 {offsets = [0, 128], sizes = [8, 128], strides = [1, 1]} : vector<8x512xf32> to vector<8x128xf32>
    %598 = arith.negf %597 : vector<8x128xf32>
    %599 = math.exp %598 : vector<8x128xf32>
    %cst_155 = arith.constant 1.000000e+00 : f32
    %600 = vector.broadcast %cst_155 : f32 to vector<8x128xf32>
    %601 = arith.addf %600, %599 : vector<8x128xf32>
    %602 = arith.divf %600, %601 : vector<8x128xf32>
    %603 = vector.extract_strided_slice %590 {offsets = [0, 256], sizes = [8, 128], strides = [1, 1]} : vector<8x512xf32> to vector<8x128xf32>
    %604 = math.tanh %603 : vector<8x128xf32>
    %605 = vector.extract_strided_slice %590 {offsets = [0, 384], sizes = [8, 128], strides = [1, 1]} : vector<8x512xf32> to vector<8x128xf32>
    %606 = arith.negf %605 : vector<8x128xf32>
    %607 = math.exp %606 : vector<8x128xf32>
    %cst_156 = arith.constant 1.000000e+00 : f32
    %608 = vector.broadcast %cst_156 : f32 to vector<8x128xf32>
    %609 = arith.addf %608, %607 : vector<8x128xf32>
    %610 = arith.divf %608, %609 : vector<8x128xf32>
    %611 = arith.mulf %602, %585 : vector<8x128xf32>
    %612 = arith.mulf %596, %604 : vector<8x128xf32>
    %613 = arith.addf %611, %612 : vector<8x128xf32>
    %614 = math.tanh %613 : vector<8x128xf32>
    %615 = arith.mulf %610, %614 : vector<8x128xf32>
    %616 = arith.truncf %615 : vector<8x128xf32> to vector<8x128xbf16>
    %cst_157 = arith.constant dense<0.000000e+00> : vector<8x112xf32>
    %617 = tpu.matmul %616, %11, %cst_157 {dimension_numbers = #tpu.dot_dimension_numbers<[1], [0], [0], [1], [0, 0, 1, 1], [], []>} : vector<8x128xbf16>, vector<128x112xbf16>, vector<8x112xf32> -> vector<8x112xf32>
    %618 = vector.broadcast %12 : vector<1x112xf32> to vector<8x112xf32>
    %619 = arith.addf %617, %618 : vector<8x112xf32>
    %620 = arith.negf %619 : vector<8x112xf32>
    %621 = math.exp %620 : vector<8x112xf32>
    %cst_158 = arith.constant 1.000000e+00 : f32
    %622 = vector.broadcast %cst_158 : f32 to vector<8x112xf32>
    %623 = arith.addf %622, %621 : vector<8x112xf32>
    %624 = arith.divf %622, %623 : vector<8x112xf32>
    %cst_159 = arith.constant dense<0.000000e+00> : vector<8xf32>
    %625 = vector.multi_reduction <add>, %624, %cst_159 [1] : vector<8x112xf32> to vector<8xf32>
    %626 = vector.shape_cast %625 : vector<8xf32> to vector<8x1xf32>
    %cst_160 = arith.constant 6.250000e-02 : f32
    %627 = vector.broadcast %cst_160 : f32 to vector<8x1xf32>
    %628 = arith.mulf %626, %627 : vector<8x1xf32>
    %629 = tpu.reciprocal %628 {approx = true} : vector<8x1xf32> -> vector<8x1xf32>
    %630 = vector.broadcast %629 : vector<8x1xf32> to vector<8x112xf32>
    %631 = arith.mulf %624, %630 : vector<8x112xf32>
    %632 = arith.mulf %0, %631 : vector<8x112xf32>
    %633 = arith.truncf %631 : vector<8x112xf32> to vector<8x112xbf16>
    %cst_161 = arith.constant dense<0.000000e+00> : vector<8x128xf32>
    %634 = tpu.matmul %633, %1, %cst_161 {dimension_numbers = #tpu.dot_dimension_numbers<[1], [0], [0], [1], [0, 0, 1, 1], [], []>} : vector<8x112xbf16>, vector<112x128xbf16>, vector<8x128xf32> -> vector<8x128xf32>
    %635 = vector.broadcast %2 : vector<1x128xf32> to vector<8x128xf32>
    %636 = arith.addf %634, %635 : vector<8x128xf32>
    %cst_162 = arith.constant 0.000000e+00 : f32
    %637 = vector.broadcast %cst_162 : f32 to vector<8x128xf32>
    %638 = arith.maximumf %636, %637 : vector<8x128xf32>
    %639 = arith.truncf %632 : vector<8x112xf32> to vector<8x112xbf16>
    %cst_163 = arith.constant dense<0.000000e+00> : vector<8x128xf32>
    %640 = tpu.matmul %639, %3, %cst_163 {dimension_numbers = #tpu.dot_dimension_numbers<[1], [0], [0], [1], [0, 0, 1, 1], [], []>} : vector<8x112xbf16>, vector<112x128xbf16>, vector<8x128xf32> -> vector<8x128xf32>
    %641 = vector.broadcast %4 : vector<1x128xf32> to vector<8x128xf32>
    %642 = arith.addf %640, %641 : vector<8x128xf32>
    %cst_164 = arith.constant 0.000000e+00 : f32
    %643 = vector.broadcast %cst_164 : f32 to vector<8x128xf32>
    %644 = arith.maximumf %642, %643 : vector<8x128xf32>
    %645 = tpu.concatenate %638, %644 in 1 : vector<8x128xf32>, vector<8x128xf32> -> vector<8x256xf32>
    %646 = arith.truncf %645 : vector<8x256xf32> to vector<8x256xbf16>
    %cst_165 = arith.constant dense<0.000000e+00> : vector<8x128xf32>
    %647 = tpu.matmul %646, %5, %cst_165 {dimension_numbers = #tpu.dot_dimension_numbers<[1], [0], [0], [1], [0, 0, 1, 1], [], []>} : vector<8x256xbf16>, vector<256x128xbf16>, vector<8x128xf32> -> vector<8x128xf32>
    %648 = vector.broadcast %6 : vector<1x128xf32> to vector<8x128xf32>
    %649 = arith.addf %647, %648 : vector<8x128xf32>
    %cst_166 = arith.constant 0.000000e+00 : f32
    %650 = vector.broadcast %cst_166 : f32 to vector<8x128xf32>
    %651 = arith.maximumf %649, %650 : vector<8x128xf32>
    %cst_167 = arith.constant dense<0.000000e+00> : vector<8xf32>
    %652 = vector.multi_reduction <add>, %615, %cst_167 [1] : vector<8x128xf32> to vector<8xf32>
    %653 = vector.shape_cast %652 : vector<8xf32> to vector<8x1xf32>
    %cst_168 = arith.constant 1.280000e+02 : f32
    %654 = vector.broadcast %cst_168 : f32 to vector<8x1xf32>
    %655 = arith.divf %653, %654 : vector<8x1xf32>
    %656 = vector.broadcast %655 : vector<8x1xf32> to vector<8x128xf32>
    %657 = arith.subf %615, %656 : vector<8x128xf32>
    %658 = arith.mulf %657, %657 : vector<8x128xf32>
    %cst_169 = arith.constant dense<0.000000e+00> : vector<8xf32>
    %659 = vector.multi_reduction <add>, %658, %cst_169 [1] : vector<8x128xf32> to vector<8xf32>
    %660 = vector.shape_cast %659 : vector<8xf32> to vector<8x1xf32>
    %cst_170 = arith.constant 1.280000e+02 : f32
    %661 = vector.broadcast %cst_170 : f32 to vector<8x1xf32>
    %662 = arith.divf %660, %661 : vector<8x1xf32>
    %663 = vector.broadcast %655 : vector<8x1xf32> to vector<8x128xf32>
    %664 = arith.subf %615, %663 : vector<8x128xf32>
    %cst_171 = arith.constant 9.99999974E-6 : f32
    %665 = vector.broadcast %cst_171 : f32 to vector<8x1xf32>
    %666 = arith.addf %662, %665 : vector<8x1xf32>
    %667 = math.rsqrt %666 : vector<8x1xf32>
    %668 = vector.broadcast %667 : vector<8x1xf32> to vector<8x128xf32>
    %669 = arith.mulf %664, %668 : vector<8x128xf32>
    %670 = vector.broadcast %9 : vector<1x128xf32> to vector<8x128xf32>
    %671 = arith.mulf %669, %670 : vector<8x128xf32>
    %672 = vector.broadcast %10 : vector<1x128xf32> to vector<8x128xf32>
    %673 = arith.addf %671, %672 : vector<8x128xf32>
    %cst_172 = arith.constant dense<0.000000e+00> : vector<8xf32>
    %674 = vector.multi_reduction <add>, %613, %cst_172 [1] : vector<8x128xf32> to vector<8xf32>
    %675 = vector.shape_cast %674 : vector<8xf32> to vector<8x1xf32>
    %cst_173 = arith.constant 1.280000e+02 : f32
    %676 = vector.broadcast %cst_173 : f32 to vector<8x1xf32>
    %677 = arith.divf %675, %676 : vector<8x1xf32>
    %678 = vector.broadcast %677 : vector<8x1xf32> to vector<8x128xf32>
    %679 = arith.subf %613, %678 : vector<8x128xf32>
    %680 = arith.mulf %679, %679 : vector<8x128xf32>
    %cst_174 = arith.constant dense<0.000000e+00> : vector<8xf32>
    %681 = vector.multi_reduction <add>, %680, %cst_174 [1] : vector<8x128xf32> to vector<8xf32>
    %682 = vector.shape_cast %681 : vector<8xf32> to vector<8x1xf32>
    %cst_175 = arith.constant 1.280000e+02 : f32
    %683 = vector.broadcast %cst_175 : f32 to vector<8x1xf32>
    %684 = arith.divf %682, %683 : vector<8x1xf32>
    %685 = vector.broadcast %677 : vector<8x1xf32> to vector<8x128xf32>
    %686 = arith.subf %613, %685 : vector<8x128xf32>
    %cst_176 = arith.constant 9.99999974E-6 : f32
    %687 = vector.broadcast %cst_176 : f32 to vector<8x1xf32>
    %688 = arith.addf %684, %687 : vector<8x1xf32>
    %689 = math.rsqrt %688 : vector<8x1xf32>
    %690 = vector.broadcast %689 : vector<8x1xf32> to vector<8x128xf32>
    %691 = arith.mulf %686, %690 : vector<8x128xf32>
    %692 = vector.broadcast %9 : vector<1x128xf32> to vector<8x128xf32>
    %693 = arith.mulf %691, %692 : vector<8x128xf32>
    %694 = vector.broadcast %10 : vector<1x128xf32> to vector<8x128xf32>
    %695 = arith.addf %693, %694 : vector<8x128xf32>
    %696 = tpu.concatenate %651, %673 in 1 : vector<8x128xf32>, vector<8x128xf32> -> vector<8x256xf32>
    %697 = arith.truncf %696 : vector<8x256xf32> to vector<8x256xbf16>
    %cst_177 = arith.constant dense<0.000000e+00> : vector<8x512xf32>
    %698 = tpu.matmul %697, %7, %cst_177 {dimension_numbers = #tpu.dot_dimension_numbers<[1], [0], [0], [1], [0, 0, 1, 1], [], []>} : vector<8x256xbf16>, vector<256x512xbf16>, vector<8x512xf32> -> vector<8x512xf32>
    %699 = vector.broadcast %8 : vector<1x512xf32> to vector<8x512xf32>
    %700 = arith.addf %698, %699 : vector<8x512xf32>
    %701 = vector.extract_strided_slice %700 {offsets = [0, 0], sizes = [8, 128], strides = [1, 1]} : vector<8x512xf32> to vector<8x128xf32>
    %702 = arith.negf %701 : vector<8x128xf32>
    %703 = math.exp %702 : vector<8x128xf32>
    %cst_178 = arith.constant 1.000000e+00 : f32
    %704 = vector.broadcast %cst_178 : f32 to vector<8x128xf32>
    %705 = arith.addf %704, %703 : vector<8x128xf32>
    %706 = arith.divf %704, %705 : vector<8x128xf32>
    %707 = vector.extract_strided_slice %700 {offsets = [0, 128], sizes = [8, 128], strides = [1, 1]} : vector<8x512xf32> to vector<8x128xf32>
    %708 = arith.negf %707 : vector<8x128xf32>
    %709 = math.exp %708 : vector<8x128xf32>
    %cst_179 = arith.constant 1.000000e+00 : f32
    %710 = vector.broadcast %cst_179 : f32 to vector<8x128xf32>
    %711 = arith.addf %710, %709 : vector<8x128xf32>
    %712 = arith.divf %710, %711 : vector<8x128xf32>
    %713 = vector.extract_strided_slice %700 {offsets = [0, 256], sizes = [8, 128], strides = [1, 1]} : vector<8x512xf32> to vector<8x128xf32>
    %714 = math.tanh %713 : vector<8x128xf32>
    %715 = vector.extract_strided_slice %700 {offsets = [0, 384], sizes = [8, 128], strides = [1, 1]} : vector<8x512xf32> to vector<8x128xf32>
    %716 = arith.negf %715 : vector<8x128xf32>
    %717 = math.exp %716 : vector<8x128xf32>
    %cst_180 = arith.constant 1.000000e+00 : f32
    %718 = vector.broadcast %cst_180 : f32 to vector<8x128xf32>
    %719 = arith.addf %718, %717 : vector<8x128xf32>
    %720 = arith.divf %718, %719 : vector<8x128xf32>
    %721 = arith.mulf %712, %695 : vector<8x128xf32>
    %722 = arith.mulf %706, %714 : vector<8x128xf32>
    %723 = arith.addf %721, %722 : vector<8x128xf32>
    %724 = math.tanh %723 : vector<8x128xf32>
    %725 = arith.mulf %720, %724 : vector<8x128xf32>
    %c0_181 = arith.constant 0 : index
    %c0_182 = arith.constant 0 : index
    %726 = vector.load %arg14[%c0_181, %c0_182] : memref<128x256xbf16, #tpu.memory_space<vmem>>, vector<128x256xbf16>
    %727 = arith.truncf %725 : vector<8x128xf32> to vector<8x128xbf16>
    %cst_183 = arith.constant dense<0.000000e+00> : vector<8x256xf32>
    %728 = tpu.matmul %727, %726, %cst_183 {dimension_numbers = #tpu.dot_dimension_numbers<[1], [0], [0], [1], [0, 0, 1, 1], [], []>} : vector<8x128xbf16>, vector<128x256xbf16>, vector<8x256xf32> -> vector<8x256xf32>
    %c0_184 = arith.constant 0 : index
    %c0_185 = arith.constant 0 : index
    %729 = vector.load %arg15[%c0_184, %c0_185] : memref<1x256xf32, #tpu.memory_space<vmem>>, vector<1x256xf32>
    %730 = vector.broadcast %729 : vector<1x256xf32> to vector<8x256xf32>
    %731 = arith.addf %728, %730 : vector<8x256xf32>
    %cst_186 = arith.constant 0.000000e+00 : f32
    %732 = vector.broadcast %cst_186 : f32 to vector<8x256xf32>
    %733 = arith.maximumf %731, %732 : vector<8x256xf32>
    %c0_187 = arith.constant 0 : index
    %c0_188 = arith.constant 0 : index
    %734 = vector.load %arg16[%c0_187, %c0_188] : memref<256x256xbf16, #tpu.memory_space<vmem>>, vector<256x256xbf16>
    %735 = arith.truncf %733 : vector<8x256xf32> to vector<8x256xbf16>
    %cst_189 = arith.constant dense<0.000000e+00> : vector<8x256xf32>
    %736 = tpu.matmul %735, %734, %cst_189 {dimension_numbers = #tpu.dot_dimension_numbers<[1], [0], [0], [1], [0, 0, 1, 1], [], []>} : vector<8x256xbf16>, vector<256x256xbf16>, vector<8x256xf32> -> vector<8x256xf32>
    %c0_190 = arith.constant 0 : index
    %c0_191 = arith.constant 0 : index
    %737 = vector.load %arg17[%c0_190, %c0_191] : memref<1x256xf32, #tpu.memory_space<vmem>>, vector<1x256xf32>
    %738 = vector.broadcast %737 : vector<1x256xf32> to vector<8x256xf32>
    %739 = arith.addf %736, %738 : vector<8x256xf32>
    %cst_192 = arith.constant 0.000000e+00 : f32
    %740 = vector.broadcast %cst_192 : f32 to vector<8x256xf32>
    %741 = arith.maximumf %739, %740 : vector<8x256xf32>
    %c0_193 = arith.constant 0 : index
    %c0_194 = arith.constant 0 : index
    %742 = vector.load %arg18[%c0_193, %c0_194] : memref<256x128xbf16, #tpu.memory_space<vmem>>, vector<256x128xbf16>
    %743 = arith.truncf %741 : vector<8x256xf32> to vector<8x256xbf16>
    %cst_195 = arith.constant dense<0.000000e+00> : vector<8x128xf32>
    %744 = tpu.matmul %743, %742, %cst_195 {dimension_numbers = #tpu.dot_dimension_numbers<[1], [0], [0], [1], [0, 0, 1, 1], [], []>} : vector<8x256xbf16>, vector<256x128xbf16>, vector<8x128xf32> -> vector<8x128xf32>
    %c0_196 = arith.constant 0 : index
    %c0_197 = arith.constant 0 : index
    %745 = vector.load %arg19[%c0_196, %c0_197] : memref<1x128xf32, #tpu.memory_space<vmem>>, vector<1x128xf32>
    %746 = vector.broadcast %745 : vector<1x128xf32> to vector<8x128xf32>
    %747 = arith.addf %744, %746 : vector<8x128xf32>
    %748 = arith.negf %747 : vector<8x128xf32>
    %749 = math.exp %748 : vector<8x128xf32>
    %cst_198 = arith.constant 1.000000e+00 : f32
    %750 = vector.broadcast %cst_198 : f32 to vector<8x128xf32>
    %751 = arith.addf %750, %749 : vector<8x128xf32>
    %752 = arith.divf %750, %751 : vector<8x128xf32>
    %c0_199 = arith.constant 0 : index
    %c0_200 = arith.constant 0 : index
    %753 = vector.load %arg20[%c0_199, %c0_200] : memref<8x128xf32, #tpu.memory_space<vmem>>, vector<8x128xf32>
    tpu.vector_store %arg20[%c0_199, %c0_200], %752 {strides = array<i32>} : memref<8x128xf32, #tpu.memory_space<vmem>>, vector<8x128xf32>,
    return
  }
  func.func @transform_0(%arg0: i32) -> (i32, i32) {
    %c0_i32 = arith.constant 0 : i32
    %c0_i32_0 = arith.constant 0 : i32
    return %arg0, %c0_i32 : i32, i32
  }
  func.func @transform_1(%arg0: i32) -> (i32, i32) {
    %c0_i32 = arith.constant 0 : i32
    %c0_i32_0 = arith.constant 0 : i32
    %c0_i32_1 = arith.constant 0 : i32
    return %c0_i32, %c0_i32_0 : i32, i32
  }
  func.func @transform_2(%arg0: i32) -> (i32, i32) {
    %c0_i32 = arith.constant 0 : i32
    %c0_i32_0 = arith.constant 0 : i32
    %c0_i32_1 = arith.constant 0 : i32
    return %c0_i32, %c0_i32_0 : i32, i32
  }
  func.func @transform_3(%arg0: i32) -> (i32, i32) {
    %c0_i32 = arith.constant 0 : i32
    %c0_i32_0 = arith.constant 0 : i32
    %c0_i32_1 = arith.constant 0 : i32
    return %c0_i32, %c0_i32_0 : i32, i32
  }
  func.func @transform_4(%arg0: i32) -> (i32, i32) {
    %c0_i32 = arith.constant 0 : i32
    %c0_i32_0 = arith.constant 0 : i32
    %c0_i32_1 = arith.constant 0 : i32
    return %c0_i32, %c0_i32_0 : i32, i32
  }
  func.func @transform_5(%arg0: i32) -> (i32, i32) {
    %c0_i32 = arith.constant 0 : i32
    %c0_i32_0 = arith.constant 0 : i32
    %c0_i32_1 = arith.constant 0 : i32
    return %c0_i32, %c0_i32_0 : i32, i32
  }
  func.func @transform_6(%arg0: i32) -> (i32, i32) {
    %c0_i32 = arith.constant 0 : i32
    %c0_i32_0 = arith.constant 0 : i32
    %c0_i32_1 = arith.constant 0 : i32
    return %c0_i32, %c0_i32_0 : i32, i32
  }
  func.func @transform_7(%arg0: i32) -> (i32, i32) {
    %c0_i32 = arith.constant 0 : i32
    %c0_i32_0 = arith.constant 0 : i32
    %c0_i32_1 = arith.constant 0 : i32
    return %c0_i32, %c0_i32_0 : i32, i32
  }
  func.func @transform_8(%arg0: i32) -> (i32, i32) {
    %c0_i32 = arith.constant 0 : i32
    %c0_i32_0 = arith.constant 0 : i32
    %c0_i32_1 = arith.constant 0 : i32
    return %c0_i32, %c0_i32_0 : i32, i32
  }
  func.func @transform_9(%arg0: i32) -> (i32, i32) {
    %c0_i32 = arith.constant 0 : i32
    %c0_i32_0 = arith.constant 0 : i32
    %c0_i32_1 = arith.constant 0 : i32
    return %c0_i32, %c0_i32_0 : i32, i32
  }
  func.func @transform_10(%arg0: i32) -> (i32, i32) {
    %c0_i32 = arith.constant 0 : i32
    %c0_i32_0 = arith.constant 0 : i32
    %c0_i32_1 = arith.constant 0 : i32
    return %c0_i32, %c0_i32_0 : i32, i32
  }
  func.func @transform_11(%arg0: i32) -> (i32, i32) {
    %c0_i32 = arith.constant 0 : i32
    %c0_i32_0 = arith.constant 0 : i32
    %c0_i32_1 = arith.constant 0 : i32
    return %c0_i32, %c0_i32_0 : i32, i32
  }
  func.func @transform_12(%arg0: i32) -> (i32, i32) {
    %c0_i32 = arith.constant 0 : i32
    %c0_i32_0 = arith.constant 0 : i32
    %c0_i32_1 = arith.constant 0 : i32
    return %c0_i32, %c0_i32_0 : i32, i32
  }
  func.func @transform_13(%arg0: i32) -> (i32, i32) {
    %c0_i32 = arith.constant 0 : i32
    %c0_i32_0 = arith.constant 0 : i32
    %c0_i32_1 = arith.constant 0 : i32
    return %c0_i32, %c0_i32_0 : i32, i32
  }
  func.func @transform_14(%arg0: i32) -> (i32, i32) {
    %c0_i32 = arith.constant 0 : i32
    %c0_i32_0 = arith.constant 0 : i32
    %c0_i32_1 = arith.constant 0 : i32
    return %c0_i32, %c0_i32_0 : i32, i32
  }
  func.func @transform_15(%arg0: i32) -> (i32, i32) {
    %c0_i32 = arith.constant 0 : i32
    %c0_i32_0 = arith.constant 0 : i32
    %c0_i32_1 = arith.constant 0 : i32
    return %c0_i32, %c0_i32_0 : i32, i32
  }
  func.func @transform_16(%arg0: i32) -> (i32, i32) {
    %c0_i32 = arith.constant 0 : i32
    %c0_i32_0 = arith.constant 0 : i32
    %c0_i32_1 = arith.constant 0 : i32
    return %c0_i32, %c0_i32_0 : i32, i32
  }
  func.func @transform_17(%arg0: i32) -> (i32, i32) {
    %c0_i32 = arith.constant 0 : i32
    %c0_i32_0 = arith.constant 0 : i32
    %c0_i32_1 = arith.constant 0 : i32
    return %c0_i32, %c0_i32_0 : i32, i32
  }
  func.func @transform_18(%arg0: i32) -> (i32, i32) {
    %c0_i32 = arith.constant 0 : i32
    %c0_i32_0 = arith.constant 0 : i32
    %c0_i32_1 = arith.constant 0 : i32
    return %c0_i32, %c0_i32_0 : i32, i32
  }
  func.func @transform_19(%arg0: i32) -> (i32, i32) {
    %c0_i32 = arith.constant 0 : i32
    %c0_i32_0 = arith.constant 0 : i32
    return %arg0, %c0_i32 : i32, i32
  }
}

</mosaic_0001>

<bundles_post_ra>
// kernel: tpu_custom_call.1
= control target key start
LH: loop header
LB: loop body
LE: loop exit
PB: predicated region body
PF: predicated region fallthrough
CT: control target
= control target key end

     0   :  { %s7671_s0 = inlined_call_operand.vmem [shape: f32[8,112], index: 0, kind: input, shape index: {}]   ;;  %s7672_s1 = inlined_call_operand.hbm [shape: bf16[112,128], index: 1, kind: input, shape index: {}]   ;;  %s7673_s2 = inlined_call_operand.hbm [shape: f32[1,128], index: 2, kind: input, shape index: {}]   ;;  %s7674_s3 = inlined_call_operand.hbm [shape: bf16[112,128], index: 3, kind: input, shape index: {}]   ;;  %s7675_s4 = inlined_call_operand.hbm [shape: f32[1,128], index: 4, kind: input, shape index: {}]   ;;  %s7676_s5 = inlined_call_operand.vmem [shape: bf16[256,128], index: 5, kind: input, shape index: {}]   ;;  %s7677_s6 = inlined_call_operand.hbm [shape: f32[1,128], index: 6, kind: input, shape index: {}]   ;;  %s7678_s7 = inlined_call_operand.hbm [shape: bf16[256,512], index: 7, kind: input, shape index: {}]   ;;  %s7679_s8 = inlined_call_operand.vmem [shape: f32[1,512], index: 8, kind: input, shape index: {}]   ;;  %s7680_s9 = inlined_call_operand.vmem [shape: f32[1,128], index: 9, kind: input, shape index: {}]   ;;  %s7681_s10 = inlined_call_operand.vmem [shape: f32[1,128], index: 10, kind: input, shape index: {}]   ;;  %s7682_s11 = inlined_call_operand.vmem [shape: bf16[128,112], index: 11, kind: input, shape index: {}]   ;;  %s7683_s12 = inlined_call_operand.vmem [shape: f32[1,112], index: 12, kind: input, shape index: {}]   ;;  %s7684_s13 = inlined_call_operand.hbm [shape: bf16[128,256], index: 13, kind: input, shape index: {}]   ;;  %s7685_s14 = inlined_call_operand.vmem [shape: f32[1,256], index: 14, kind: input, shape index: {}]   ;;  %s7686_s15 = inlined_call_operand.hbm [shape: bf16[256,256], index: 15, kind: input, shape index: {}]   ;;  %s7687_s16 = inlined_call_operand.vmem [shape: f32[1,256], index: 16, kind: input, shape index: {}]   ;;  %s7688_s17 = inlined_call_operand.hbm [shape: bf16[256,128], index: 17, kind: input, shape index: {}]   ;;  %s7689_s18 = inlined_call_operand.vmem [shape: f32[1,128], index: 18, kind: input, shape index: {}]   ;;  %s7690_s19 = inlined_call_operand.hbm [shape: f32[8,128], index: 19, kind: output, shape index: {}]  }
   0x1   :  { %7967 = sst [smem:[#allocation87_spill]] %s7671_s0 }
   0x2   :  { %7968 = sst [smem:[#allocation88_spill]] %s7672_s1 }
   0x3   :  { %7969 = sst [smem:[#allocation89_spill]] %s7673_s2 }
   0x4   :  { %7970 = sst [smem:[#allocation90_spill]] %s7674_s3 }
   0x5   :  { %24 = vsyncpa [#allocation3], 0 }
   0x6   :  { %25 = vsyncpa [#allocation6], 0 }
   0x7   :  { %26 = vsyncpa [#allocation9], 0 }
   0x8   :  { %27 = vsyncpa [#allocation12], 0 }
   0x9   :  { %28 = vsyncpa [#allocation15], 0 }
   0xa   :  { %29 = vsyncpa [#allocation4], 0  ;;  %s5493_s0 = smov [#allocation5]   ;;  %s5494_s20 = smov [#allocation8]  }
   0xb   :  { %s50_s30 = sshll.u32 %s5493_s0, 4  ;;  %s72_s21 = sshll.u32 %s5494_s20, 4  ;;  %s51_s30 = int_to_ptr.vmem [resolvable:$true] %s50_s30  ;;  %s73_s21 = int_to_ptr.vmem [resolvable:$true] %s72_s21 }
   0xc   :  { %s7971_s2 = sld [smem:[#allocation89_spill]] }
  0x12   :  { %s5261_s23 = scalar_lea.hbm %s7971_s2, 16 }
  0x13   :  { %p5262_p0 = scmp.ne.s32.totalorder %s7971_s2, %s5261_s23  ;;  %p5265_p1 = scmp.lt.u32.totalorder %s5261_s23, %s7971_s2 }
  0x15   :  { %p5267_p2 = pnand %p5265_p1, %p5262_p0 }
  0x17   :  { %5270 = shalt.err (!%p5267_p2)
}
  0x18   :  { %s5271_s27 = scalar_lea.vmem %s51_s30, 16  ;;  %s5275_s28 = scalar_lea.vmem %s51_s30, 32 }
  0x19   :  { %p5272_p3 = scmp.ne.s32.totalorder %s51_s30, %s5271_s27  ;;  %p5276_p4 = scmp.lt.s32.totalorder %s51_s30, %s51_s30 }
  0x1a   :  { %p5277_p5 = scmp.lt.s32.totalorder %s5275_s28, %s5271_s27 }
  0x1c   :  { %p5278_p6 = por %p5277_p5, %p5276_p4 }
  0x1e   :  { %p5279_p7 = pnand %p5278_p6, %p5272_p3 }
  0x20   :  { %5282 = shalt.err (!%p5279_p7)
}
  0x21   :  { %53 = dma.hbm_to_vmem [thread:$0]  %s7971_s2, 16, %s51_s30, [#allocation6]  }
  0x22   :  { %s5283_s22 = scalar_lea.hbm %s7675_s4, 16 }
  0x23   :  { %p5284_p8 = scmp.ne.s32.totalorder %s7675_s4, %s5283_s22  ;;  %p5287_p9 = scmp.lt.u32.totalorder %s5283_s22, %s7675_s4 }
  0x25   :  { %p5289_p10 = pnand %p5287_p9, %p5284_p8 }
  0x27   :  { %5292 = shalt.err (!%p5289_p10)
}
  0x28   :  { %s5293_s26 = scalar_lea.vmem %s73_s21, 16  ;;  %s5297_s27 = scalar_lea.vmem %s73_s21, 32 }
  0x29   :  { %p5294_p11 = scmp.ne.s32.totalorder %s73_s21, %s5293_s26  ;;  %p5298_p12 = scmp.lt.s32.totalorder %s73_s21, %s73_s21 }
  0x2a   :  { %p5299_p13 = scmp.lt.s32.totalorder %s5297_s27, %s5293_s26 }
  0x2c   :  { %p5300_p0 = por %p5299_p13, %p5298_p12 }
  0x2e   :  { %p5301_p1 = pnand %p5300_p0, %p5294_p11 }
  0x30   :  { %5304 = shalt.err (!%p5301_p1)
}
  0x31   :  { %75 = dma.hbm_to_vmem [thread:$0]  %s7675_s4, 16, %s73_s21, [#allocation9]  }
  0x32   :  { %s5495_s28 = smov [#allocation11]   ;;  %s5305_s1 = scalar_lea.hbm %s7678_s7, 8192 }
  0x33   :  { %s93_s29 = sshll.u32 %s5495_s28, 4  ;;  %p5306_p2 = scmp.ne.s32.totalorder %s7678_s7, %s5305_s1  ;;  %s94_s29 = int_to_ptr.vmem [resolvable:$true] %s93_s29 }
  0x34   :  { %p5309_p3 = scmp.lt.u32.totalorder %s5305_s1, %s7678_s7 }
  0x36   :  { %p5311_p4 = pnand %p5309_p3, %p5306_p2 }
  0x38   :  { %5314 = shalt.err (!%p5311_p4)
}
  0x39   :  { %s5315_s3 = scalar_lea.vmem %s94_s29, 8192  ;;  %p5320_p6 = scmp.lt.s32.totalorder %s94_s29, %s94_s29 }
  0x3a   :  { %p5316_p5 = scmp.ne.s32.totalorder %s94_s29, %s5315_s3  ;;  %p5321_p7 = scmp.lt.s32.totalorder %s5315_s3, %s5315_s3 }
  0x3c   :  { %p5322_p8 = por %p5321_p7, %p5320_p6 }
  0x3e   :  { %p5323_p9 = pnand %p5322_p8, %p5316_p5 }
  0x40   :  { %5326 = shalt.err (!%p5323_p9)
}
  0x41   :  { %s5496_s4 = smov 256   ;;  %s5497_s21 = smov 16  }
  0x42   :  { %99 = dma.hbm_to_vmem [thread:$0]  %s7678_s7, 8192, %s94_s29, [#allocation12], %s5496_s4, %s5496_s4, %s5497_s21  }
  0x43   :  { %s5498_s30 = smov [#allocation14]   ;;  %s5499_s28 = smov [#allocation2]  }
  0x44   :  { %s129_s2 = sshll.u32 %s5498_s30, 4  ;;  %s37_s0 = sshll.u32 %s5499_s28, 4  ;;  %s130_s2 = int_to_ptr.vmem [resolvable:$true] %s129_s2  ;;  %s38_s0 = int_to_ptr.vmem [resolvable:$true] %s37_s0 }
  0x45   :  { %s5327_s22 = scalar_lea.hbm %s7686_s15, 4096 }
  0x46   :  { %p5328_p10 = scmp.ne.s32.totalorder %s7686_s15, %s5327_s22  ;;  %p5331_p11 = scmp.lt.u32.totalorder %s5327_s22, %s7686_s15 }
  0x48   :  { %p5333_p12 = pnand %p5331_p11, %p5328_p10 }
  0x4a   :  { %5336 = shalt.err (!%p5333_p12)
}
  0x4b   :  { %s5337_s7 = scalar_lea.vmem %s130_s2, 4096  ;;  %p5342_p0 = scmp.lt.s32.totalorder %s130_s2, %s130_s2 }
  0x4c   :  { %p5338_p13 = scmp.ne.s32.totalorder %s130_s2, %s5337_s7  ;;  %p5343_p1 = scmp.lt.s32.totalorder %s5337_s7, %s5337_s7 }
  0x4e   :  { %p5344_p2 = por %p5343_p1, %p5342_p0 }
  0x50   :  { %p5345_p3 = pnand %p5344_p2, %p5338_p13 }
  0x52   :  { %5348 = shalt.err (!%p5345_p3)
}
  0x53   :  { %s7695_s29 = smov 128   ;;  %s7696_s4 = smov 8  }
  0x54   :  { %135 = dma.hbm_to_vmem [thread:$0]  %s7686_s15, 4096, %s130_s2, [#allocation15], %s7695_s29, %s7695_s29, %s7696_s4  }
  0x55   :  { %s7972_s28 = sld [smem:[#allocation88_spill]] }
  0x5b   :  { %s5349_s20 = scalar_lea.hbm %s7972_s28, 896 }
  0x5c   :  { %p5350_p4 = scmp.ne.s32.totalorder %s7972_s28, %s5349_s20  ;;  %p5353_p5 = scmp.lt.u32.totalorder %s5349_s20, %s7972_s28 }
  0x5e   :  { %p5355_p6 = pnand %p5353_p5, %p5350_p4 }
  0x60   :  { %5358 = shalt.err (!%p5355_p6)
}
  0x61   :  { %s5359_s25 = scalar_lea.vmem %s38_s0, 896  ;;  %p5364_p8 = scmp.lt.s32.totalorder %s38_s0, %s38_s0 }
  0x62   :  { %p5360_p7 = scmp.ne.s32.totalorder %s38_s0, %s5359_s25  ;;  %p5365_p9 = scmp.lt.s32.totalorder %s5359_s25, %s5359_s25 }
  0x64   :  { %p5366_p10 = por %p5365_p9, %p5364_p8 }
  0x66   :  { %p5367_p11 = pnand %p5366_p10, %p5360_p7 }
  0x68   :  { %5370 = shalt.err (!%p5367_p11)
}
  0x69   :  { %s5502_s15 = smov 64   ;;  %s5503_s2 = smov 4  }
  0x6a   :  { %43 = dma.hbm_to_vmem [thread:$0]  %s7972_s28, 896, %s38_s0, [#allocation3], %s5502_s15, %s5502_s15, %s5503_s2  }
  0x6b   :  { %s5504_s21 = smov [#allocation7]   ;;  %s5505_s27 = smov [#allocation10]  }
  0x6c   :  { %s59_s26 = sshll.u32 %s5504_s21, 4  ;;  %s84_s30 = sshll.u32 %s5505_s27, 4  ;;  %s60_s26 = int_to_ptr.vmem [resolvable:$true] %s59_s26  ;;  %s85_s30 = int_to_ptr.vmem [resolvable:$true] %s84_s30 }
  0x6d   :  { %s7973_s22 = sld [smem:[#allocation90_spill]] }
  0x73   :  { %s5371_s24 = scalar_lea.hbm %s7973_s22, 896 }
  0x74   :  { %p5372_p12 = scmp.ne.s32.totalorder %s7973_s22, %s5371_s24  ;;  %p5375_p13 = scmp.lt.u32.totalorder %s5371_s24, %s7973_s22 }
  0x76   :  { %p5377_p0 = pnand %p5375_p13, %p5372_p12 }
  0x78   :  { %5380 = shalt.err (!%p5377_p0)
}
  0x79   :  { %s5381_s0 = scalar_lea.vmem %s60_s26, 896  ;;  %p5386_p2 = scmp.lt.s32.totalorder %s60_s26, %s60_s26 }
  0x7a   :  { %p5382_p1 = scmp.ne.s32.totalorder %s60_s26, %s5381_s0  ;;  %p5387_p3 = scmp.lt.s32.totalorder %s5381_s0, %s5381_s0 }
  0x7c   :  { %p5388_p4 = por %p5387_p3, %p5386_p2 }
  0x7e   :  { %p5389_p5 = pnand %p5388_p4, %p5382_p1 }
  0x80   :  { %5392 = shalt.err (!%p5389_p5)
}
  0x81   :  { %65 = dma.hbm_to_vmem [thread:$0]  %s7973_s22, 896, %s60_s26, [#allocation6], %s5502_s15, %s5502_s15, %s5503_s2  }
  0x82   :  { %s5393_s4 = scalar_lea.hbm %s7677_s6, 16 }
  0x83   :  { %p5394_p6 = scmp.ne.s32.totalorder %s7677_s6, %s5393_s4  ;;  %p5397_p7 = scmp.lt.u32.totalorder %s5393_s4, %s7677_s6 }
  0x85   :  { %p5399_p8 = pnand %p5397_p7, %p5394_p6 }
  0x87   :  { %5402 = shalt.err (!%p5399_p8)
}
  0x88   :  { %s5403_s24 = scalar_lea.vmem %s85_s30, 16  ;;  %s5407_s23 = scalar_lea.vmem %s85_s30, 32 }
  0x89   :  { %p5404_p9 = scmp.ne.s32.totalorder %s85_s30, %s5403_s24  ;;  %p5408_p10 = scmp.lt.s32.totalorder %s85_s30, %s85_s30 }
  0x8a   :  { %p5409_p11 = scmp.lt.s32.totalorder %s5407_s23, %s5403_s24 }
  0x8c   :  { %p5410_p12 = por %p5409_p11, %p5408_p10 }
  0x8e   :  { %p5411_p13 = pnand %p5410_p12, %p5404_p9 }
  0x90   :  { %5414 = shalt.err (!%p5411_p13)
}
  0x91   :  { %87 = dma.hbm_to_vmem [thread:$0]  %s7677_s6, 16, %s85_s30, [#allocation9]  }
  0x92   :  { %s5506_s25 = smov [#allocation13]   ;;  %s5507_s28 = smov [#allocation16]  }
  0x93   :  { %s115_s0 = sshll.u32 %s5506_s25, 4  ;;  %s143_s3 = sshll.u32 %s5507_s28, 4  ;;  %s116_s0 = int_to_ptr.vmem [resolvable:$true] %s115_s0  ;;  %s144_s3 = int_to_ptr.vmem [resolvable:$true] %s143_s3 }
  0x94   :  { %s5415_s4 = scalar_lea.hbm %s7684_s13, 2048 }
  0x95   :  { %p5416_p0 = scmp.ne.s32.totalorder %s7684_s13, %s5415_s4  ;;  %p5419_p1 = scmp.lt.u32.totalorder %s5415_s4, %s7684_s13 }
  0x97   :  { %p5421_p2 = pnand %p5419_p1, %p5416_p0 }
  0x99   :  { %5424 = shalt.err (!%p5421_p2)
}
  0x9a   :  { %s5425_s6 = scalar_lea.vmem %s116_s0, 2048  ;;  %p5430_p4 = scmp.lt.s32.totalorder %s116_s0, %s116_s0 }
  0x9b   :  { %p5426_p3 = scmp.ne.s32.totalorder %s116_s0, %s5425_s6  ;;  %p5431_p5 = scmp.lt.s32.totalorder %s5425_s6, %s5425_s6 }
  0x9d   :  { %p5432_p6 = por %p5431_p5, %p5430_p4 }
  0x9f   :  { %p5433_p7 = pnand %p5432_p6, %p5426_p3 }
  0xa1   :  { %5436 = shalt.err (!%p5433_p7)
}
  0xa2   :  { %s7974_s30 = smov 8   ;;  %s7975_s24 = smov 128  }
  0xa3   :  { %121 = dma.hbm_to_vmem [thread:$0]  %s7684_s13, 2048, %s116_s0, [#allocation12], %s7975_s24, %s7975_s24, %s7974_s30  }
  0xa4   :  { %s5437_s28 = scalar_lea.hbm %s7688_s17, 2048 }
  0xa5   :  { %p5438_p8 = scmp.ne.s32.totalorder %s7688_s17, %s5437_s28  ;;  %p5441_p9 = scmp.lt.u32.totalorder %s5437_s28, %s7688_s17 }
  0xa7   :  { %p5443_p10 = pnand %p5441_p9, %p5438_p8 }
  0xa9   :  { %5446 = shalt.err (!%p5443_p10)
}
  0xaa   :  { %s5447_s27 = scalar_lea.vmem %s144_s3, 2048  ;;  %p5452_p12 = scmp.lt.s32.totalorder %s144_s3, %s144_s3 }
  0xab   :  { %p5448_p11 = scmp.ne.s32.totalorder %s144_s3, %s5447_s27  ;;  %p5453_p13 = scmp.lt.s32.totalorder %s5447_s27, %s5447_s27 }
  0xad   :  { %p5454_p0 = por %p5453_p13, %p5452_p12 }
  0xaf   :  { %p5455_p1 = pnand %p5454_p0, %p5448_p11 }
  0xb1   :  { %5458 = shalt.err (!%p5455_p1)
}
  0xb2   :  { %149 = dma.hbm_to_vmem [thread:$0]  %s7688_s17, 2048, %s144_s3, [#allocation15], %s5502_s15, %s5502_s15, %s5503_s2  }
  0xb3   :  { %5481 = dma.done.wait [#allocation3], 896  }
  0xb4   :  { %5482 = vsyncadd [#allocation3], 4294966400 }
  0xb5   :  { %5483 = dma.done.wait [#allocation6], 912  }
  0xb6   :  { %5484 = vsyncadd [#allocation6], 4294966384 }
  0xb7   :  { %5485 = dma.done.wait [#allocation9], 32  }
  0xb8   :  { %5486 = vsyncadd [#allocation9], 4294967264 }
  0xb9   :  { %5487 = dma.done.wait [#allocation12], 10240  }
  0xba   :  { %5488 = vsyncadd [#allocation12], 4294957056 }
  0xbb   :  { %5489 = dma.done.wait [#allocation15], 6144  }
  0xbc   :  { %5490 = vsyncadd [#allocation15], 4294961152  ;;  %v7698_v0 = vmov 0.0   ;;  %vm5509_vm0 = vmmov 0   ;;  %v5739_v1 = vld [vmem:[#allocation2] sm:$0xff]   ;;  %v5742_v2 = vld [vmem:[#allocation2 + $0x8] sm:$0xff]  }
  0xbd   :  { %4262 = vmatprep.subr.bf16.mxu1 %v7698_v0  ;;  %4276 = vmatprep.mubr.msk.bf16.mxu1 %vm5509_vm0, %v7698_v0  ;;  %v5746_v3 = vld [vmem:[#allocation2 + $0x10] sm:$0xff]   ;;  %v5750_v4 = vld [vmem:[#allocation2 + $0x18] sm:$0xff]   ;;  %v5754_v5 = vld [vmem:[#allocation2 + $0x20] sm:$0xff]   ;;  %v7697_v10 = vmov 0   ;;  %s7976_s2 = sld [smem:[#allocation87_spill]]  ;;  %vm377_vm1 = vcmask 916480  }
  0xbe   :  { %4263 = vmatpush3.bf16.msra.mxu1 %v5739_v1  ;;  %v5757_v6 = vld [vmem:[#allocation2 + $0x28] sm:$0xff]   ;;  %v5761_v7 = vld [vmem:[#allocation2 + $0x30] sm:$0xff]   ;;  %v5765_v8 = vld [vmem:[#allocation7] sm:$0xff]  }
  0xbf   :  { %4264 = vmatprep.subr.bf16.mxu1 %v7698_v0  ;;  %v5769_v9 = vld [vmem:[#allocation7 + $0x8] sm:$0xff]   ;;  %v5776_v11 = vld [vmem:[#allocation7 + $0x10] sm:$0xff]   ;;  %v5780_v12 = vld [vmem:[#allocation7 + $0x18] sm:$0xff]  }
  0xc0   :  { %v5784_v13 = vld [vmem:[#allocation7 + $0x20] sm:$0xff]   ;;  %v5793_v15 = vld [vmem:[#allocation7 + $0x28] sm:$0xff]   ;;  %v5798_v17 = vld [vmem:[#allocation7 + $0x30] sm:$0xff]  }
  0xc1   :  { %v5807_v19 = vld [vmem:[%s7676_s5 + $0x40] sm:$0xff]   ;;  %v5819_v21 = vld [vmem:[%s7676_s5 + $0x48] sm:$0xff]   ;;  %v5829_v23 = vld [vmem:[%s7676_s5 + $0x50] sm:$0xff]  }
  0xc2   :  { %4265 = vmatpush3.bf16.msra.mxu1 %v5742_v2  ;;  %7977 = vst [vmem:[#allocation24_spill] sm:$0xff] %v5807_v19  ;;  %v5812_v20 = vld [vmem:[%s7676_s5] sm:$0xff]   ;;  %3936 = vmatprep.subr.bf16.mxu0 %v5807_v19  ;;  %v5824_v22 = vld [vmem:[%s7676_s5 + $0x8] sm:$0xff]   ;;  %v5836_v24 = vld [vmem:[%s7676_s5 + $0x10] sm:$0xff]  }
  0xc3   :  { %4266 = vmatprep.subr.bf16.mxu1 %v7698_v0  ;;  %v5789_v14 = vld [vmem:[%s7976_s2] sm:$0xff]  ;;  %3937 = vmatpush3.bf16.msra.mxu0 %v5812_v20  ;;  %v5842_v25 = vld [vmem:[%s7676_s5 + $0x58] sm:$0xff]   ;;  %v5866_v29 = vld [vmem:[%s7676_s5 + $0x68] sm:$0xff]  }
  0xc4   :  { %v328_v16 = vmul.f32 0.0, %v5789_v14  ;;  %3938 = vmatprep.subr.bf16.mxu0 %v5819_v21  ;;  %v5848_v26 = vld [vmem:[%s7676_s5 + $0x18] sm:$0xff]   ;;  %v5854_v27 = vld [vmem:[%s7676_s5 + $0x60] sm:$0xff]   ;;  %v5872_v30 = vld [vmem:[%s7676_s5 + $0x28] sm:$0xff]  }
  0xc5   :  { %v5860_v28 = vld [vmem:[%s7676_s5 + $0x20] sm:$0xff]   ;;  %v5879_v31 = vld [vmem:[%s7676_s5 + $0x70] sm:$0xff]   ;;  %v5891_v33 = vld [vmem:[%s7676_s5 + $0x78] sm:$0xff]  }
  0xc6   :  { %4267 = vmatpush3.bf16.msra.mxu1 %v5746_v3  ;;  %v422_v18 = vpack.c.bf16 %v328_v16, %v328_v16  ;;  %v5884_v32 = vld [vmem:[%s7676_s5 + $0x30] sm:$0xff]   ;;  %v5896_v34 = vld [vmem:[%s7676_s5 + $0x38] sm:$0xff]  }
  0xc7   :  { %4268 = vmatprep.subr.bf16.mxu1 %v7698_v0  ;;  %3939 = vmatpush3.bf16.msra.mxu0 %v5824_v22  ;;  %v5900_v35 = vld [vmem:[#allocation11 + $0x4] ss:$16 sps:$4 sm:$0xff]   ;;  %v5902_v36 = vld [vmem:[#allocation11 + $0xc] ss:$16 sps:$4 sm:$0xff]   ;;  %v5904_v37 = vld [vmem:[#allocation11] ss:$16 sps:$4 sm:$0xff]  }
  0xc8   :  { %3940 = vmatprep.subr.bf16.mxu0 %v5829_v23  ;;  %v5906_v38 = vld [vmem:[#allocation11 + $0x24] ss:$16 sps:$4 sm:$0xff]   ;;  %v5911_v39 = vld [vmem:[#allocation11 + $0x20] ss:$16 sps:$4 sm:$0xff]  }
  0xc9   :  { %v5914_v40 = vld [vmem:[#allocation11 + $0x44] ss:$16 sps:$4 sm:$0xff]   ;;  %v5917_v41 = vld [vmem:[#allocation11 + $0x40] ss:$16 sps:$4 sm:$0xff]  }
  0xca   :  { %4269 = vmatpush3.bf16.msra.mxu1 %v5750_v4  ;;  %v5920_v42 = vld [vmem:[#allocation11 + $0x64] ss:$16 sps:$4 sm:$0xff]   ;;  %v5923_v43 = vld [vmem:[#allocation11 + $0x60] ss:$16 sps:$4 sm:$0xff]  }
  0xcb   :  { %4270 = vmatprep.subr.bf16.mxu1 %v7698_v0  ;;  %3941 = vmatpush3.bf16.msra.mxu0 %v5836_v24  ;;  %v5926_v44 = vld [vmem:[#allocation11 + $0x84] ss:$16 sps:$4 sm:$0xff]   ;;  %v5929_v45 = vld [vmem:[#allocation11 + $0x80] ss:$16 sps:$4 sm:$0xff]  }
  0xcc   :  { %3942 = vmatprep.subr.bf16.mxu0 %v5842_v25  ;;  %v5932_v46 = vld [vmem:[#allocation11 + $0xa4] ss:$16 sps:$4 sm:$0xff]   ;;  %v5935_v47 = vld [vmem:[#allocation11 + $0xa0] ss:$16 sps:$4 sm:$0xff]  }
  0xcd   :  { %v5938_v48 = vld [vmem:[#allocation11 + $0xc4] ss:$16 sps:$4 sm:$0xff]   ;;  %v5941_v49 = vld [vmem:[#allocation11 + $0xc0] ss:$16 sps:$4 sm:$0xff]  }
  0xce   :  { %4271 = vmatpush3.bf16.msra.mxu1 %v5754_v5  ;;  %v5944_v50 = vld [vmem:[#allocation11 + $0xe4] ss:$16 sps:$4 sm:$0xff]   ;;  %v5947_v51 = vld [vmem:[#allocation11 + $0xe0] ss:$16 sps:$4 sm:$0xff]  }
  0xcf   :  { %4272 = vmatprep.subr.bf16.mxu1 %v7698_v0  ;;  %3943 = vmatpush3.bf16.msra.mxu0 %v5848_v26  ;;  %v5950_v52 = vld [vmem:[#allocation11 + $0x104] ss:$16 sps:$4 sm:$0xff]   ;;  %v5953_v53 = vld [vmem:[#allocation11 + $0x100] ss:$16 sps:$4 sm:$0xff]  }
  0xd0   :  { %3944 = vmatprep.subr.bf16.mxu0 %v5854_v27  ;;  %7978 = vst [vmem:[#allocation25_spill] sm:$0xff] %v5950_v52  ;;  %7979 = vst [vmem:[#allocation26_spill] sm:$0xff] %v5953_v53  ;;  %v5956_v54 = vld [vmem:[#allocation11 + $0x124] ss:$16 sps:$4 sm:$0xff]   ;;  %v5959_v55 = vld [vmem:[#allocation11 + $0x120] ss:$16 sps:$4 sm:$0xff]  }
  0xd1   :  { %7980 = vst [vmem:[#allocation27_spill] sm:$0xff] %v5956_v54  ;;  %7981 = vst [vmem:[#allocation28_spill] sm:$0xff] %v5959_v55  ;;  %v5962_v56 = vld [vmem:[#allocation11 + $0x144] ss:$16 sps:$4 sm:$0xff]   ;;  %v5965_v57 = vld [vmem:[#allocation11 + $0x140] ss:$16 sps:$4 sm:$0xff]  }
  0xd2   :  { %4273 = vmatpush3.bf16.msra.mxu1 %v5757_v6  ;;  %7982 = vst [vmem:[#allocation29_spill] sm:$0xff] %v5962_v56  ;;  %7983 = vst [vmem:[#allocation30_spill] sm:$0xff] %v5965_v57  ;;  %v5968_v58 = vld [vmem:[#allocation11 + $0x164] ss:$16 sps:$4 sm:$0xff]   ;;  %v5971_v59 = vld [vmem:[#allocation11 + $0x160] ss:$16 sps:$4 sm:$0xff]  }
  0xd3   :  { %4274 = vmatprep.subr.bf16.mxu1 %v7698_v0  ;;  %3945 = vmatpush3.bf16.msra.mxu0 %v5860_v28  ;;  %7984 = vst [vmem:[#allocation31_spill] sm:$0xff] %v5968_v58  ;;  %7985 = vst [vmem:[#allocation32_spill] sm:$0xff] %v5971_v59  ;;  %v5974_v60 = vld [vmem:[#allocation11 + $0x184] ss:$16 sps:$4 sm:$0xff]   ;;  %v5977_v61 = vld [vmem:[#allocation11 + $0x180] ss:$16 sps:$4 sm:$0xff]  }
  0xd4   :  { %3946 = vmatprep.subr.bf16.mxu0 %v5866_v29  ;;  %7986 = vst [vmem:[#allocation33_spill] sm:$0xff] %v5974_v60  ;;  %7987 = vst [vmem:[#allocation34_spill] sm:$0xff] %v5977_v61  ;;  %v5980_v62 = vld [vmem:[#allocation11 + $0x1a4] ss:$16 sps:$4 sm:$0xff]   ;;  %v5983_v63 = vld [vmem:[#allocation11 + $0x1a0] ss:$16 sps:$4 sm:$0xff]  }
  0xd5   :  { %7988 = vst [vmem:[#allocation35_spill] sm:$0xff] %v5980_v62  ;;  %7989 = vst [vmem:[#allocation36_spill] sm:$0xff] %v5983_v63 }
  0xd6   :  { %4275 = vmatpush3.bf16.msra.mxu1 %v5761_v7 }
  0xd7   :  { %4280 = vmatprep.subr.bf16.mxu1 %v7698_v0  ;;  %3947 = vmatpush3.bf16.msra.mxu0 %v5872_v30 }
  0xd8   :  { %3948 = vmatprep.subr.bf16.mxu0 %v5879_v31 }
  0xd9   :  { %4277 = vmatmul.mubr.bf16.vlgmr.msra.gmra.mrb[0].mxu1 %v7697_v10 }
  0xda   :  { %4281 = vmatpush3.bf16.msra.mxu1 %v5765_v8  ;;  %4294 = vmatprep.mubr.msk.bf16.mxu1 %vm5509_vm0, %v7698_v0 }
  0xdb   :  { %4282 = vmatprep.subr.bf16.mxu1 %v7698_v0  ;;  %3949 = vmatpush3.bf16.msra.mxu0 %v5884_v32 }
  0xdc   :  { %3950 = vmatprep.subr.bf16.mxu0 %v5891_v33 }
  0xde   :  { %4283 = vmatpush3.bf16.msra.mxu1 %v5769_v9 }
  0xdf   :  { %4284 = vmatprep.subr.bf16.mxu1 %v7698_v0  ;;  %3951 = vmatpush3.bf16.msra.mxu0 %v5896_v34 }
  0xe0   :  { %1044 = vmatprep.subr.bf16.mxu0 %v5902_v36 }
  0xe2   :  { %4285 = vmatpush3.bf16.msra.mxu1 %v5776_v11 }
  0xe3   :  { %4286 = vmatprep.subr.bf16.mxu1 %v7698_v0 }
  0xe6   :  { %4287 = vmatpush3.bf16.msra.mxu1 %v5780_v12 }
  0xe7   :  { %4288 = vmatprep.subr.bf16.mxu1 %v7698_v0 }
  0xea   :  { %4289 = vmatpush3.bf16.msra.mxu1 %v5784_v13 }
  0xeb   :  { %4290 = vmatprep.subr.bf16.mxu1 %v7698_v0 }
  0xee   :  { %4291 = vmatpush3.bf16.msra.mxu1 %v5793_v15 }
  0xef   :  { %4292 = vmatprep.subr.bf16.mxu1 %v7698_v0 }
  0xf2   :  { %4293 = vmatpush3.bf16.msra.mxu1 %v5798_v17 }
  0xf3   :  { %1003 = vmatprep.subr.bf16.mxu1 %v5900_v35 }
  0xf5   :  { %4295 = vmatmul.mubr.msk.bf16.vlgmr.msra.gmra.mrb[4].mxu1 %vm377_vm1, %v422_v18 }
  0xf6   :  { %1004 = vmatpush1.bf16.msra.mxu1 %v5904_v37 }
  0xf7   :  { %1005 = vmatprep.subr.bf16.mxu1 %v5906_v38 }
  0xfa   :  { %1006 = vmatpush1.bf16.msra.mxu1 %v5911_v39 }
  0xfb   :  { %1007 = vmatprep.subr.bf16.mxu1 %v5914_v40 }
  0xfe   :  { %1008 = vmatpush1.bf16.msra.mxu1 %v5917_v41 }
  0xff   :  { %1009 = vmatprep.subr.bf16.mxu1 %v5920_v42 }
 0x102   :  { %1010 = vmatpush1.bf16.msra.mxu1 %v5923_v43 }
 0x103   :  { %1011 = vmatprep.subr.bf16.mxu1 %v5926_v44 }
 0x106   :  { %1012 = vmatpush1.bf16.msra.mxu1 %v5929_v45 }
 0x107   :  { %1013 = vmatprep.subr.bf16.mxu1 %v5932_v46 }
 0x10a   :  { %1014 = vmatpush1.bf16.msra.mxu1 %v5935_v47 }
 0x10b   :  { %1015 = vmatprep.subr.bf16.mxu1 %v5938_v48 }
 0x10e   :  { %1016 = vmatpush1.bf16.msra.mxu1 %v5941_v49 }
 0x10f   :  { %1017 = vmatprep.subr.bf16.mxu1 %v5944_v50 }
 0x112   :  { %1018 = vmatpush1.bf16.msra.mxu1 %v5947_v51 }
 0x113   :  { %1019 = vmatprep.subr.bf16.mxu1 %v5950_v52 }
 0x116   :  { %1020 = vmatpush1.bf16.msra.mxu1 %v5953_v53 }
 0x117   :  { %1021 = vmatprep.subr.bf16.mxu1 %v5956_v54 }
 0x11a   :  { %1022 = vmatpush1.bf16.msra.mxu1 %v5959_v55 }
 0x11b   :  { %1023 = vmatprep.subr.bf16.mxu1 %v5962_v56 }
 0x11e   :  { %1024 = vmatpush1.bf16.msra.mxu1 %v5965_v57  ;;  %v5990_v57 = vld [vmem:[#allocation8] ss:$0 sm:$0xff] }
 0x11f   :  { %1025 = vmatprep.subr.bf16.mxu1 %v5968_v58  ;;  %v5987_v58 = vld [vmem:[#allocation5] ss:$0 sm:$0xff]  ;;  %7991 = vst [vmem:[#allocation38_spill] sm:$0xff] %v5990_v57 }
 0x120   :  { %7990 = vst [vmem:[#allocation37_spill] sm:$0xff] %v5987_v58 }
 0x122   :  { %1026 = vmatpush1.bf16.msra.mxu1 %v5971_v59 }
 0x123   :  { %1027 = vmatprep.subr.bf16.mxu1 %v5974_v60 }
 0x126   :  { %1028 = vmatpush1.bf16.msra.mxu1 %v5977_v61 }
 0x127   :  { %1029 = vmatprep.subr.bf16.mxu1 %v5980_v62 }
 0x12a   :  { %1030 = vmatpush1.bf16.msra.mxu1 %v5983_v63  ;;  %v5993_v63 = vld [vmem:[#allocation11 + $0x8] ss:$16 sps:$4 sm:$0xff]  }
 0x12b   :  { %7992 = vst [vmem:[#allocation39_spill] sm:$0xff] %v5993_v63 }
 0x1ac   :  { %v415_v16 = vpop.f32.mrb[0].mxu1 }
 0x1ad   :  { %v4278_v18 = vpop.f32.mrb[1].mxu1  ;;  %v416_v59 = vadd.f32 %v5987_v58, %v415_v16  ;;  %v6028_v16 = vld [vmem:[#allocation11 + $0xc8] ss:$16 sps:$4 sm:$0xff]  }
 0x1ae   :  { %v418_v10 = vpop.f32.mrb[2].mxu1  ;;  %8004 = vst [vmem:[#allocation51_spill] sm:$0xff] %v6028_v16 }
 0x1af   :  { %v4279_v0 = vpop.f32.mrb[3].mxu1  ;;  %v421_v55 = vmax.f32 %v416_v59, 0.0  ;;  %v5995_v10 = vld [vmem:[#allocation11 + $0x2c] ss:$16 sps:$4 sm:$0xff]  }
 0x1b0   :  { %7993 = vst [vmem:[#allocation40_spill] sm:$0xff] %v5995_v10  ;;  %v5998_v0 = vld [vmem:[#allocation11 + $0x28] ss:$16 sps:$4 sm:$0xff]   ;;  %v6019_v59 = vld [vmem:[#allocation11 + $0xac] ss:$16 sps:$4 sm:$0xff]  }
 0x1b1   :  { %v515_v18 = vpack.c.bf16 %v421_v55, %v421_v55  ;;  %7994 = vst [vmem:[#allocation41_spill] sm:$0xff] %v5998_v0  ;;  %v6013_v55 = vld [vmem:[#allocation11 + $0x8c] ss:$16 sps:$4 sm:$0xff]   ;;  %8001 = vst [vmem:[#allocation48_spill] sm:$0xff] %v6019_v59 }
 0x1b2   :  { %7999 = vst [vmem:[#allocation46_spill] sm:$0xff] %v6013_v55 }
 0x1c8   :  { %v508_v60 = vpop.f32.mrb[4].mxu1 }
 0x1c9   :  { %v509_v56 = vadd.f32 %v5990_v57, %v508_v60  ;;  %v4296_v61 = vpop.f32.mrb[5].mxu1  ;;  %v6001_v60 = vld [vmem:[#allocation11 + $0x4c] ss:$16 sps:$4 sm:$0xff]  }
 0x1ca   :  { %v511_v54 = vpop.f32.mrb[6].mxu1  ;;  %7995 = vst [vmem:[#allocation42_spill] sm:$0xff] %v6001_v60  ;;  %v6022_v61 = vld [vmem:[#allocation11 + $0xa8] ss:$16 sps:$4 sm:$0xff]  }
 0x1cb   :  { %v4297_v53 = vpop.f32.mrb[7].mxu1  ;;  %v514_v62 = vmax.f32 %v509_v56, 0.0  ;;  %v6007_v54 = vld [vmem:[#allocation11 + $0x6c] ss:$16 sps:$4 sm:$0xff]   ;;  %v6016_v56 = vld [vmem:[#allocation11 + $0x88] ss:$16 sps:$4 sm:$0xff]  }
 0x1cc   :  { %v6004_v53 = vld [vmem:[#allocation11 + $0x48] ss:$16 sps:$4 sm:$0xff]   ;;  %7997 = vst [vmem:[#allocation44_spill] sm:$0xff] %v6007_v54  ;;  %8000 = vst [vmem:[#allocation47_spill] sm:$0xff] %v6016_v56 }
 0x1cd   :  { %v516_v52 = vpack.c.bf16 %v514_v62, %v514_v62  ;;  %7996 = vst [vmem:[#allocation43_spill] sm:$0xff] %v6004_v53  ;;  %8002 = vst [vmem:[#allocation49_spill] sm:$0xff] %v6022_v61  ;;  %v6025_v62 = vld [vmem:[#allocation11 + $0xcc] ss:$16 sps:$4 sm:$0xff]  }
 0x1ce   :  { %8003 = vst [vmem:[#allocation50_spill] sm:$0xff] %v6025_v62 }
 0x1cf   :  { %651 = vmatprep.mubr.bf16.mxu0 %v516_v52  ;;  %v6010_v52 = vld [vmem:[#allocation11 + $0x68] ss:$16 sps:$4 sm:$0xff]  }
 0x1d0   :  { %652 = vmatmul.mubr.bf16.vlgmr.msra.gmra.mrb[0].mxu0 %v515_v18  ;;  %7998 = vst [vmem:[#allocation45_spill] sm:$0xff] %v6010_v52  ;;  %v6031_v18 = vld [vmem:[#allocation11 + $0xec] ss:$16 sps:$4 sm:$0xff]  }
 0x1d1   :  { %1045 = vmatpush1.bf16.msra.mxu0 %v5993_v63  ;;  %8005 = vst [vmem:[#allocation52_spill] sm:$0xff] %v6031_v18 }
 0x1d2   :  { %1046 = vmatprep.subr.bf16.mxu0 %v5995_v10 }
 0x1d5   :  { %1047 = vmatpush1.bf16.msra.mxu0 %v5998_v0 }
 0x1d6   :  { %1048 = vmatprep.subr.bf16.mxu0 %v6001_v60 }
 0x1d9   :  { %1049 = vmatpush1.bf16.msra.mxu0 %v6004_v53  ;;  %v6100_v53 = vld [vmem:[#allocation10] ss:$0 sm:$0xff] }
 0x1da   :  { %1050 = vmatprep.subr.bf16.mxu0 %v6007_v54  ;;  %8027 = vst [vmem:[#allocation73_spill] sm:$0xff] %v6100_v53 }
 0x1dd   :  { %1051 = vmatpush1.bf16.msra.mxu0 %v6010_v52  ;;  %v6078_v52 = vld [vmem:[#allocation11 + $0x1c0] ss:$16 sps:$4 sm:$0xff]  }
 0x1de   :  { %1052 = vmatprep.subr.bf16.mxu0 %v6013_v55  ;;  %v6034_v55 = vld [vmem:[#allocation11 + $0xe8] ss:$16 sps:$4 sm:$0xff]   ;;  %8020 = vst [vmem:[#allocation67_spill] sm:$0xff] %v6078_v52 }
 0x1df   :  { %8006 = vst [vmem:[#allocation53_spill] sm:$0xff] %v6034_v55 }
 0x1e1   :  { %1053 = vmatpush1.bf16.msra.mxu0 %v6016_v56  ;;  %v6037_v56 = vld [vmem:[#allocation11 + $0x10c] ss:$16 sps:$4 sm:$0xff]  }
 0x1e2   :  { %1054 = vmatprep.subr.bf16.mxu0 %v6019_v59  ;;  %8007 = vst [vmem:[#allocation54_spill] sm:$0xff] %v6037_v56  ;;  %v6040_v59 = vld [vmem:[#allocation11 + $0x108] ss:$16 sps:$4 sm:$0xff]  }
 0x1e3   :  { %8008 = vst [vmem:[#allocation55_spill] sm:$0xff] %v6040_v59 }
 0x1e5   :  { %1055 = vmatpush1.bf16.msra.mxu0 %v6022_v61  ;;  %v6043_v61 = vld [vmem:[#allocation11 + $0x12c] ss:$16 sps:$4 sm:$0xff]  }
 0x1e6   :  { %1056 = vmatprep.subr.bf16.mxu0 %v6025_v62  ;;  %8009 = vst [vmem:[#allocation56_spill] sm:$0xff] %v6043_v61  ;;  %v6046_v62 = vld [vmem:[#allocation11 + $0x128] ss:$16 sps:$4 sm:$0xff]  }
 0x1e7   :  { %8010 = vst [vmem:[#allocation57_spill] sm:$0xff] %v6046_v62 }
 0x1e9   :  { %1057 = vmatpush1.bf16.msra.mxu0 %v6028_v16  ;;  %v6049_v16 = vld [vmem:[#allocation11 + $0x14c] ss:$16 sps:$4 sm:$0xff]  }
 0x1ea   :  { %1058 = vmatprep.subr.bf16.mxu0 %v6031_v18  ;;  %8011 = vst [vmem:[#allocation58_spill] sm:$0xff] %v6049_v16  ;;  %v6052_v18 = vld [vmem:[#allocation11 + $0x148] ss:$16 sps:$4 sm:$0xff]  }
 0x1eb   :  { %8012 = vst [vmem:[#allocation59_spill] sm:$0xff] %v6052_v18 }
 0x1ed   :  { %1059 = vmatpush1.bf16.msra.mxu0 %v6034_v55  ;;  %v6055_v55 = vld [vmem:[#allocation11 + $0x16c] ss:$16 sps:$4 sm:$0xff]  }
 0x1ee   :  { %1060 = vmatprep.subr.bf16.mxu0 %v6037_v56  ;;  %8013 = vst [vmem:[#allocation60_spill] sm:$0xff] %v6055_v55  ;;  %v6058_v56 = vld [vmem:[#allocation11 + $0x168] ss:$16 sps:$4 sm:$0xff]  }
 0x1ef   :  { %8014 = vst [vmem:[#allocation61_spill] sm:$0xff] %v6058_v56 }
 0x1f1   :  { %1061 = vmatpush1.bf16.msra.mxu0 %v6040_v59  ;;  %v6061_v59 = vld [vmem:[#allocation11 + $0x18c] ss:$16 sps:$4 sm:$0xff]  }
 0x1f2   :  { %1062 = vmatprep.subr.bf16.mxu0 %v6043_v61  ;;  %8015 = vst [vmem:[#allocation62_spill] sm:$0xff] %v6061_v59  ;;  %v6064_v61 = vld [vmem:[#allocation11 + $0x188] ss:$16 sps:$4 sm:$0xff]  }
 0x1f3   :  { %8016 = vst [vmem:[#allocation63_spill] sm:$0xff] %v6064_v61 }
 0x1f5   :  { %1063 = vmatpush1.bf16.msra.mxu0 %v6046_v62  ;;  %v6067_v62 = vld [vmem:[#allocation11 + $0x1ac] ss:$16 sps:$4 sm:$0xff]  }
 0x1f6   :  { %1064 = vmatprep.subr.bf16.mxu0 %v6049_v16  ;;  %8017 = vst [vmem:[#allocation64_spill] sm:$0xff] %v6067_v62  ;;  %v6070_v16 = vld [vmem:[#allocation11 + $0x1a8] ss:$16 sps:$4 sm:$0xff]  }
 0x1f7   :  { %8018 = vst [vmem:[#allocation65_spill] sm:$0xff] %v6070_v16 }
 0x1f9   :  { %1065 = vmatpush1.bf16.msra.mxu0 %v6052_v18  ;;  %v6074_v18 = vld [vmem:[#allocation11 + $0x1c4] ss:$16 sps:$4 sm:$0xff]  }
 0x1fa   :  { %1066 = vmatprep.subr.bf16.mxu0 %v6055_v55  ;;  %v6076_v55 = vld [vmem:[#allocation11 + $0x1cc] ss:$16 sps:$4 sm:$0xff]   ;;  %1031 = vmatprep.subr.bf16.mxu1 %v6074_v18 }
 0x1fb   :  { %8019 = vst [vmem:[#allocation66_spill] sm:$0xff] %v6076_v55  ;;  %1032 = vmatpush1.bf16.msra.mxu1 %v6078_v52 }
 0x1fd   :  { %1067 = vmatpush1.bf16.msra.mxu0 %v6058_v56  ;;  %v6080_v56 = vld [vmem:[#allocation11 + $0x1c8] ss:$16 sps:$4 sm:$0xff]  }
 0x1fe   :  { %1068 = vmatprep.subr.bf16.mxu0 %v6061_v59  ;;  %8021 = vst [vmem:[#allocation68_spill] sm:$0xff] %v6080_v56  ;;  %v6092_v59 = vld [vmem:[#allocation11 + $0x1e8] ss:$16 sps:$4 sm:$0xff]  }
 0x1ff   :  { %8025 = vst [vmem:[#allocation72_spill] sm:$0xff] %v6092_v59 }
 0x201   :  { %1069 = vmatpush1.bf16.msra.mxu0 %v6064_v61  ;;  %v6086_v61 = vld [vmem:[#allocation11 + $0x1e4] ss:$16 sps:$4 sm:$0xff]  }
 0x202   :  { %1070 = vmatprep.subr.bf16.mxu0 %v6067_v62  ;;  %8022 = vst [vmem:[#allocation69_spill] sm:$0xff] %v6086_v61  ;;  %v6088_v62 = vld [vmem:[#allocation11 + $0x1ec] ss:$16 sps:$4 sm:$0xff]   ;;  %1033 = vmatprep.subr.bf16.mxu1 %v6086_v61 }
 0x203   :  { %8023 = vst [vmem:[#allocation70_spill] sm:$0xff] %v6088_v62 }
 0x205   :  { %1071 = vmatpush1.bf16.msra.mxu0 %v6070_v16  ;;  %v6090_v16 = vld [vmem:[#allocation11 + $0x1e0] ss:$16 sps:$4 sm:$0xff]  }
 0x206   :  { %1072 = vmatprep.subr.bf16.mxu0 %v6076_v55  ;;  %8024 = vst [vmem:[#allocation71_spill] sm:$0xff] %v6090_v16  ;;  %1034 = vmatpush1.bf16.msra.mxu1 %v6090_v16  ;;  %v8026_v55 = vmov 0.0  }
 0x207   :  { %4298 = vmatprep.subr.bf16.mxu1 %v8026_v55 }
 0x209   :  { %1073 = vmatpush1.bf16.msra.mxu0 %v6080_v56  ;;  %v5511_v56 = vmov 0.0|0.0  }
 0x20a   :  { %1074 = vmatprep.subr.bf16.mxu0 %v6088_v62  ;;  %1035 = vmatprep.mubr.bf16.mxu1 %v5511_v56 }
 0x20b   :  { %1076 = vmatprep.mubr.bf16.mxu0 %v5511_v56 }
 0x20d   :  { %1075 = vmatpush1.bf16.msra.mxu0 %v6092_v59 }
 0x20e   :  { %4318 = vmatprep.subr.bf16.mxu0 %v8026_v55 }
 0x2a3   :  { %v3952_v54 = vpop.f32.mrb[0].mxu0 }
 0x2a4   :  { %v3953_v60 = vpop.f32.mrb[1].mxu0 }
 0x2a5   :  { %v3954_v0 = vadd.f32 %v3953_v60, %v3952_v54  ;;  %v3955_v10 = vpop.f32.mrb[2].mxu0 }
 0x2a6   :  { %v3956_v63 = vpop.f32.mrb[3].mxu0 }
 0x2a7   :  { %v654_v62 = vadd.f32 %v3954_v0, %v6100_v53  ;;  %v308_v0 = vld [vmem:[%s7679_s8] sm:$0xf] }
 0x2a9   :  { %v659_v57 = vmax.f32 %v654_v62, 0.0 }
 0x2ab   :  { %v660_v58 = vpack.c.bf16 %v659_v57, %v659_v57  ;;  %v6172_v57 = vld [vmem:[%s7682_s11 + $0x38] sm:$0xff]  }
 0x2ac   :  { %8035 = vst [vmem:[#allocation81_spill] sm:$0xff] %v6172_v57 }
 0x2ad   :  { %1036 = vmatmul.mubr.bf16.vlgmr.msra.gmra.mrb[8].mxu1 %v660_v58  ;;  %1077 = vmatmul.mubr.bf16.vlgmr.msra.gmra.mrb[4].mxu0 %v660_v58  ;;  %v663_v58 = vlaneseq }
 0x2ae   :  { %4314 = vmatprep.mubr.msk.bf16.mxu1 %vm5509_vm0, %v8026_v55  ;;  %4319 = vmatpush3.bf16.msra.mxu0 %v5739_v1  ;;  %v6124_v1 = vld [vmem:[%s7682_s11] sm:$0xff]  }
 0x2af   :  { %4320 = vmatprep.subr.bf16.mxu0 %v8026_v55  ;;  %4332 = vmatprep.mubr.msk.bf16.mxu0 %vm5509_vm0, %v8026_v55  ;;  %8028 = vst [vmem:[#allocation74_spill] sm:$0xff] %v6124_v1  ;;  %v664_v63 = vshrl.u32 %v663_v58, 7 }
 0x2b0   :  { %4299 = vmatpush3.bf16.msra.mxu1 %v6124_v1 }
 0x2b1   :  { %4300 = vmatprep.subr.bf16.mxu1 %v8026_v55  ;;  %v6177_v10 = vsub.s32 0, %v664_v63  ;;  %v6182_v60 = vsub.s32 1, %v664_v63 }
 0x2b2   :  { %4321 = vmatpush3.bf16.msra.mxu0 %v5742_v2  ;;  %v6131_v2 = vld [vmem:[%s7682_s11 + $0x8] sm:$0xff]  }
 0x2b3   :  { %4322 = vmatprep.subr.bf16.mxu0 %v8026_v55  ;;  %8029 = vst [vmem:[#allocation75_spill] sm:$0xff] %v6131_v2  ;;  %8036 = vst [vmem:[#allocation82_spill] sm:$0xff] %v6177_v10  ;;  %v6185_v54 = vrot.slane %v308_v0, %v6177_v10  ;;  %v6188_v56 = vrot.slane %v308_v0, %v6182_v60 }
 0x2b4   :  { %4301 = vmatpush3.bf16.msra.mxu1 %v6131_v2  ;;  %8037 = vst [vmem:[#allocation83_spill] sm:$0xff] %v6182_v60  ;;  %v673_v60 = vsub.s32 2, %v664_v63 }
 0x2b5   :  { %4302 = vmatprep.subr.bf16.mxu1 %v8026_v55  ;;  %8038 = vst [vmem:[#allocation84_spill] sm:$0xff] %v6185_v54 }
 0x2b6   :  { %4323 = vmatpush3.bf16.msra.mxu0 %v5746_v3  ;;  %v6138_v3 = vld [vmem:[%s7682_s11 + $0x10] sm:$0xff]   ;;  %v6195_v61 = vrot.slane %v308_v0, %v673_v60 }
 0x2b7   :  { %4324 = vmatprep.subr.bf16.mxu0 %v8026_v55  ;;  %8030 = vst [vmem:[#allocation76_spill] sm:$0xff] %v6138_v3 }
 0x2b8   :  { %4303 = vmatpush3.bf16.msra.mxu1 %v6138_v3 }
 0x2b9   :  { %4304 = vmatprep.subr.bf16.mxu1 %v8026_v55 }
 0x2ba   :  { %4325 = vmatpush3.bf16.msra.mxu0 %v5750_v4  ;;  %v6145_v4 = vld [vmem:[%s7682_s11 + $0x18] sm:$0xff]  }
 0x2bb   :  { %4326 = vmatprep.subr.bf16.mxu0 %v8026_v55  ;;  %8031 = vst [vmem:[#allocation77_spill] sm:$0xff] %v6145_v4 }
 0x2bc   :  { %4305 = vmatpush3.bf16.msra.mxu1 %v6145_v4 }
 0x2bd   :  { %4306 = vmatprep.subr.bf16.mxu1 %v8026_v55 }
 0x2be   :  { %4327 = vmatpush3.bf16.msra.mxu0 %v5754_v5  ;;  %v6152_v5 = vld [vmem:[%s7682_s11 + $0x20] sm:$0xff]  }
 0x2bf   :  { %4328 = vmatprep.subr.bf16.mxu0 %v8026_v55  ;;  %8032 = vst [vmem:[#allocation78_spill] sm:$0xff] %v6152_v5 }
 0x2c0   :  { %4307 = vmatpush3.bf16.msra.mxu1 %v6152_v5 }
 0x2c1   :  { %4308 = vmatprep.subr.bf16.mxu1 %v8026_v55 }
 0x2c2   :  { %4329 = vmatpush3.bf16.msra.mxu0 %v5757_v6  ;;  %v6158_v6 = vld [vmem:[%s7682_s11 + $0x28] sm:$0xff]  }
 0x2c3   :  { %4330 = vmatprep.subr.bf16.mxu0 %v8026_v55  ;;  %8033 = vst [vmem:[#allocation79_spill] sm:$0xff] %v6158_v6 }
 0x2c4   :  { %4309 = vmatpush3.bf16.msra.mxu1 %v6158_v6 }
 0x2c5   :  { %4310 = vmatprep.subr.bf16.mxu1 %v8026_v55 }
 0x2c6   :  { %4331 = vmatpush3.bf16.msra.mxu0 %v5761_v7  ;;  %v6165_v7 = vld [vmem:[%s7682_s11 + $0x30] sm:$0xff]  }
 0x2c7   :  { %3983 = vmatprep.subr.bf16.mxu0 %v5807_v19  ;;  %8034 = vst [vmem:[#allocation80_spill] sm:$0xff] %v6165_v7  ;;  %v677_v19 = vsub.s32 3, %v664_v63 }
 0x2c8   :  { %4311 = vmatpush3.bf16.msra.mxu1 %v6165_v7 }
 0x2c9   :  { %4312 = vmatprep.subr.bf16.mxu1 %v8026_v55  ;;  %v6192_v10 = vrot.slane %v308_v0, %v677_v19 }
 0x2cc   :  { %4313 = vmatpush3.bf16.msra.mxu1 %v6172_v57 }
 0x2cd   :  { %4336 = vmatprep.subr.bf16.mxu1 %v8026_v55 }
 0x380   :  { %v1037_v62 = vpop.f32.mrb[8].mxu1  ;;  %v1078_v57 = vpop.f32.mrb[4].mxu0 }
 0x381   :  { %v1038_v7 = vadd.f32 %v1037_v62, %v6185_v54  ;;  %v1039_v58 = vpop.f32.mrb[9].mxu1  ;;  %v1080_v6 = vpop.f32.mrb[5].mxu0  ;;  %v1079_v54 = vadd.f32 %v1078_v57, %v6195_v61 }
 0x382   :  { %v1040_v5 = vadd.f32 %v1039_v58, %v6188_v56  ;;  %v1041_v4 = vpop.f32.mrb[10].mxu1  ;;  %v1082_v3 = vpop.f32.mrb[6].mxu0  ;;  %v1081_v16 = vadd.f32 %v1080_v6, %v6192_v10 }
 0x383   :  { %v3804_v2 = vmul.f32 -1.442695, %v1038_v7  ;;  %v1042_v1 = vpop.f32.mrb[11].mxu1  ;;  %v1083_v53 = vpop.f32.mrb[7].mxu0 }
 0x384   :  { %v3805_v59 = vmul.f32 -1.442695, %v1040_v5  ;;  %v3806_v62 = vmul.f32 -1.442695, %v1081_v16 }
 0x385   :  { %4876 = vpow2.f32 %v3804_v2 }
 0x386   :  { %4878 = vpow2.f32 %v3805_v59 }
 0x387   :  { %4880 = vpow2.f32 %v3806_v62 }
 0x388   :  { %4882 = vtanh.f32 %v1079_v54 }
 0x38f   :  { %v4877_v52 = vpop.eup %4876 }
 0x390   :  { %v4879_v58 = vpop.eup %4878  ;;  %v1088_v4 = vadd.f32 1.0, %v4877_v52 }
 0x391   :  { %v1094_v1 = vadd.f32 1.0, %v4879_v58  ;;  %v4881_v19 = vpop.eup %4880 }
 0x392   :  { %4884 = vrcp.f32 %v1088_v4  ;;  %v4883_v53 = vpop.eup %4882  ;;  %v1101_v5 = vadd.f32 1.0, %v4881_v19 }
 0x393   :  { %4886 = vrcp.f32 %v1094_v1 }
 0x394   :  { %4888 = vrcp.f32 %v1101_v5 }
 0x39c   :  { %v4885_v2 = vpop.eup %4884 }
 0x39d   :  { %v4887_v3 = vpop.eup %4886  ;;  %v1105_v59 = vmul.f32 %v4885_v2, %v4883_v53 }
 0x39e   :  { %v1104_v6 = vmul.f32 0.0, %v4887_v3  ;;  %v4889_v16 = vpop.eup %4888 }
 0x3a0   :  { %v6198_v7 = vadd.f32 %v1105_v59, %v1104_v6 }
 0x3a2   :  { %4890 = vtanh.f32 %v6198_v7 }
 0x3ac   :  { %v4891_v57 = vpop.eup %4890 }
 0x3ad   :  { %v1108_v52 = vmul.f32 %v4891_v57, %v4889_v16 }
 0x3af   :  { %v1109_v63 = vpack.c.bf16 %v1108_v52, %v1108_v52 }
 0x3b1   :  { %4315 = vmatmul.mubr.bf16.vlgmr.msra.gmra.mrb[12].mxu1 %v1109_v63 }
 0x3b2   :  { %4337 = vmatpush3.bf16.msra.mxu1 %v5765_v8  ;;  %4350 = vmatprep.mubr.msk.bf16.mxu1 %vm5509_vm0, %v8026_v55  ;;  %v6220_v8 = vld [vmem:[%s7683_s12] ss:$0 sm:$0xff] }
 0x3b3   :  { %4338 = vmatprep.subr.bf16.mxu1 %v8026_v55 }
 0x3b6   :  { %4339 = vmatpush3.bf16.msra.mxu1 %v5769_v9 }
 0x3b7   :  { %4340 = vmatprep.subr.bf16.mxu1 %v8026_v55 }
 0x3ba   :  { %4341 = vmatpush3.bf16.msra.mxu1 %v5776_v11 }
 0x3bb   :  { %4342 = vmatprep.subr.bf16.mxu1 %v8026_v55 }
 0x3be   :  { %4343 = vmatpush3.bf16.msra.mxu1 %v5780_v12 }
 0x3bf   :  { %4344 = vmatprep.subr.bf16.mxu1 %v8026_v55 }
 0x3c2   :  { %4345 = vmatpush3.bf16.msra.mxu1 %v5784_v13 }
 0x3c3   :  { %4346 = vmatprep.subr.bf16.mxu1 %v8026_v55 }
 0x3c6   :  { %4347 = vmatpush3.bf16.msra.mxu1 %v5793_v15 }
 0x3c7   :  { %4348 = vmatprep.subr.bf16.mxu1 %v8026_v55 }
 0x3ca   :  { %4349 = vmatpush3.bf16.msra.mxu1 %v5798_v17 }
 0x3cb   :  { %1391 = vmatprep.subr.bf16.mxu1 %v5900_v35 }
 0x484   :  { %v1198_v9 = vpop.f32.mrb[12].mxu1 }
 0x485   :  { %v1199_v11 = vadd.f32 %v6220_v8, %v1198_v9  ;;  %v4316_v12 = vpop.f32.mrb[13].mxu1 }
 0x486   :  { %v1201_v13 = vpop.f32.mrb[14].mxu1 }
 0x487   :  { %v3816_v0 = vmul.f32 -1.442695, %v1199_v11  ;;  %v4317_v60 = vpop.f32.mrb[15].mxu1 }
 0x489   :  { %4892 = vpow2.f32 %v3816_v0 }
 0x493   :  { %v4893_v15 = vpop.eup %4892 }
 0x494   :  { %v1207_v54 = vadd.f32 1.0, %v4893_v15 }
 0x496   :  { %4894 = vrcp.f32 %v1207_v54 }
 0x4a0   :  { %v4895_v62 = vpop.eup %4894 }
 0x4a1   :  { %v1210_v17 = vsel %vm377_vm1, %v4895_v62, 0.0 }
 0x4a2   :  { %1211 = vadd.xlane.f32.xlu0 %v1210_v17  ;;  %v8057_v17 = vld [vmem:[#allocation40_spill] sm:$0xff] }
 0x4a6   :  { %1350 = vadd.xlane.f32.xlu0 %v1108_v52 }
 0x52f   :  { %v1212_v35 = vpop.xlane.xlu0 %1211 }
 0x530   :  { %v1213_v58 = vmul.f32 0.0625, %v1212_v35  ;;  %v8058_v35 = vld [vmem:[#allocation41_spill] sm:$0xff] }
 0x532   :  { %4896 = vrcp.f32 %v1213_v58  ;;  %v8059_v58 = vld [vmem:[#allocation42_spill] sm:$0xff] }
 0x533   :  { %v1351_v4 = vpop.xlane.xlu0 %1350 }
 0x534   :  { %v1353_v1 = vmul.f32 0.0078125, %v1351_v4  ;;  %v8060_v4 = vld [vmem:[#allocation43_spill] sm:$0xff] }
 0x536   :  { %v6224_v19 = vsub.f32 %v1108_v52, %v1353_v1  ;;  %v8055_v52 = vld [vmem:[#allocation38_spill] sm:$0xff]  ;;  %v8061_v1 = vld [vmem:[#allocation44_spill] sm:$0xff] }
 0x538   :  { %v1355_v53 = vmul.f32 %v6224_v19, %v6224_v19 }
 0x53a   :  { %1356 = vadd.xlane.f32.xlu1 %v1355_v53  ;;  %v8063_v53 = vld [vmem:[#allocation46_spill] sm:$0xff] }
 0x53c   :  { %v4897_v2 = vpop.eup %4896 }
 0x53d   :  { %v1215_v3 = vmul.f32 %v4897_v2, %v4895_v62  ;;  %v8056_v62 = vld [vmem:[#allocation39_spill] sm:$0xff] }
 0x53e   :  { %1376 = vadd.xlane.f32.xlu1 %v6198_v7  ;;  %v8064_v2 = vld [vmem:[#allocation47_spill] sm:$0xff] }
 0x53f   :  { %v1217_v59 = vpack.c.bf16 %v1215_v3, %v1215_v3  ;;  %v1216_v5 = vmul.f32 %v1215_v3, %v5789_v14  ;;  %v8039_v14 = vld [vmem:[#allocation25_spill] sm:$0xff]  ;;  %v8065_v3 = vld [vmem:[#allocation48_spill] sm:$0xff] }
 0x541   :  { %4333 = vmatmul.mubr.msk.bf16.vlgmr.msra.gmra.mrb[8].mxu0 %vm377_vm1, %v1217_v59  ;;  %v1262_v6 = vpack.c.bf16 %v1216_v5, %v1216_v5  ;;  %v8066_v59 = vld [vmem:[#allocation49_spill] sm:$0xff]  ;;  %v8067_v5 = vld [vmem:[#allocation50_spill] sm:$0xff] }
 0x542   :  { %3984 = vmatpush3.bf16.msra.mxu0 %v5812_v20  ;;  %v8040_v20 = vld [vmem:[#allocation26_spill] sm:$0xff] }
 0x543   :  { %4351 = vmatmul.mubr.msk.bf16.vlgmr.msra.gmra.mrb[16].mxu1 %vm377_vm1, %v1262_v6  ;;  %3985 = vmatprep.subr.bf16.mxu0 %v5819_v21  ;;  %v8041_v21 = vld [vmem:[#allocation27_spill] sm:$0xff] }
 0x544   :  { %1392 = vmatpush1.bf16.msra.mxu1 %v5904_v37  ;;  %v8068_v6 = vld [vmem:[#allocation51_spill] sm:$0xff] }
 0x545   :  { %1393 = vmatprep.subr.bf16.mxu1 %v5906_v38 }
 0x546   :  { %3986 = vmatpush3.bf16.msra.mxu0 %v5824_v22  ;;  %v8042_v22 = vld [vmem:[#allocation28_spill] sm:$0xff] }
 0x547   :  { %3987 = vmatprep.subr.bf16.mxu0 %v5829_v23  ;;  %v8043_v23 = vld [vmem:[#allocation29_spill] sm:$0xff] }
 0x548   :  { %1394 = vmatpush1.bf16.msra.mxu1 %v5911_v39 }
 0x549   :  { %1395 = vmatprep.subr.bf16.mxu1 %v5914_v40 }
 0x54a   :  { %3988 = vmatpush3.bf16.msra.mxu0 %v5836_v24  ;;  %v8044_v24 = vld [vmem:[#allocation30_spill] sm:$0xff] }
 0x54b   :  { %3989 = vmatprep.subr.bf16.mxu0 %v5842_v25  ;;  %v8045_v25 = vld [vmem:[#allocation31_spill] sm:$0xff] }
 0x54c   :  { %1396 = vmatpush1.bf16.msra.mxu1 %v5917_v41 }
 0x54d   :  { %1397 = vmatprep.subr.bf16.mxu1 %v5920_v42 }
 0x54e   :  { %3990 = vmatpush3.bf16.msra.mxu0 %v5848_v26  ;;  %v8046_v26 = vld [vmem:[#allocation32_spill] sm:$0xff] }
 0x54f   :  { %3991 = vmatprep.subr.bf16.mxu0 %v5854_v27  ;;  %v8047_v27 = vld [vmem:[#allocation33_spill] sm:$0xff] }
 0x550   :  { %1398 = vmatpush1.bf16.msra.mxu1 %v5923_v43  ;;  %v6288_v43 = vld [vmem:[%s7680_s9] ss:$0 sm:$0xff] }
 0x551   :  { %1399 = vmatprep.subr.bf16.mxu1 %v5926_v44 }
 0x552   :  { %3992 = vmatpush3.bf16.msra.mxu0 %v5860_v28  ;;  %v8048_v28 = vld [vmem:[#allocation34_spill] sm:$0xff] }
 0x553   :  { %3993 = vmatprep.subr.bf16.mxu0 %v5866_v29  ;;  %v8049_v29 = vld [vmem:[#allocation35_spill] sm:$0xff] }
 0x554   :  { %1400 = vmatpush1.bf16.msra.mxu1 %v5929_v45  ;;  %v6294_v45 = vld [vmem:[%s7681_s10] ss:$0 sm:$0xff] }
 0x555   :  { %1401 = vmatprep.subr.bf16.mxu1 %v5932_v46 }
 0x556   :  { %3994 = vmatpush3.bf16.msra.mxu0 %v5872_v30  ;;  %v8050_v30 = vld [vmem:[#allocation36_spill] sm:$0xff] }
 0x557   :  { %3995 = vmatprep.subr.bf16.mxu0 %v5879_v31  ;;  %v8051_v31 = vld [vmem:[#allocation67_spill] sm:$0xff] }
 0x558   :  { %1402 = vmatpush1.bf16.msra.mxu1 %v5935_v47 }
 0x559   :  { %1403 = vmatprep.subr.bf16.mxu1 %v5938_v48 }
 0x55a   :  { %3996 = vmatpush3.bf16.msra.mxu0 %v5884_v32  ;;  %v8052_v32 = vld [vmem:[#allocation69_spill] sm:$0xff] }
 0x55b   :  { %3997 = vmatprep.subr.bf16.mxu0 %v5891_v33  ;;  %v8053_v33 = vld [vmem:[#allocation71_spill] sm:$0xff] }
 0x55c   :  { %1404 = vmatpush1.bf16.msra.mxu1 %v5941_v49 }
 0x55d   :  { %1405 = vmatprep.subr.bf16.mxu1 %v5944_v50  ;;  %v8054_v50 = vld [vmem:[#allocation37_spill] sm:$0xff] }
 0x55e   :  { %3998 = vmatpush3.bf16.msra.mxu0 %v5896_v34 }
 0x55f   :  { %1432 = vmatprep.subr.bf16.mxu0 %v5902_v36 }
 0x560   :  { %1406 = vmatpush1.bf16.msra.mxu1 %v5947_v51 }
 0x561   :  { %1407 = vmatprep.subr.bf16.mxu1 %v8039_v14  ;;  %v8069_v14 = vld [vmem:[#allocation52_spill] sm:$0xff] }
 0x564   :  { %1408 = vmatpush1.bf16.msra.mxu1 %v8040_v20  ;;  %v8070_v20 = vld [vmem:[#allocation53_spill] sm:$0xff] }
 0x565   :  { %1409 = vmatprep.subr.bf16.mxu1 %v8041_v21  ;;  %v8071_v21 = vld [vmem:[#allocation54_spill] sm:$0xff] }
 0x568   :  { %1410 = vmatpush1.bf16.msra.mxu1 %v8042_v22  ;;  %v8072_v22 = vld [vmem:[#allocation55_spill] sm:$0xff] }
 0x569   :  { %1411 = vmatprep.subr.bf16.mxu1 %v8043_v23  ;;  %v8073_v23 = vld [vmem:[#allocation56_spill] sm:$0xff] }
 0x56c   :  { %1412 = vmatpush1.bf16.msra.mxu1 %v8044_v24  ;;  %v8074_v24 = vld [vmem:[#allocation57_spill] sm:$0xff] }
 0x56d   :  { %1413 = vmatprep.subr.bf16.mxu1 %v8045_v25  ;;  %v8075_v25 = vld [vmem:[#allocation58_spill] sm:$0xff] }
 0x570   :  { %1414 = vmatpush1.bf16.msra.mxu1 %v8046_v26  ;;  %v8076_v26 = vld [vmem:[#allocation59_spill] sm:$0xff] }
 0x571   :  { %1415 = vmatprep.subr.bf16.mxu1 %v8047_v27  ;;  %v8077_v27 = vld [vmem:[#allocation60_spill] sm:$0xff] }
 0x574   :  { %1416 = vmatpush1.bf16.msra.mxu1 %v8048_v28  ;;  %v8078_v28 = vld [vmem:[#allocation61_spill] sm:$0xff] }
 0x575   :  { %1417 = vmatprep.subr.bf16.mxu1 %v8049_v29  ;;  %v8079_v29 = vld [vmem:[#allocation62_spill] sm:$0xff] }
 0x578   :  { %1418 = vmatpush1.bf16.msra.mxu1 %v8050_v30  ;;  %v8080_v30 = vld [vmem:[#allocation63_spill] sm:$0xff] }
 0x579   :  { %1419 = vmatprep.subr.bf16.mxu1 %v6074_v18 }
 0x57c   :  { %1420 = vmatpush1.bf16.msra.mxu1 %v8051_v31 }
 0x57d   :  { %1421 = vmatprep.subr.bf16.mxu1 %v8052_v32 }
 0x580   :  { %1422 = vmatpush1.bf16.msra.mxu1 %v8053_v33 }
 0x581   :  { %4354 = vmatprep.subr.bf16.mxu1 %v8026_v55 }
 0x5c7   :  { %v1357_v34 = vpop.xlane.xlu1 %1356 }
 0x5c8   :  { %v1358_v36 = vmul.f32 0.0078125, %v1357_v34  ;;  %v8081_v34 = vld [vmem:[#allocation64_spill] sm:$0xff] }
 0x5ca   :  { %v1359_v37 = vadd.f32 1e-05, %v1358_v36  ;;  %v8082_v36 = vld [vmem:[#allocation65_spill] sm:$0xff] }
 0x5cb   :  { %v1377_v38 = vpop.xlane.xlu1 %1376 }
 0x5cc   :  { %4898 = vrsqrt.f32 %v1359_v37  ;;  %v1378_v39 = vmul.f32 0.0078125, %v1377_v38  ;;  %v8083_v37 = vld [vmem:[#allocation66_spill] sm:$0xff]  ;;  %v8084_v38 = vld [vmem:[#allocation68_spill] sm:$0xff] }
 0x5ce   :  { %v6281_v40 = vsub.f32 %v6198_v7, %v1378_v39  ;;  %v8085_v39 = vld [vmem:[#allocation70_spill] sm:$0xff] }
 0x5d0   :  { %v1380_v41 = vmul.f32 %v6281_v40, %v6281_v40 }
 0x5d2   :  { %1381 = vadd.xlane.f32.xlu0 %v1380_v41  ;;  %v8086_v41 = vld [vmem:[#allocation72_spill] sm:$0xff] }
 0x5d6   :  { %v4899_v42 = vpop.eup %4898 }
 0x5d7   :  { %v1361_v44 = vmul.f32 %v4899_v42, %v6224_v19  ;;  %v8062_v19 = vld [vmem:[#allocation45_spill] sm:$0xff] }
 0x5d9   :  { %v1368_v46 = vmul.f32 %v6288_v43, %v1361_v44 }
 0x5db   :  { %v1375_v47 = vadd.f32 %v6294_v45, %v1368_v46 }
 0x5dd   :  { %v1390_v48 = vpack.c.bf16 %v1375_v47, %v1375_v47 }
 0x5df   :  { %1423 = vmatprep.mubr.bf16.mxu1 %v1390_v48 }
 0x614   :  { %v1255_v49 = vpop.f32.mrb[8].mxu0 }
 0x615   :  { %v1256_v51 = vadd.f32 %v8054_v50, %v1255_v49  ;;  %v4334_v7 = vpop.f32.mrb[9].mxu0  ;;  %v8087_v49 = vld [vmem:[#allocation73_spill] sm:$0xff] }
 0x616   :  { %v1258_v16 = vpop.f32.mrb[10].mxu0  ;;  %v1300_v57 = vpop.f32.mrb[16].mxu1 }
 0x617   :  { %v1301_v63 = vadd.f32 %v8055_v52, %v1300_v57  ;;  %v4335_v9 = vpop.f32.mrb[11].mxu0  ;;  %v4352_v11 = vpop.f32.mrb[17].mxu1  ;;  %v1261_v12 = vmax.f32 %v1256_v51, 0.0  ;;  %v8088_v16 = vld [vmem:[#allocation74_spill] sm:$0xff]  ;;  %v6337_v57 = vld [vmem:[#allocation2] sm:$0xff]   ;;  %v8089_v52 = vld [vmem:[#allocation75_spill] sm:$0xff] }
 0x618   :  { %v1303_v13 = vpop.f32.mrb[18].mxu1  ;;  %v8090_v9 = vld [vmem:[#allocation76_spill] sm:$0xff]  ;;  %v6351_v11 = vld [vmem:[#allocation2 + $0x10] sm:$0xff]  }
 0x619   :  { %v1306_v0 = vmax.f32 %v1301_v63, 0.0  ;;  %v4353_v60 = vpop.f32.mrb[19].mxu1  ;;  %v1307_v54 = vpack.c.bf16 %v1261_v12, %v1261_v12  ;;  %v6345_v63 = vld [vmem:[#allocation2 + $0x8] sm:$0xff]   ;;  %v6357_v13 = vld [vmem:[#allocation2 + $0x18] sm:$0xff]  }
 0x61a   :  { %v8091_v12 = vld [vmem:[#allocation77_spill] sm:$0xff] }
 0x61b   :  { %v1308_v15 = vpack.c.bf16 %v1306_v0, %v1306_v0  ;;  %v8092_v0 = vld [vmem:[#allocation78_spill] sm:$0xff]  ;;  %v6363_v60 = vld [vmem:[#allocation2 + $0x20] sm:$0xff]  }
 0x61d   :  { %1341 = vmatprep.mubr.bf16.mxu0 %v1308_v15  ;;  %v8093_v15 = vld [vmem:[#allocation79_spill] sm:$0xff] }
 0x61e   :  { %1342 = vmatmul.mubr.bf16.vlgmr.msra.gmra.mrb[12].mxu0 %v1307_v54  ;;  %v6369_v54 = vld [vmem:[#allocation2 + $0x28] sm:$0xff]  }
 0x61f   :  { %1464 = vmatprep.mubr.bf16.mxu0 %v1390_v48  ;;  %1433 = vmatpush1.bf16.msra.mxu0 %v8056_v62  ;;  %8094 = vst [vmem:[#allocation25_spill] sm:$0xff] %v6369_v54  ;;  %v8095_v62 = vld [vmem:[#allocation80_spill] sm:$0xff] }
 0x620   :  { %1434 = vmatprep.subr.bf16.mxu0 %v8057_v17  ;;  %v6375_v17 = vld [vmem:[#allocation2 + $0x30] sm:$0xff]  }
 0x621   :  { %8096 = vst [vmem:[#allocation26_spill] sm:$0xff] %v6375_v17 }
 0x623   :  { %1435 = vmatpush1.bf16.msra.mxu0 %v8058_v35  ;;  %v8097_v35 = vld [vmem:[#allocation24_spill] sm:$0xff] }
 0x624   :  { %1436 = vmatprep.subr.bf16.mxu0 %v8059_v58  ;;  %v8098_v58 = vld [vmem:[#allocation81_spill] sm:$0xff] }
 0x627   :  { %1437 = vmatpush1.bf16.msra.mxu0 %v8060_v4 }
 0x628   :  { %1438 = vmatprep.subr.bf16.mxu0 %v8061_v1 }
 0x62b   :  { %1439 = vmatpush1.bf16.msra.mxu0 %v8062_v19 }
 0x62c   :  { %1440 = vmatprep.subr.bf16.mxu0 %v8063_v53 }
 0x62f   :  { %1441 = vmatpush1.bf16.msra.mxu0 %v8064_v2  ;;  %v8099_v2 = vld [vmem:[#allocation84_spill] sm:$0xff] }
 0x630   :  { %1442 = vmatprep.subr.bf16.mxu0 %v8065_v3 }
 0x633   :  { %1443 = vmatpush1.bf16.msra.mxu0 %v8066_v59 }
 0x634   :  { %1444 = vmatprep.subr.bf16.mxu0 %v8067_v5 }
 0x637   :  { %1445 = vmatpush1.bf16.msra.mxu0 %v8068_v6 }
 0x638   :  { %1446 = vmatprep.subr.bf16.mxu0 %v8069_v14 }
 0x63b   :  { %1447 = vmatpush1.bf16.msra.mxu0 %v8070_v20 }
 0x63c   :  { %1448 = vmatprep.subr.bf16.mxu0 %v8071_v21 }
 0x63f   :  { %1449 = vmatpush1.bf16.msra.mxu0 %v8072_v22 }
 0x640   :  { %1450 = vmatprep.subr.bf16.mxu0 %v8073_v23 }
 0x643   :  { %1451 = vmatpush1.bf16.msra.mxu0 %v8074_v24 }
 0x644   :  { %1452 = vmatprep.subr.bf16.mxu0 %v8075_v25 }
 0x647   :  { %1453 = vmatpush1.bf16.msra.mxu0 %v8076_v26 }
 0x648   :  { %1454 = vmatprep.subr.bf16.mxu0 %v8077_v27 }
 0x64b   :  { %1455 = vmatpush1.bf16.msra.mxu0 %v8078_v28 }
 0x64c   :  { %1456 = vmatprep.subr.bf16.mxu0 %v8079_v29 }
 0x64f   :  { %1457 = vmatpush1.bf16.msra.mxu0 %v8080_v30 }
 0x650   :  { %1458 = vmatprep.subr.bf16.mxu0 %v8081_v34 }
 0x653   :  { %1459 = vmatpush1.bf16.msra.mxu0 %v8082_v36 }
 0x654   :  { %1460 = vmatprep.subr.bf16.mxu0 %v8083_v37 }
 0x657   :  { %1461 = vmatpush1.bf16.msra.mxu0 %v8084_v38 }
 0x658   :  { %1462 = vmatprep.subr.bf16.mxu0 %v8085_v39 }
 0x65b   :  { %1463 = vmatpush1.bf16.msra.mxu0 %v8086_v41 }
 0x65c   :  { %4374 = vmatprep.subr.bf16.mxu0 %v8026_v55 }
 0x65f   :  { %v1382_v4 = vpop.xlane.xlu0 %1381 }
 0x660   :  { %v1383_v1 = vmul.f32 0.0078125, %v1382_v4 }
 0x662   :  { %v1384_v21 = vadd.f32 1e-05, %v1383_v1 }
 0x6f1   :  { %v3999_v42 = vpop.f32.mrb[12].mxu0 }
 0x6f2   :  { %v4000_v44 = vpop.f32.mrb[13].mxu0 }
 0x6f3   :  { %v4001_v46 = vadd.f32 %v4000_v44, %v3999_v42  ;;  %v4002_v47 = vpop.f32.mrb[14].mxu0 }
 0x6f4   :  { %v4003_v48 = vpop.f32.mrb[15].mxu0 }
 0x6f5   :  { %v1344_v50 = vadd.f32 %v4001_v46, %v8087_v49 }
 0x6f7   :  { %v1349_v51 = vmax.f32 %v1344_v50, 0.0 }
 0x6f9   :  { %v1389_v7 = vpack.c.bf16 %v1349_v51, %v1349_v51 }
 0x6fb   :  { %1424 = vmatmul.mubr.bf16.vlgmr.msra.gmra.mrb[20].mxu1 %v1389_v7  ;;  %1465 = vmatmul.mubr.bf16.vlgmr.msra.gmra.mrb[16].mxu0 %v1389_v7 }
 0x6fc   :  { %4355 = vmatpush3.bf16.msra.mxu1 %v8088_v16  ;;  %4370 = vmatprep.mubr.msk.bf16.mxu1 %vm5509_vm0, %v8026_v55 }
 0x6fd   :  { %4356 = vmatprep.subr.bf16.mxu1 %v8026_v55  ;;  %4375 = vmatpush3.bf16.msra.mxu0 %v6337_v57 }
 0x6fe   :  { %4376 = vmatprep.subr.bf16.mxu0 %v8026_v55  ;;  %4388 = vmatprep.mubr.msk.bf16.mxu0 %vm5509_vm0, %v8026_v55 }
 0x700   :  { %4357 = vmatpush3.bf16.msra.mxu1 %v8089_v52 }
 0x701   :  { %4358 = vmatprep.subr.bf16.mxu1 %v8026_v55  ;;  %4377 = vmatpush3.bf16.msra.mxu0 %v6345_v63 }
 0x702   :  { %4378 = vmatprep.subr.bf16.mxu0 %v8026_v55 }
 0x704   :  { %4359 = vmatpush3.bf16.msra.mxu1 %v8090_v9 }
 0x705   :  { %4360 = vmatprep.subr.bf16.mxu1 %v8026_v55  ;;  %4379 = vmatpush3.bf16.msra.mxu0 %v6351_v11 }
 0x706   :  { %4380 = vmatprep.subr.bf16.mxu0 %v8026_v55 }
 0x708   :  { %4361 = vmatpush3.bf16.msra.mxu1 %v8091_v12 }
 0x709   :  { %4362 = vmatprep.subr.bf16.mxu1 %v8026_v55  ;;  %4381 = vmatpush3.bf16.msra.mxu0 %v6357_v13 }
 0x70a   :  { %4382 = vmatprep.subr.bf16.mxu0 %v8026_v55 }
 0x70c   :  { %4363 = vmatpush3.bf16.msra.mxu1 %v8092_v0 }
 0x70d   :  { %4364 = vmatprep.subr.bf16.mxu1 %v8026_v55  ;;  %4383 = vmatpush3.bf16.msra.mxu0 %v6363_v60 }
 0x70e   :  { %4384 = vmatprep.subr.bf16.mxu0 %v8026_v55 }
 0x710   :  { %4365 = vmatpush3.bf16.msra.mxu1 %v8093_v15 }
 0x711   :  { %4366 = vmatprep.subr.bf16.mxu1 %v8026_v55  ;;  %4385 = vmatpush3.bf16.msra.mxu0 %v6369_v54 }
 0x712   :  { %4386 = vmatprep.subr.bf16.mxu0 %v8026_v55 }
 0x714   :  { %4367 = vmatpush3.bf16.msra.mxu1 %v8095_v62 }
 0x715   :  { %4368 = vmatprep.subr.bf16.mxu1 %v8026_v55  ;;  %4387 = vmatpush3.bf16.msra.mxu0 %v6375_v17 }
 0x716   :  { %4030 = vmatprep.subr.bf16.mxu0 %v8097_v35 }
 0x718   :  { %4369 = vmatpush3.bf16.msra.mxu1 %v8098_v58 }
 0x719   :  { %4392 = vmatprep.subr.bf16.mxu1 %v8026_v55 }
 0x7ce   :  { %v1425_v19 = vpop.f32.mrb[20].mxu1  ;;  %v1466_v53 = vpop.f32.mrb[16].mxu0 }
 0x7cf   :  { %v1426_v3 = vadd.f32 %v1425_v19, %v8099_v2  ;;  %v1427_v59 = vpop.f32.mrb[21].mxu1  ;;  %v1468_v5 = vpop.f32.mrb[17].mxu0  ;;  %v1467_v28 = vadd.f32 %v1466_v53, %v6195_v61  ;;  %v6394_v19 = vld [vmem:[#allocation7 + $0x8] sm:$0xff]   ;;  %v6398_v53 = vld [vmem:[#allocation7 + $0x10] sm:$0xff]  }
 0x7d0   :  { %v1428_v6 = vadd.f32 %v1427_v59, %v6188_v56  ;;  %v1429_v14 = vpop.f32.mrb[22].mxu1  ;;  %v1470_v20 = vpop.f32.mrb[18].mxu0  ;;  %v1469_v26 = vadd.f32 %v1468_v5, %v6192_v10  ;;  %v6406_v59 = vld [vmem:[#allocation7 + $0x20] sm:$0xff]   ;;  %v6410_v5 = vld [vmem:[#allocation7 + $0x28] sm:$0xff]  }
 0x7d1   :  { %v3821_v22 = vmul.f32 -1.442695, %v1426_v3  ;;  %v1430_v23 = vpop.f32.mrb[23].mxu1  ;;  %v1471_v24 = vpop.f32.mrb[19].mxu0  ;;  %v6402_v3 = vld [vmem:[#allocation7 + $0x18] sm:$0xff]  }
 0x7d2   :  { %v3822_v25 = vmul.f32 -1.442695, %v1428_v6  ;;  %v3823_v27 = vmul.f32 -1.442695, %v1469_v26  ;;  %v6414_v6 = vld [vmem:[#allocation7 + $0x30] sm:$0xff]  }
 0x7d3   :  { %4900 = vpow2.f32 %v3821_v22  ;;  %v6417_v14 = vld [vmem:[#allocation11 + $0x4] ss:$16 sps:$4 sm:$0xff]  }
 0x7d4   :  { %4902 = vpow2.f32 %v3822_v25 }
 0x7d5   :  { %4904 = vrsqrt.f32 %v1384_v21 }
 0x7d6   :  { %4906 = vpow2.f32 %v3823_v27 }
 0x7d7   :  { %4908 = vtanh.f32 %v1467_v28 }
 0x7dd   :  { %v4901_v29 = vpop.eup %4900 }
 0x7de   :  { %v4903_v30 = vpop.eup %4902  ;;  %v1476_v34 = vadd.f32 1.0, %v4901_v29 }
 0x7df   :  { %v4905_v36 = vpop.eup %4904  ;;  %v1482_v37 = vadd.f32 1.0, %v4903_v30 }
 0x7e0   :  { %4910 = vrcp.f32 %v1476_v34  ;;  %v1386_v38 = vmul.f32 %v4905_v36, %v6281_v40  ;;  %v4907_v41 = vpop.eup %4906  ;;  %v6388_v40 = vld [vmem:[#allocation7] sm:$0xff]  }
 0x7e1   :  { %4912 = vrcp.f32 %v1482_v37  ;;  %v4909_v42 = vpop.eup %4908  ;;  %v1489_v49 = vadd.f32 1.0, %v4907_v41 }
 0x7e2   :  { %v1387_v39 = vmul.f32 %v6288_v43, %v1386_v38 }
 0x7e3   :  { %4914 = vrcp.f32 %v1489_v49 }
 0x7e4   :  { %v1388_v46 = vadd.f32 %v6294_v45, %v1387_v39 }
 0x7ea   :  { %v4911_v44 = vpop.eup %4910 }
 0x7eb   :  { %v4913_v47 = vpop.eup %4912  ;;  %v1493_v48 = vmul.f32 %v4911_v44, %v4909_v42 }
 0x7ec   :  { %v1492_v50 = vmul.f32 %v4913_v47, %v1388_v46 }
 0x7ed   :  { %v4915_v7 = vpop.eup %4914 }
 0x7ee   :  { %v1494_v51 = vadd.f32 %v1493_v48, %v1492_v50 }
 0x7f0   :  { %4916 = vtanh.f32 %v1494_v51 }
 0x7fa   :  { %v4917_v35 = vpop.eup %4916 }
 0x7fb   :  { %v1496_v4 = vmul.f32 %v4917_v35, %v4915_v7 }
 0x7fd   :  { %1684 = vadd.xlane.f32.xlu0 %v1496_v4  ;;  %v1497_v1 = vpack.c.bf16 %v1496_v4, %v1496_v4 }
 0x7ff   :  { %4371 = vmatmul.mubr.bf16.vlgmr.msra.gmra.mrb[24].mxu1 %v1497_v1 }
 0x800   :  { %4393 = vmatpush3.bf16.msra.mxu1 %v6388_v40  ;;  %4406 = vmatprep.mubr.msk.bf16.mxu1 %vm5509_vm0, %v8026_v55 }
 0x801   :  { %1697 = vadd.xlane.f32.xlu0 %v1494_v51  ;;  %4394 = vmatprep.subr.bf16.mxu1 %v8026_v55 }
 0x804   :  { %4395 = vmatpush3.bf16.msra.mxu1 %v6394_v19 }
 0x805   :  { %4396 = vmatprep.subr.bf16.mxu1 %v8026_v55 }
 0x808   :  { %4397 = vmatpush3.bf16.msra.mxu1 %v6398_v53 }
 0x809   :  { %4398 = vmatprep.subr.bf16.mxu1 %v8026_v55 }
 0x80c   :  { %4399 = vmatpush3.bf16.msra.mxu1 %v6402_v3 }
 0x80d   :  { %4400 = vmatprep.subr.bf16.mxu1 %v8026_v55 }
 0x810   :  { %4401 = vmatpush3.bf16.msra.mxu1 %v6406_v59 }
 0x811   :  { %4402 = vmatprep.subr.bf16.mxu1 %v8026_v55 }
 0x814   :  { %4403 = vmatpush3.bf16.msra.mxu1 %v6410_v5 }
 0x815   :  { %4404 = vmatprep.subr.bf16.mxu1 %v8026_v55 }
 0x818   :  { %4405 = vmatpush3.bf16.msra.mxu1 %v6414_v6 }
 0x819   :  { %1712 = vmatprep.subr.bf16.mxu1 %v6417_v14 }
 0x88a   :  { %v1685_v28 = vpop.xlane.xlu0 %1684 }
 0x88b   :  { %v1686_v29 = vmul.f32 0.0078125, %v1685_v28 }
 0x88d   :  { %v1687_v36 = vsub.f32 %v1496_v4, %v1686_v29  ;;  %v6463_v29 = vld [vmem:[%s7676_s5 + $0x50] sm:$0xff]  }
 0x88e   :  { %v1698_v30 = vpop.xlane.xlu0 %1697 }
 0x88f   :  { %v1699_v37 = vmul.f32 0.0078125, %v1698_v30  ;;  %v1688_v41 = vmul.f32 %v1687_v36, %v1687_v36  ;;  %v6466_v30 = vld [vmem:[#allocation11 + $0x20] ss:$16 sps:$4 sm:$0xff]  }
 0x891   :  { %v6422_v39 = vsub.f32 %v1494_v51, %v1699_v37  ;;  %v6429_v51 = vld [vmem:[%s7976_s2] sm:$0xff]  ;;  %v6477_v37 = vld [vmem:[%s7676_s5 + $0x10] sm:$0xff]  }
 0x893   :  { %v1701_v42 = vmul.f32 %v6422_v39, %v6422_v39 }
 0x8d2   :  { %v1532_v20 = vpop.f32.mrb[24].mxu1 }
 0x8d3   :  { %v1533_v21 = vadd.f32 %v6220_v8, %v1532_v20  ;;  %v4372_v22 = vpop.f32.mrb[25].mxu1 }
 0x8d4   :  { %v1535_v23 = vpop.f32.mrb[26].mxu1 }
 0x8d5   :  { %v3824_v24 = vmul.f32 -1.442695, %v1533_v21  ;;  %v4373_v25 = vpop.f32.mrb[27].mxu1  ;;  %v6436_v21 = vld [vmem:[%s7676_s5] sm:$0xff]   ;;  %v6443_v23 = vld [vmem:[%s7676_s5 + $0x48] sm:$0xff]  }
 0x8d7   :  { %4918 = vpow2.f32 %v3824_v24  ;;  %v6446_v24 = vld [vmem:[#allocation11] ss:$16 sps:$4 sm:$0xff]  }
 0x8e1   :  { %v4919_v26 = vpop.eup %4918 }
 0x8e2   :  { %v1541_v27 = vadd.f32 1.0, %v4919_v26  ;;  %v6450_v26 = vld [vmem:[#allocation11 + $0x24] ss:$16 sps:$4 sm:$0xff]  }
 0x8e4   :  { %4920 = vrcp.f32 %v1541_v27  ;;  %v6456_v27 = vld [vmem:[%s7676_s5 + $0x8] sm:$0xff]  }
 0x8ee   :  { %v4921_v34 = vpop.eup %4920 }
 0x8ef   :  { %v1544_v38 = vsel %vm377_vm1, %v4921_v34, 0.0 }
 0x8f0   :  { %1545 = vadd.xlane.f32.xlu1 %v1544_v38  ;;  %v6484_v38 = vld [vmem:[%s7676_s5 + $0x58] sm:$0xff]  }
 0x8f4   :  { %1689 = vadd.xlane.f32.xlu1 %v1688_v41  ;;  %v6487_v41 = vld [vmem:[#allocation11 + $0x40] ss:$16 sps:$4 sm:$0xff]  }
 0x8f8   :  { %1702 = vadd.xlane.f32.xlu1 %v1701_v42  ;;  %v6490_v42 = vld [vmem:[#allocation11 + $0x64] ss:$16 sps:$4 sm:$0xff]  }
 0x97d   :  { %v1546_v44 = vpop.xlane.xlu1 %1545 }
 0x97e   :  { %v1547_v46 = vmul.f32 0.0625, %v1546_v44  ;;  %v6496_v44 = vld [vmem:[%s7676_s5 + $0x18] sm:$0xff]  }
 0x980   :  { %4922 = vrcp.f32 %v1547_v46  ;;  %v6502_v46 = vld [vmem:[%s7676_s5 + $0x60] sm:$0xff]  }
 0x981   :  { %v1690_v47 = vpop.xlane.xlu1 %1689 }
 0x982   :  { %v1691_v48 = vmul.f32 0.0078125, %v1690_v47  ;;  %v6505_v47 = vld [vmem:[#allocation11 + $0x60] ss:$16 sps:$4 sm:$0xff]  }
 0x983   :  { %8100 = vst [vmem:[#allocation27_spill] sm:$0xff] %v6505_v47 }
 0x984   :  { %v1692_v49 = vadd.f32 1e-05, %v1691_v48  ;;  %v6508_v48 = vld [vmem:[#allocation11 + $0x84] ss:$16 sps:$4 sm:$0xff]  }
 0x985   :  { %8101 = vst [vmem:[#allocation28_spill] sm:$0xff] %v6508_v48 }
 0x986   :  { %4924 = vrsqrt.f32 %v1692_v49  ;;  %v6514_v49 = vld [vmem:[%s7676_s5 + $0x20] sm:$0xff]  }
 0x987   :  { %8102 = vst [vmem:[#allocation29_spill] sm:$0xff] %v6514_v49 }
 0x98a   :  { %v4923_v50 = vpop.eup %4922 }
 0x98b   :  { %v1549_v7 = vmul.f32 %v4923_v50, %v4921_v34  ;;  %v6520_v50 = vld [vmem:[%s7676_s5 + $0x68] sm:$0xff]  }
 0x98c   :  { %8103 = vst [vmem:[#allocation30_spill] sm:$0xff] %v6520_v50 }
 0x98d   :  { %v1551_v35 = vpack.c.bf16 %v1549_v7, %v1549_v7  ;;  %v1550_v4 = vmul.f32 %v6429_v51, %v1549_v7  ;;  %v6523_v7 = vld [vmem:[#allocation11 + $0x80] ss:$16 sps:$4 sm:$0xff]  }
 0x98e   :  { %8104 = vst [vmem:[#allocation31_spill] sm:$0xff] %v6523_v7 }
 0x98f   :  { %4389 = vmatmul.mubr.msk.bf16.vlgmr.msra.gmra.mrb[20].mxu0 %vm377_vm1, %v1551_v35  ;;  %v1596_v1 = vpack.c.bf16 %v1550_v4, %v1550_v4  ;;  %v6526_v35 = vld [vmem:[#allocation11 + $0xa4] ss:$16 sps:$4 sm:$0xff]  }
 0x990   :  { %v4925_v20 = vpop.eup %4924  ;;  %4031 = vmatpush3.bf16.msra.mxu0 %v6436_v21  ;;  %8105 = vst [vmem:[#allocation32_spill] sm:$0xff] %v6526_v35  ;;  %v6532_v4 = vld [vmem:[%s7676_s5 + $0x28] sm:$0xff]  }
 0x991   :  { %4407 = vmatmul.mubr.msk.bf16.vlgmr.msra.gmra.mrb[28].mxu1 %vm377_vm1, %v1596_v1  ;;  %v1694_v22 = vmul.f32 %v4925_v20, %v1687_v36  ;;  %4032 = vmatprep.subr.bf16.mxu0 %v6443_v23  ;;  %v6471_v36 = vld [vmem:[#allocation11 + $0x44] ss:$16 sps:$4 sm:$0xff]   ;;  %8106 = vst [vmem:[#allocation33_spill] sm:$0xff] %v6532_v4  ;;  %v6538_v1 = vld [vmem:[%s7676_s5 + $0x70] sm:$0xff]  }
 0x992   :  { %1713 = vmatpush1.bf16.msra.mxu1 %v6446_v24  ;;  %8107 = vst [vmem:[#allocation34_spill] sm:$0xff] %v6538_v1  ;;  %v6541_v20 = vld [vmem:[#allocation11 + $0xa0] ss:$16 sps:$4 sm:$0xff]  }
 0x993   :  { %v1695_v25 = vmul.f32 %v6288_v43, %v1694_v22  ;;  %1714 = vmatprep.subr.bf16.mxu1 %v6450_v26  ;;  %8108 = vst [vmem:[#allocation35_spill] sm:$0xff] %v6541_v20  ;;  %v6544_v22 = vld [vmem:[#allocation11 + $0xc4] ss:$16 sps:$4 sm:$0xff]  }
 0x994   :  { %4033 = vmatpush3.bf16.msra.mxu0 %v6456_v27  ;;  %8109 = vst [vmem:[#allocation36_spill] sm:$0xff] %v6544_v22 }
 0x995   :  { %v1696_v28 = vadd.f32 %v6294_v45, %v1695_v25  ;;  %4034 = vmatprep.subr.bf16.mxu0 %v6463_v29  ;;  %v6550_v25 = vld [vmem:[%s7676_s5 + $0x30] sm:$0xff]  }
 0x996   :  { %1715 = vmatpush1.bf16.msra.mxu1 %v6466_v30  ;;  %8110 = vst [vmem:[#allocation67_spill] sm:$0xff] %v6550_v25 }
 0x997   :  { %v6469_v34 = vpack.c.bf16 %v1696_v28, %v1696_v28  ;;  %1716 = vmatprep.subr.bf16.mxu1 %v6471_v36  ;;  %v6556_v28 = vld [vmem:[%s7676_s5 + $0x78] sm:$0xff]  }
 0x998   :  { %4035 = vmatpush3.bf16.msra.mxu0 %v6477_v37  ;;  %8111 = vst [vmem:[#allocation69_spill] sm:$0xff] %v6556_v28 }
 0x999   :  { %1744 = vmatprep.mubr.bf16.mxu1 %v6469_v34  ;;  %4036 = vmatprep.subr.bf16.mxu0 %v6484_v38 }
 0x99a   :  { %1717 = vmatpush1.bf16.msra.mxu1 %v6487_v41 }
 0x99b   :  { %1718 = vmatprep.subr.bf16.mxu1 %v6490_v42 }
 0x99c   :  { %4037 = vmatpush3.bf16.msra.mxu0 %v6496_v44 }
 0x99d   :  { %4038 = vmatprep.subr.bf16.mxu0 %v6502_v46 }
 0x99e   :  { %1719 = vmatpush1.bf16.msra.mxu1 %v6505_v47 }
 0x99f   :  { %1720 = vmatprep.subr.bf16.mxu1 %v6508_v48 }
 0x9a0   :  { %4039 = vmatpush3.bf16.msra.mxu0 %v6514_v49 }
 0x9a1   :  { %4040 = vmatprep.subr.bf16.mxu0 %v6520_v50 }
 0x9a2   :  { %1721 = vmatpush1.bf16.msra.mxu1 %v6523_v7  ;;  %v6621_v7 = vld [vmem:[#allocation8] ss:$0 sm:$0xff] }
 0x9a3   :  { %1722 = vmatprep.subr.bf16.mxu1 %v6526_v35 }
 0x9a4   :  { %4041 = vmatpush3.bf16.msra.mxu0 %v6532_v4  ;;  %v6583_v4 = vld [vmem:[#allocation11 + $0x124] ss:$16 sps:$4 sm:$0xff]  }
 0x9a5   :  { %4042 = vmatprep.subr.bf16.mxu0 %v6538_v1  ;;  %v6559_v1 = vld [vmem:[#allocation11 + $0xc0] ss:$16 sps:$4 sm:$0xff]   ;;  %8119 = vst [vmem:[#allocation43_spill] sm:$0xff] %v6583_v4 }
 0x9a6   :  { %1723 = vmatpush1.bf16.msra.mxu1 %v6541_v20  ;;  %8112 = vst [vmem:[#allocation71_spill] sm:$0xff] %v6559_v1  ;;  %v6562_v20 = vld [vmem:[#allocation11 + $0xe4] ss:$16 sps:$4 sm:$0xff]  }
 0x9a7   :  { %1724 = vmatprep.subr.bf16.mxu1 %v6544_v22  ;;  %8113 = vst [vmem:[#allocation37_spill] sm:$0xff] %v6562_v20  ;;  %v6568_v22 = vld [vmem:[%s7676_s5 + $0x38] sm:$0xff]  }
 0x9a8   :  { %4043 = vmatpush3.bf16.msra.mxu0 %v6550_v25  ;;  %8114 = vst [vmem:[#allocation38_spill] sm:$0xff] %v6568_v22  ;;  %v6571_v25 = vld [vmem:[#allocation11 + $0xc] ss:$16 sps:$4 sm:$0xff]  }
 0x9a9   :  { %4044 = vmatprep.subr.bf16.mxu0 %v6556_v28  ;;  %8115 = vst [vmem:[#allocation39_spill] sm:$0xff] %v6571_v25  ;;  %v6574_v28 = vld [vmem:[#allocation11 + $0xe0] ss:$16 sps:$4 sm:$0xff]  }
 0x9aa   :  { %1725 = vmatpush1.bf16.msra.mxu1 %v6559_v1  ;;  %8116 = vst [vmem:[#allocation40_spill] sm:$0xff] %v6574_v28  ;;  %v6577_v1 = vld [vmem:[#allocation11 + $0x104] ss:$16 sps:$4 sm:$0xff]  }
 0x9ab   :  { %1726 = vmatprep.subr.bf16.mxu1 %v6562_v20  ;;  %8117 = vst [vmem:[#allocation41_spill] sm:$0xff] %v6577_v1  ;;  %v6580_v20 = vld [vmem:[#allocation11 + $0x100] ss:$16 sps:$4 sm:$0xff]  }
 0x9ac   :  { %4045 = vmatpush3.bf16.msra.mxu0 %v6568_v22  ;;  %8118 = vst [vmem:[#allocation42_spill] sm:$0xff] %v6580_v20  ;;  %v6586_v22 = vld [vmem:[#allocation11 + $0x120] ss:$16 sps:$4 sm:$0xff]  }
 0x9ad   :  { %1753 = vmatprep.subr.bf16.mxu0 %v6571_v25  ;;  %8120 = vst [vmem:[#allocation44_spill] sm:$0xff] %v6586_v22  ;;  %v6589_v25 = vld [vmem:[#allocation11 + $0x144] ss:$16 sps:$4 sm:$0xff]  }
 0x9ae   :  { %1727 = vmatpush1.bf16.msra.mxu1 %v6574_v28  ;;  %8121 = vst [vmem:[#allocation45_spill] sm:$0xff] %v6589_v25  ;;  %v6592_v28 = vld [vmem:[#allocation11 + $0x140] ss:$16 sps:$4 sm:$0xff]  }
 0x9af   :  { %1728 = vmatprep.subr.bf16.mxu1 %v6577_v1  ;;  %8122 = vst [vmem:[#allocation46_spill] sm:$0xff] %v6592_v28  ;;  %v6595_v1 = vld [vmem:[#allocation11 + $0x164] ss:$16 sps:$4 sm:$0xff]  }
 0x9b0   :  { %8123 = vst [vmem:[#allocation47_spill] sm:$0xff] %v6595_v1 }
 0x9b2   :  { %1729 = vmatpush1.bf16.msra.mxu1 %v6580_v20  ;;  %v6598_v20 = vld [vmem:[#allocation11 + $0x160] ss:$16 sps:$4 sm:$0xff]  }
 0x9b3   :  { %1730 = vmatprep.subr.bf16.mxu1 %v6583_v4  ;;  %8124 = vst [vmem:[#allocation48_spill] sm:$0xff] %v6598_v20  ;;  %v6601_v4 = vld [vmem:[#allocation11 + $0x184] ss:$16 sps:$4 sm:$0xff]  }
 0x9b4   :  { %8125 = vst [vmem:[#allocation49_spill] sm:$0xff] %v6601_v4 }
 0x9b6   :  { %1731 = vmatpush1.bf16.msra.mxu1 %v6586_v22  ;;  %v6604_v22 = vld [vmem:[#allocation11 + $0x180] ss:$16 sps:$4 sm:$0xff]  }
 0x9b7   :  { %1732 = vmatprep.subr.bf16.mxu1 %v6589_v25  ;;  %8126 = vst [vmem:[#allocation50_spill] sm:$0xff] %v6604_v22  ;;  %v6607_v25 = vld [vmem:[#allocation11 + $0x1a4] ss:$16 sps:$4 sm:$0xff]  }
 0x9b8   :  { %8127 = vst [vmem:[#allocation51_spill] sm:$0xff] %v6607_v25 }
 0x9ba   :  { %1733 = vmatpush1.bf16.msra.mxu1 %v6592_v28  ;;  %v6610_v28 = vld [vmem:[#allocation11 + $0x1a0] ss:$16 sps:$4 sm:$0xff]  }
 0x9bb   :  { %1734 = vmatprep.subr.bf16.mxu1 %v6595_v1  ;;  %8128 = vst [vmem:[#allocation52_spill] sm:$0xff] %v6610_v28 }
 0x9be   :  { %1735 = vmatpush1.bf16.msra.mxu1 %v6598_v20 }
 0x9bf   :  { %1736 = vmatprep.subr.bf16.mxu1 %v6601_v4 }
 0x9c2   :  { %1737 = vmatpush1.bf16.msra.mxu1 %v6604_v22  ;;  %v6618_v22 = vld [vmem:[#allocation5] ss:$0 sm:$0xff] }
 0x9c3   :  { %1738 = vmatprep.subr.bf16.mxu1 %v6607_v25 }
 0x9c6   :  { %1739 = vmatpush1.bf16.msra.mxu1 %v6610_v28 }
 0x9c7   :  { %1740 = vmatprep.subr.bf16.mxu1 %v6074_v18 }
 0x9ca   :  { %1741 = vmatpush1.bf16.msra.mxu1 %v8051_v31 }
 0x9cb   :  { %1742 = vmatprep.subr.bf16.mxu1 %v8052_v32 }
 0x9ce   :  { %1743 = vmatpush1.bf16.msra.mxu1 %v8053_v33 }
 0x9cf   :  { %4410 = vmatprep.subr.bf16.mxu1 %v8026_v55 }
 0xa62   :  { %v1589_v4 = vpop.f32.mrb[20].mxu0 }
 0xa63   :  { %v1590_v20 = vadd.f32 %v6618_v22, %v1589_v4  ;;  %v4390_v25 = vpop.f32.mrb[21].mxu0  ;;  %v6625_v4 = vld [vmem:[#allocation11 + $0x8] ss:$16 sps:$4 sm:$0xff]  }
 0xa64   :  { %v1592_v1 = vpop.f32.mrb[22].mxu0  ;;  %v1634_v35 = vpop.f32.mrb[28].mxu1  ;;  %v6652_v25 = vld [vmem:[#allocation11 + $0xac] ss:$16 sps:$4 sm:$0xff]  }
 0xa65   :  { %v1635_v18 = vadd.f32 %v6621_v7, %v1634_v35  ;;  %v4391_v28 = vpop.f32.mrb[23].mxu0  ;;  %v4408_v31 = vpop.f32.mrb[29].mxu1  ;;  %v1595_v50 = vmax.f32 %v1590_v20, 0.0  ;;  %v6628_v1 = vld [vmem:[#allocation11 + $0x2c] ss:$16 sps:$4 sm:$0xff]   ;;  %8134 = vst [vmem:[#allocation58_spill] sm:$0xff] %v6652_v25 }
 0xa66   :  { %v1637_v32 = vpop.f32.mrb[30].mxu1  ;;  %v6631_v35 = vld [vmem:[#allocation11 + $0x28] ss:$16 sps:$4 sm:$0xff]   ;;  %v6634_v20 = vld [vmem:[#allocation11 + $0x4c] ss:$16 sps:$4 sm:$0xff]  }
 0xa67   :  { %v1640_v49 = vmax.f32 %v1635_v18, 0.0  ;;  %v4409_v33 = vpop.f32.mrb[31].mxu1  ;;  %v1641_v47 = vpack.c.bf16 %v1595_v50, %v1595_v50  ;;  %v6649_v50 = vld [vmem:[#allocation11 + $0x88] ss:$16 sps:$4 sm:$0xff]   ;;  %v6658_v18 = vld [vmem:[#allocation11 + $0xcc] ss:$16 sps:$4 sm:$0xff]  }
 0xa68   :  { %8133 = vst [vmem:[#allocation57_spill] sm:$0xff] %v6649_v50  ;;  %v6655_v28 = vld [vmem:[#allocation11 + $0xa8] ss:$16 sps:$4 sm:$0xff]   ;;  %8136 = vst [vmem:[#allocation60_spill] sm:$0xff] %v6658_v18  ;;  %v6664_v32 = vld [vmem:[#allocation11 + $0xec] ss:$16 sps:$4 sm:$0xff]  }
 0xa69   :  { %v1642_v48 = vpack.c.bf16 %v1640_v49, %v1640_v49  ;;  %v6646_v49 = vld [vmem:[#allocation11 + $0x8c] ss:$16 sps:$4 sm:$0xff]   ;;  %8135 = vst [vmem:[#allocation59_spill] sm:$0xff] %v6655_v28  ;;  %v6661_v31 = vld [vmem:[#allocation11 + $0xc8] ss:$16 sps:$4 sm:$0xff]   ;;  %8138 = vst [vmem:[#allocation62_spill] sm:$0xff] %v6664_v32 }
 0xa6a   :  { %8132 = vst [vmem:[#allocation56_spill] sm:$0xff] %v6646_v49  ;;  %8137 = vst [vmem:[#allocation61_spill] sm:$0xff] %v6661_v31  ;;  %v6667_v33 = vld [vmem:[#allocation11 + $0xe8] ss:$16 sps:$4 sm:$0xff]  }
 0xa6b   :  { %1675 = vmatprep.mubr.bf16.mxu0 %v1642_v48  ;;  %v6637_v48 = vld [vmem:[#allocation11 + $0x48] ss:$16 sps:$4 sm:$0xff]   ;;  %8139 = vst [vmem:[#allocation63_spill] sm:$0xff] %v6667_v33 }
 0xa6c   :  { %1676 = vmatmul.mubr.bf16.vlgmr.msra.gmra.mrb[24].mxu0 %v1641_v47  ;;  %8129 = vst [vmem:[#allocation53_spill] sm:$0xff] %v6637_v48  ;;  %v6643_v47 = vld [vmem:[#allocation11 + $0x68] ss:$16 sps:$4 sm:$0xff]  }
 0xa6d   :  { %1785 = vmatprep.mubr.bf16.mxu0 %v6469_v34  ;;  %1754 = vmatpush1.bf16.msra.mxu0 %v6625_v4  ;;  %v6640_v34 = vld [vmem:[#allocation11 + $0x6c] ss:$16 sps:$4 sm:$0xff]   ;;  %8131 = vst [vmem:[#allocation55_spill] sm:$0xff] %v6643_v47 }
 0xa6e   :  { %1755 = vmatprep.subr.bf16.mxu0 %v6628_v1  ;;  %8130 = vst [vmem:[#allocation54_spill] sm:$0xff] %v6640_v34 }
 0xa71   :  { %1756 = vmatpush1.bf16.msra.mxu0 %v6631_v35 }
 0xa72   :  { %1757 = vmatprep.subr.bf16.mxu0 %v6634_v20 }
 0xa75   :  { %1758 = vmatpush1.bf16.msra.mxu0 %v6637_v48 }
 0xa76   :  { %1759 = vmatprep.subr.bf16.mxu0 %v6640_v34 }
 0xa79   :  { %1760 = vmatpush1.bf16.msra.mxu0 %v6643_v47 }
 0xa7a   :  { %1761 = vmatprep.subr.bf16.mxu0 %v6646_v49 }
 0xa7d   :  { %1762 = vmatpush1.bf16.msra.mxu0 %v6649_v50 }
 0xa7e   :  { %1763 = vmatprep.subr.bf16.mxu0 %v6652_v25  ;;  %v6670_v25 = vld [vmem:[#allocation11 + $0x10c] ss:$16 sps:$4 sm:$0xff]  }
 0xa7f   :  { %8140 = vst [vmem:[#allocation64_spill] sm:$0xff] %v6670_v25 }
 0xa81   :  { %1764 = vmatpush1.bf16.msra.mxu0 %v6655_v28  ;;  %v6673_v28 = vld [vmem:[#allocation11 + $0x108] ss:$16 sps:$4 sm:$0xff]  }
 0xa82   :  { %1765 = vmatprep.subr.bf16.mxu0 %v6658_v18  ;;  %8141 = vst [vmem:[#allocation65_spill] sm:$0xff] %v6673_v28  ;;  %v6676_v18 = vld [vmem:[#allocation11 + $0x12c] ss:$16 sps:$4 sm:$0xff]  }
 0xa83   :  { %8142 = vst [vmem:[#allocation66_spill] sm:$0xff] %v6676_v18 }
 0xa85   :  { %1766 = vmatpush1.bf16.msra.mxu0 %v6661_v31  ;;  %v6679_v31 = vld [vmem:[#allocation11 + $0x128] ss:$16 sps:$4 sm:$0xff]  }
 0xa86   :  { %1767 = vmatprep.subr.bf16.mxu0 %v6664_v32  ;;  %8143 = vst [vmem:[#allocation68_spill] sm:$0xff] %v6679_v31  ;;  %v6682_v32 = vld [vmem:[#allocation11 + $0x14c] ss:$16 sps:$4 sm:$0xff]  }
 0xa87   :  { %8144 = vst [vmem:[#allocation70_spill] sm:$0xff] %v6682_v32 }
 0xa89   :  { %1768 = vmatpush1.bf16.msra.mxu0 %v6667_v33  ;;  %v6685_v33 = vld [vmem:[#allocation11 + $0x148] ss:$16 sps:$4 sm:$0xff]  }
 0xa8a   :  { %1769 = vmatprep.subr.bf16.mxu0 %v6670_v25  ;;  %8145 = vst [vmem:[#allocation72_spill] sm:$0xff] %v6685_v33  ;;  %v6688_v25 = vld [vmem:[#allocation11 + $0x16c] ss:$16 sps:$4 sm:$0xff]  }
 0xa8b   :  { %8146 = vst [vmem:[#allocation73_spill] sm:$0xff] %v6688_v25 }
 0xa8d   :  { %1770 = vmatpush1.bf16.msra.mxu0 %v6673_v28  ;;  %v6691_v28 = vld [vmem:[#allocation11 + $0x168] ss:$16 sps:$4 sm:$0xff]  }
 0xa8e   :  { %1771 = vmatprep.subr.bf16.mxu0 %v6676_v18  ;;  %8147 = vst [vmem:[#allocation74_spill] sm:$0xff] %v6691_v28  ;;  %v6694_v18 = vld [vmem:[#allocation11 + $0x18c] ss:$16 sps:$4 sm:$0xff]  }
 0xa8f   :  { %8148 = vst [vmem:[#allocation75_spill] sm:$0xff] %v6694_v18 }
 0xa91   :  { %1772 = vmatpush1.bf16.msra.mxu0 %v6679_v31  ;;  %v6697_v31 = vld [vmem:[#allocation11 + $0x188] ss:$16 sps:$4 sm:$0xff]  }
 0xa92   :  { %1773 = vmatprep.subr.bf16.mxu0 %v6682_v32  ;;  %8149 = vst [vmem:[#allocation76_spill] sm:$0xff] %v6697_v31  ;;  %v6700_v32 = vld [vmem:[#allocation11 + $0x1ac] ss:$16 sps:$4 sm:$0xff]  }
 0xa93   :  { %8150 = vst [vmem:[#allocation77_spill] sm:$0xff] %v6700_v32 }
 0xa95   :  { %1774 = vmatpush1.bf16.msra.mxu0 %v6685_v33  ;;  %v6703_v33 = vld [vmem:[#allocation11 + $0x1a8] ss:$16 sps:$4 sm:$0xff]  }
 0xa96   :  { %1775 = vmatprep.subr.bf16.mxu0 %v6688_v25  ;;  %8151 = vst [vmem:[#allocation78_spill] sm:$0xff] %v6703_v33  ;;  %v6706_v25 = vld [vmem:[#allocation11 + $0x1cc] ss:$16 sps:$4 sm:$0xff]  }
 0xa97   :  { %8152 = vst [vmem:[#allocation79_spill] sm:$0xff] %v6706_v25 }
 0xa99   :  { %1776 = vmatpush1.bf16.msra.mxu0 %v6691_v28  ;;  %v6709_v28 = vld [vmem:[#allocation11 + $0x1c8] ss:$16 sps:$4 sm:$0xff]  }
 0xa9a   :  { %1777 = vmatprep.subr.bf16.mxu0 %v6694_v18  ;;  %8153 = vst [vmem:[#allocation80_spill] sm:$0xff] %v6709_v28  ;;  %v6712_v18 = vld [vmem:[#allocation11 + $0x1ec] ss:$16 sps:$4 sm:$0xff]  }
 0xa9b   :  { %8154 = vst [vmem:[#allocation24_spill] sm:$0xff] %v6712_v18 }
 0xa9d   :  { %1778 = vmatpush1.bf16.msra.mxu0 %v6697_v31  ;;  %v6715_v31 = vld [vmem:[#allocation11 + $0x1e8] ss:$16 sps:$4 sm:$0xff]  }
 0xa9e   :  { %1779 = vmatprep.subr.bf16.mxu0 %v6700_v32  ;;  %8155 = vst [vmem:[#allocation81_spill] sm:$0xff] %v6715_v31 }
 0xaa1   :  { %1780 = vmatpush1.bf16.msra.mxu0 %v6703_v33 }
 0xaa2   :  { %1781 = vmatprep.subr.bf16.mxu0 %v6706_v25  ;;  %v6719_v25 = vld [vmem:[#allocation10] ss:$0 sm:$0xff] }
 0xaa3   :  { %8156 = vst [vmem:[#allocation85_spill] sm:$0xff] %v6719_v25 }
 0xaa5   :  { %1782 = vmatpush1.bf16.msra.mxu0 %v6709_v28 }
 0xaa6   :  { %1783 = vmatprep.subr.bf16.mxu0 %v6712_v18 }
 0xaa9   :  { %1784 = vmatpush1.bf16.msra.mxu0 %v6715_v31 }
 0xaaa   :  { %4430 = vmatprep.subr.bf16.mxu0 %v8026_v55 }
 0xb3f   :  { %v4046_v32 = vpop.f32.mrb[24].mxu0 }
 0xb40   :  { %v4047_v33 = vpop.f32.mrb[25].mxu0 }
 0xb41   :  { %v4048_v50 = vadd.f32 %v4047_v33, %v4046_v32  ;;  %v4049_v49 = vpop.f32.mrb[26].mxu0 }
 0xb42   :  { %v4050_v47 = vpop.f32.mrb[27].mxu0 }
 0xb43   :  { %v1678_v34 = vadd.f32 %v6719_v25, %v4048_v50 }
 0xb45   :  { %v1683_v28 = vmax.f32 %v1678_v34, 0.0 }
 0xb47   :  { %v1710_v48 = vpack.c.bf16 %v1683_v28, %v1683_v28 }
 0xb49   :  { %1745 = vmatmul.mubr.bf16.vlgmr.msra.gmra.mrb[32].mxu1 %v1710_v48  ;;  %1786 = vmatmul.mubr.bf16.vlgmr.msra.gmra.mrb[28].mxu0 %v1710_v48 }
 0xb4a   :  { %4411 = vmatpush3.bf16.msra.mxu1 %v8088_v16  ;;  %4426 = vmatprep.mubr.msk.bf16.mxu1 %vm5509_vm0, %v8026_v55  ;;  %v6756_v16 = vld [vmem:[%s7676_s5 + $0x40] sm:$0xff]  }
 0xb4b   :  { %4412 = vmatprep.subr.bf16.mxu1 %v8026_v55  ;;  %4431 = vmatpush3.bf16.msra.mxu0 %v6337_v57  ;;  %8157 = vst [vmem:[#allocation86_spill] sm:$0xff] %v6756_v16 }
 0xb4c   :  { %4432 = vmatprep.subr.bf16.mxu0 %v8026_v55  ;;  %4444 = vmatprep.mubr.msk.bf16.mxu0 %vm5509_vm0, %v8026_v55 }
 0xb4e   :  { %4413 = vmatpush3.bf16.msra.mxu1 %v8089_v52  ;;  %v1703_v52 = vpop.xlane.xlu1 %1702 }
 0xb4f   :  { %4414 = vmatprep.subr.bf16.mxu1 %v8026_v55  ;;  %4433 = vmatpush3.bf16.msra.mxu0 %v6345_v63 }
 0xb50   :  { %4434 = vmatprep.subr.bf16.mxu0 %v8026_v55 }
 0xb52   :  { %4415 = vmatpush3.bf16.msra.mxu1 %v8090_v9  ;;  %v1704_v9 = vmul.f32 0.0078125, %v1703_v52 }
 0xb53   :  { %4416 = vmatprep.subr.bf16.mxu1 %v8026_v55  ;;  %4435 = vmatpush3.bf16.msra.mxu0 %v6351_v11 }
 0xb54   :  { %4436 = vmatprep.subr.bf16.mxu0 %v8026_v55  ;;  %v1705_v50 = vadd.f32 1e-05, %v1704_v9 }
 0xb56   :  { %4417 = vmatpush3.bf16.msra.mxu1 %v8091_v12 }
 0xb57   :  { %4418 = vmatprep.subr.bf16.mxu1 %v8026_v55  ;;  %4437 = vmatpush3.bf16.msra.mxu0 %v6357_v13 }
 0xb58   :  { %4438 = vmatprep.subr.bf16.mxu0 %v8026_v55 }
 0xb5a   :  { %4419 = vmatpush3.bf16.msra.mxu1 %v8092_v0 }
 0xb5b   :  { %4420 = vmatprep.subr.bf16.mxu1 %v8026_v55  ;;  %4439 = vmatpush3.bf16.msra.mxu0 %v6363_v60 }
 0xb5c   :  { %4440 = vmatprep.subr.bf16.mxu0 %v8026_v55 }
 0xb5e   :  { %4421 = vmatpush3.bf16.msra.mxu1 %v8093_v15 }
 0xb5f   :  { %4422 = vmatprep.subr.bf16.mxu1 %v8026_v55  ;;  %4441 = vmatpush3.bf16.msra.mxu0 %v6369_v54 }
 0xb60   :  { %4442 = vmatprep.subr.bf16.mxu0 %v8026_v55 }
 0xb62   :  { %4423 = vmatpush3.bf16.msra.mxu1 %v8095_v62 }
 0xb63   :  { %4424 = vmatprep.subr.bf16.mxu1 %v8026_v55  ;;  %4443 = vmatpush3.bf16.msra.mxu0 %v6375_v17 }
 0xb64   :  { %4077 = vmatprep.subr.bf16.mxu0 %v6756_v16 }
 0xb66   :  { %4425 = vmatpush3.bf16.msra.mxu1 %v8098_v58 }
 0xb67   :  { %4448 = vmatprep.subr.bf16.mxu1 %v8026_v55 }
 0xc1c   :  { %v1746_v12 = vpop.f32.mrb[32].mxu1  ;;  %v1787_v0 = vpop.f32.mrb[28].mxu0 }
 0xc1d   :  { %v1747_v15 = vadd.f32 %v1746_v12, %v8099_v2  ;;  %v1748_v62 = vpop.f32.mrb[33].mxu1  ;;  %v1789_v48 = vpop.f32.mrb[29].mxu0  ;;  %v1788_v17 = vadd.f32 %v1787_v0, %v6195_v61 }
 0xc1e   :  { %v1749_v34 = vadd.f32 %v1748_v62, %v6188_v56  ;;  %v1750_v47 = vpop.f32.mrb[34].mxu1  ;;  %v1791_v49 = vpop.f32.mrb[30].mxu0  ;;  %v1790_v58 = vadd.f32 %v1789_v48, %v6192_v10 }
 0xc1f   :  { %v3827_v28 = vmul.f32 -1.442695, %v1747_v15  ;;  %v1751_v32 = vpop.f32.mrb[35].mxu1  ;;  %v1792_v33 = vpop.f32.mrb[31].mxu0 }
 0xc20   :  { %v3828_v16 = vmul.f32 -1.442695, %v1749_v34  ;;  %v3829_v52 = vmul.f32 -1.442695, %v1790_v58 }
 0xc21   :  { %4926 = vpow2.f32 %v3827_v28 }
 0xc22   :  { %4928 = vpow2.f32 %v3828_v16 }
 0xc23   :  { %4930 = vrsqrt.f32 %v1705_v50 }
 0xc24   :  { %4932 = vpow2.f32 %v3829_v52 }
 0xc25   :  { %4934 = vtanh.f32 %v1788_v17 }
 0xc2b   :  { %v4927_v12 = vpop.eup %4926 }
 0xc2c   :  { %v4929_v2 = vpop.eup %4928  ;;  %v1797_v54 = vadd.f32 1.0, %v4927_v12 }
 0xc2d   :  { %v4931_v62 = vpop.eup %4930  ;;  %v1803_v47 = vadd.f32 1.0, %v4929_v2 }
 0xc2e   :  { %4936 = vrcp.f32 %v1797_v54  ;;  %v1707_v9 = vmul.f32 %v4931_v62, %v6422_v39  ;;  %v4933_v16 = vpop.eup %4932 }
 0xc2f   :  { %4938 = vrcp.f32 %v1803_v47  ;;  %v4935_v34 = vpop.eup %4934  ;;  %v1810_v28 = vadd.f32 1.0, %v4933_v16 }
 0xc30   :  { %v1708_v15 = vmul.f32 %v6288_v43, %v1707_v9 }
 0xc31   :  { %4940 = vrcp.f32 %v1810_v28 }
 0xc32   :  { %v1709_v48 = vadd.f32 %v6294_v45, %v1708_v15 }
 0xc38   :  { %v4937_v49 = vpop.eup %4936 }
 0xc39   :  { %v4939_v50 = vpop.eup %4938  ;;  %v1814_v0 = vmul.f32 %v4937_v49, %v4935_v34 }
 0xc3a   :  { %v1813_v32 = vmul.f32 %v4939_v50, %v1709_v48 }
 0xc3b   :  { %v4941_v17 = vpop.eup %4940 }
 0xc3c   :  { %v1815_v33 = vadd.f32 %v1814_v0, %v1813_v32 }
 0xc3e   :  { %4942 = vtanh.f32 %v1815_v33 }
 0xc48   :  { %v4943_v2 = vpop.eup %4942 }
 0xc49   :  { %v1817_v54 = vmul.f32 %v4943_v2, %v4941_v17 }
 0xc4b   :  { %2005 = vadd.xlane.f32.xlu1 %v1817_v54  ;;  %v1818_v58 = vpack.c.bf16 %v1817_v54, %v1817_v54 }
 0xc4d   :  { %4427 = vmatmul.mubr.bf16.vlgmr.msra.gmra.mrb[36].mxu1 %v1818_v58 }
 0xc4e   :  { %4449 = vmatpush3.bf16.msra.mxu1 %v6388_v40  ;;  %4462 = vmatprep.mubr.msk.bf16.mxu1 %vm5509_vm0, %v8026_v55 }
 0xc4f   :  { %2018 = vadd.xlane.f32.xlu1 %v1815_v33  ;;  %4450 = vmatprep.subr.bf16.mxu1 %v8026_v55 }
 0xc52   :  { %4451 = vmatpush3.bf16.msra.mxu1 %v6394_v19 }
 0xc53   :  { %4452 = vmatprep.subr.bf16.mxu1 %v8026_v55 }
 0xc56   :  { %4453 = vmatpush3.bf16.msra.mxu1 %v6398_v53 }
 0xc57   :  { %4454 = vmatprep.subr.bf16.mxu1 %v8026_v55 }
 0xc5a   :  { %4455 = vmatpush3.bf16.msra.mxu1 %v6402_v3 }
 0xc5b   :  { %4456 = vmatprep.subr.bf16.mxu1 %v8026_v55 }
 0xc5e   :  { %4457 = vmatpush3.bf16.msra.mxu1 %v6406_v59 }
 0xc5f   :  { %4458 = vmatprep.subr.bf16.mxu1 %v8026_v55 }
 0xc62   :  { %4459 = vmatpush3.bf16.msra.mxu1 %v6410_v5 }
 0xc63   :  { %4460 = vmatprep.subr.bf16.mxu1 %v8026_v55 }
 0xc66   :  { %4461 = vmatpush3.bf16.msra.mxu1 %v6414_v6 }
 0xc67   :  { %2033 = vmatprep.subr.bf16.mxu1 %v6417_v14 }
 0xcd8   :  { %v2006_v34 = vpop.xlane.xlu1 %2005 }
 0xcd9   :  { %v2007_v49 = vmul.f32 0.0078125, %v2006_v34 }
 0xcdb   :  { %v2008_v0 = vsub.f32 %v1817_v54, %v2007_v49 }
 0xcdc   :  { %v2019_v48 = vpop.xlane.xlu1 %2018 }
 0xcdd   :  { %v2020_v28 = vmul.f32 0.0078125, %v2019_v48 }
 0xcdf   :  { %v6786_v17 = vsub.f32 %v1815_v33, %v2020_v28  ;;  %v8161_v28 = vld [vmem:[#allocation30_spill] sm:$0xff] }
 0xce1   :  { %v2022_v2 = vmul.f32 %v6786_v17, %v6786_v17 }
 0xd20   :  { %v1853_v39 = vpop.f32.mrb[36].mxu1 }
 0xd21   :  { %v1854_v52 = vadd.f32 %v6220_v8, %v1853_v39  ;;  %v4428_v12 = vpop.f32.mrb[37].mxu1  ;;  %v2009_v8 = vmul.f32 %v2008_v0, %v2008_v0 }
 0xd22   :  { %v1856_v62 = vpop.f32.mrb[38].mxu1 }
 0xd23   :  { %v3830_v47 = vmul.f32 -1.442695, %v1854_v52  ;;  %v4429_v9 = vpop.f32.mrb[39].mxu1 }
 0xd25   :  { %4944 = vpow2.f32 %v3830_v47 }
 0xd2f   :  { %v4945_v15 = vpop.eup %4944 }
 0xd30   :  { %v1862_v16 = vadd.f32 1.0, %v4945_v15 }
 0xd32   :  { %4946 = vrcp.f32 %v1862_v16 }
 0xd3c   :  { %v4947_v50 = vpop.eup %4946 }
 0xd3d   :  { %v1865_v32 = vsel %vm377_vm1, %v4947_v50, 0.0 }
 0xd3e   :  { %1866 = vadd.xlane.f32.xlu0 %v1865_v32  ;;  %v8162_v32 = vld [vmem:[#allocation31_spill] sm:$0xff] }
 0xd42   :  { %2010 = vadd.xlane.f32.xlu0 %v2009_v8  ;;  %v8163_v8 = vld [vmem:[#allocation32_spill] sm:$0xff] }
 0xd46   :  { %2023 = vadd.xlane.f32.xlu0 %v2022_v2  ;;  %v8164_v2 = vld [vmem:[#allocation33_spill] sm:$0xff] }
 0xdcb   :  { %v1867_v58 = vpop.xlane.xlu0 %1866 }
 0xdcc   :  { %v1868_v39 = vmul.f32 0.0625, %v1867_v58  ;;  %v8165_v58 = vld [vmem:[#allocation34_spill] sm:$0xff] }
 0xdce   :  { %4948 = vrcp.f32 %v1868_v39  ;;  %v8166_v39 = vld [vmem:[#allocation35_spill] sm:$0xff] }
 0xdcf   :  { %v2011_v52 = vpop.xlane.xlu0 %2010 }
 0xdd0   :  { %v2012_v12 = vmul.f32 0.0078125, %v2011_v52  ;;  %v8167_v52 = vld [vmem:[#allocation36_spill] sm:$0xff] }
 0xdd2   :  { %v2013_v62 = vadd.f32 1e-05, %v2012_v12  ;;  %v8168_v12 = vld [vmem:[#allocation67_spill] sm:$0xff] }
 0xdd4   :  { %4950 = vrsqrt.f32 %v2013_v62  ;;  %v8169_v62 = vld [vmem:[#allocation69_spill] sm:$0xff] }
 0xdd8   :  { %v4949_v54 = vpop.eup %4948 }
 0xdd9   :  { %v1870_v47 = vmul.f32 %v4949_v54, %v4947_v50  ;;  %v8170_v54 = vld [vmem:[#allocation71_spill] sm:$0xff] }
 0xddb   :  { %v1872_v9 = vpack.c.bf16 %v1870_v47, %v1870_v47  ;;  %v1871_v15 = vmul.f32 %v6429_v51, %v1870_v47  ;;  %v8171_v47 = vld [vmem:[#allocation37_spill] sm:$0xff] }
 0xddd   :  { %4445 = vmatmul.mubr.msk.bf16.vlgmr.msra.gmra.mrb[32].mxu0 %vm377_vm1, %v1872_v9  ;;  %v1917_v33 = vpack.c.bf16 %v1871_v15, %v1871_v15  ;;  %v8172_v9 = vld [vmem:[#allocation38_spill] sm:$0xff]  ;;  %v8173_v15 = vld [vmem:[#allocation39_spill] sm:$0xff] }
 0xdde   :  { %v4951_v16 = vpop.eup %4950  ;;  %4078 = vmatpush3.bf16.msra.mxu0 %v6436_v21 }
 0xddf   :  { %4463 = vmatmul.mubr.msk.bf16.vlgmr.msra.gmra.mrb[40].mxu1 %vm377_vm1, %v1917_v33  ;;  %v2015_v34 = vmul.f32 %v4951_v16, %v2008_v0  ;;  %4079 = vmatprep.subr.bf16.mxu0 %v6443_v23  ;;  %v8160_v0 = vld [vmem:[#allocation29_spill] sm:$0xff]  ;;  %v8174_v33 = vld [vmem:[#allocation40_spill] sm:$0xff] }
 0xde0   :  { %2034 = vmatpush1.bf16.msra.mxu1 %v6446_v24  ;;  %v8175_v16 = vld [vmem:[#allocation41_spill] sm:$0xff] }
 0xde1   :  { %v2016_v49 = vmul.f32 %v6288_v43, %v2015_v34  ;;  %2035 = vmatprep.subr.bf16.mxu1 %v6450_v26  ;;  %v8158_v43 = vld [vmem:[#allocation27_spill] sm:$0xff]  ;;  %v8176_v34 = vld [vmem:[#allocation42_spill] sm:$0xff] }
 0xde2   :  { %4080 = vmatpush3.bf16.msra.mxu0 %v6456_v27 }
 0xde3   :  { %v2017_v48 = vadd.f32 %v6294_v45, %v2016_v49  ;;  %4081 = vmatprep.subr.bf16.mxu0 %v6463_v29  ;;  %v8159_v45 = vld [vmem:[#allocation28_spill] sm:$0xff]  ;;  %v8177_v49 = vld [vmem:[#allocation43_spill] sm:$0xff] }
 0xde4   :  { %2036 = vmatpush1.bf16.msra.mxu1 %v6466_v30 }
 0xde5   :  { %v2032_v50 = vpack.c.bf16 %v2017_v48, %v2017_v48  ;;  %2037 = vmatprep.subr.bf16.mxu1 %v6471_v36  ;;  %v8178_v48 = vld [vmem:[#allocation44_spill] sm:$0xff] }
 0xde6   :  { %4082 = vmatpush3.bf16.msra.mxu0 %v6477_v37 }
 0xde7   :  { %2065 = vmatprep.mubr.bf16.mxu1 %v2032_v50  ;;  %4083 = vmatprep.subr.bf16.mxu0 %v6484_v38 }
 0xde8   :  { %2038 = vmatpush1.bf16.msra.mxu1 %v6487_v41 }
 0xde9   :  { %2039 = vmatprep.subr.bf16.mxu1 %v6490_v42 }
 0xdea   :  { %4084 = vmatpush3.bf16.msra.mxu0 %v6496_v44 }
 0xdeb   :  { %4085 = vmatprep.subr.bf16.mxu0 %v6502_v46 }
 0xdec   :  { %2040 = vmatpush1.bf16.msra.mxu1 %v8158_v43 }
 0xded   :  { %2041 = vmatprep.subr.bf16.mxu1 %v8159_v45 }
 0xdee   :  { %4086 = vmatpush3.bf16.msra.mxu0 %v8160_v0 }
 0xdef   :  { %4087 = vmatprep.subr.bf16.mxu0 %v8161_v28 }
 0xdf0   :  { %2042 = vmatpush1.bf16.msra.mxu1 %v8162_v32 }
 0xdf1   :  { %2043 = vmatprep.subr.bf16.mxu1 %v8163_v8 }
 0xdf2   :  { %4088 = vmatpush3.bf16.msra.mxu0 %v8164_v2 }
 0xdf3   :  { %4089 = vmatprep.subr.bf16.mxu0 %v8165_v58 }
 0xdf4   :  { %2044 = vmatpush1.bf16.msra.mxu1 %v8166_v39 }
 0xdf5   :  { %2045 = vmatprep.subr.bf16.mxu1 %v8167_v52 }
 0xdf6   :  { %4090 = vmatpush3.bf16.msra.mxu0 %v8168_v12  ;;  %v8179_v12 = vld [vmem:[#allocation45_spill] sm:$0xff] }
 0xdf7   :  { %4091 = vmatprep.subr.bf16.mxu0 %v8169_v62  ;;  %v8180_v62 = vld [vmem:[#allocation46_spill] sm:$0xff] }
 0xdf8   :  { %2046 = vmatpush1.bf16.msra.mxu1 %v8170_v54  ;;  %v8181_v54 = vld [vmem:[#allocation47_spill] sm:$0xff] }
 0xdf9   :  { %2047 = vmatprep.subr.bf16.mxu1 %v8171_v47  ;;  %v8182_v47 = vld [vmem:[#allocation48_spill] sm:$0xff] }
 0xdfa   :  { %4092 = vmatpush3.bf16.msra.mxu0 %v8172_v9  ;;  %v8183_v9 = vld [vmem:[#allocation49_spill] sm:$0xff] }
 0xdfb   :  { %2074 = vmatprep.subr.bf16.mxu0 %v8173_v15  ;;  %v8184_v15 = vld [vmem:[#allocation50_spill] sm:$0xff] }
 0xdfc   :  { %2048 = vmatpush1.bf16.msra.mxu1 %v8174_v33  ;;  %v8185_v33 = vld [vmem:[#allocation51_spill] sm:$0xff] }
 0xdfd   :  { %2049 = vmatprep.subr.bf16.mxu1 %v8175_v16  ;;  %v8186_v16 = vld [vmem:[#allocation52_spill] sm:$0xff] }
 0xe00   :  { %2050 = vmatpush1.bf16.msra.mxu1 %v8176_v34  ;;  %v6838_v34 = vld [vmem:[#allocation11 + $0x1c4] ss:$16 sps:$4 sm:$0xff]  }
 0xe01   :  { %2051 = vmatprep.subr.bf16.mxu1 %v8177_v49  ;;  %8187 = vst [vmem:[#allocation27_spill] sm:$0xff] %v6838_v34 }
 0xe04   :  { %2052 = vmatpush1.bf16.msra.mxu1 %v8178_v48  ;;  %v6841_v48 = vld [vmem:[#allocation11 + $0x1c0] ss:$16 sps:$4 sm:$0xff]  }
 0xe05   :  { %2053 = vmatprep.subr.bf16.mxu1 %v8179_v12  ;;  %8188 = vst [vmem:[#allocation28_spill] sm:$0xff] %v6841_v48 }
 0xe08   :  { %2054 = vmatpush1.bf16.msra.mxu1 %v8180_v62  ;;  %v6844_v62 = vld [vmem:[#allocation11 + $0x1e4] ss:$16 sps:$4 sm:$0xff]  }
 0xe09   :  { %2055 = vmatprep.subr.bf16.mxu1 %v8181_v54  ;;  %8189 = vst [vmem:[#allocation29_spill] sm:$0xff] %v6844_v62 }
 0xe0c   :  { %2056 = vmatpush1.bf16.msra.mxu1 %v8182_v47  ;;  %v6847_v47 = vld [vmem:[#allocation11 + $0x1e0] ss:$16 sps:$4 sm:$0xff]  }
 0xe0d   :  { %2057 = vmatprep.subr.bf16.mxu1 %v8183_v9 }
 0xe10   :  { %2058 = vmatpush1.bf16.msra.mxu1 %v8184_v15 }
 0xe11   :  { %2059 = vmatprep.subr.bf16.mxu1 %v8185_v33 }
 0xe14   :  { %2060 = vmatpush1.bf16.msra.mxu1 %v8186_v16 }
 0xe15   :  { %2061 = vmatprep.subr.bf16.mxu1 %v6838_v34 }
 0xe18   :  { %2062 = vmatpush1.bf16.msra.mxu1 %v6841_v48 }
 0xe19   :  { %2063 = vmatprep.subr.bf16.mxu1 %v6844_v62 }
 0xe1c   :  { %2064 = vmatpush1.bf16.msra.mxu1 %v6847_v47 }
 0xe1d   :  { %4466 = vmatprep.subr.bf16.mxu1 %v8026_v55 }
 0xeb0   :  { %v1910_v33 = vpop.f32.mrb[32].mxu0 }
 0xeb1   :  { %v1911_v16 = vadd.f32 %v6618_v22, %v1910_v33  ;;  %v4446_v15 = vpop.f32.mrb[33].mxu0  ;;  %v8200_v33 = vld [vmem:[#allocation63_spill] sm:$0xff] }
 0xeb2   :  { %v1913_v9 = vpop.f32.mrb[34].mxu0  ;;  %v1955_v34 = vpop.f32.mrb[40].mxu1  ;;  %v8199_v15 = vld [vmem:[#allocation62_spill] sm:$0xff] }
 0xeb3   :  { %v1956_v54 = vadd.f32 %v6621_v7, %v1955_v34  ;;  %v4447_v12 = vpop.f32.mrb[35].mxu0  ;;  %v4464_v48 = vpop.f32.mrb[41].mxu1  ;;  %v1916_v49 = vmax.f32 %v1911_v16, 0.0  ;;  %v8190_v9 = vld [vmem:[#allocation53_spill] sm:$0xff]  ;;  %v8201_v16 = vld [vmem:[#allocation64_spill] sm:$0xff] }
 0xeb4   :  { %v1958_v52 = vpop.f32.mrb[42].mxu1  ;;  %v8191_v12 = vld [vmem:[#allocation54_spill] sm:$0xff]  ;;  %v8202_v34 = vld [vmem:[#allocation65_spill] sm:$0xff]  ;;  %v8204_v48 = vld [vmem:[#allocation68_spill] sm:$0xff] }
 0xeb5   :  { %v1961_v39 = vmax.f32 %v1956_v54, 0.0  ;;  %v4465_v62 = vpop.f32.mrb[43].mxu1  ;;  %v1962_v2 = vpack.c.bf16 %v1916_v49, %v1916_v49  ;;  %v8192_v52 = vld [vmem:[#allocation55_spill] sm:$0xff]  ;;  %v8198_v54 = vld [vmem:[#allocation61_spill] sm:$0xff]  ;;  %v8203_v49 = vld [vmem:[#allocation66_spill] sm:$0xff] }
 0xeb6   :  { %v8193_v62 = vld [vmem:[#allocation56_spill] sm:$0xff] }
 0xeb7   :  { %v1963_v58 = vpack.c.bf16 %v1961_v39, %v1961_v39  ;;  %v8194_v39 = vld [vmem:[#allocation57_spill] sm:$0xff] }
 0xeb9   :  { %1996 = vmatprep.mubr.bf16.mxu0 %v1963_v58  ;;  %v8197_v58 = vld [vmem:[#allocation60_spill] sm:$0xff] }
 0xeba   :  { %1997 = vmatmul.mubr.bf16.vlgmr.msra.gmra.mrb[36].mxu0 %v1962_v2  ;;  %v8195_v2 = vld [vmem:[#allocation58_spill] sm:$0xff] }
 0xebb   :  { %2106 = vmatprep.mubr.bf16.mxu0 %v2032_v50  ;;  %2075 = vmatpush1.bf16.msra.mxu0 %v6625_v4  ;;  %v8196_v50 = vld [vmem:[#allocation59_spill] sm:$0xff] }
 0xebc   :  { %2076 = vmatprep.subr.bf16.mxu0 %v6628_v1 }
 0xebf   :  { %2077 = vmatpush1.bf16.msra.mxu0 %v6631_v35 }
 0xec0   :  { %2078 = vmatprep.subr.bf16.mxu0 %v6634_v20 }
 0xec3   :  { %2079 = vmatpush1.bf16.msra.mxu0 %v8190_v9 }
 0xec4   :  { %2080 = vmatprep.subr.bf16.mxu0 %v8191_v12 }
 0xec7   :  { %2081 = vmatpush1.bf16.msra.mxu0 %v8192_v52 }
 0xec8   :  { %2082 = vmatprep.subr.bf16.mxu0 %v8193_v62 }
 0xecb   :  { %2083 = vmatpush1.bf16.msra.mxu0 %v8194_v39  ;;  %v8205_v39 = vld [vmem:[#allocation70_spill] sm:$0xff] }
 0xecc   :  { %2084 = vmatprep.subr.bf16.mxu0 %v8195_v2  ;;  %v8206_v2 = vld [vmem:[#allocation72_spill] sm:$0xff] }
 0xecf   :  { %2085 = vmatpush1.bf16.msra.mxu0 %v8196_v50  ;;  %v8207_v50 = vld [vmem:[#allocation73_spill] sm:$0xff] }
 0xed0   :  { %2086 = vmatprep.subr.bf16.mxu0 %v8197_v58  ;;  %v8208_v58 = vld [vmem:[#allocation74_spill] sm:$0xff] }
 0xed3   :  { %2087 = vmatpush1.bf16.msra.mxu0 %v8198_v54  ;;  %v8209_v54 = vld [vmem:[#allocation75_spill] sm:$0xff] }
 0xed4   :  { %2088 = vmatprep.subr.bf16.mxu0 %v8199_v15  ;;  %v8210_v15 = vld [vmem:[#allocation76_spill] sm:$0xff] }
 0xed7   :  { %2089 = vmatpush1.bf16.msra.mxu0 %v8200_v33  ;;  %v8211_v33 = vld [vmem:[#allocation77_spill] sm:$0xff] }
 0xed8   :  { %2090 = vmatprep.subr.bf16.mxu0 %v8201_v16  ;;  %v8212_v16 = vld [vmem:[#allocation78_spill] sm:$0xff] }
 0xedb   :  { %2091 = vmatpush1.bf16.msra.mxu0 %v8202_v34  ;;  %v8213_v34 = vld [vmem:[#allocation79_spill] sm:$0xff] }
 0xedc   :  { %2092 = vmatprep.subr.bf16.mxu0 %v8203_v49  ;;  %v8214_v49 = vld [vmem:[#allocation80_spill] sm:$0xff] }
 0xedf   :  { %2093 = vmatpush1.bf16.msra.mxu0 %v8204_v48 }
 0xee0   :  { %2094 = vmatprep.subr.bf16.mxu0 %v8205_v39 }
 0xee3   :  { %2095 = vmatpush1.bf16.msra.mxu0 %v8206_v2 }
 0xee4   :  { %2096 = vmatprep.subr.bf16.mxu0 %v8207_v50 }
 0xee7   :  { %2097 = vmatpush1.bf16.msra.mxu0 %v8208_v58 }
 0xee8   :  { %2098 = vmatprep.subr.bf16.mxu0 %v8209_v54 }
 0xeeb   :  { %2099 = vmatpush1.bf16.msra.mxu0 %v8210_v15 }
 0xeec   :  { %2100 = vmatprep.subr.bf16.mxu0 %v8211_v33 }
 0xeef   :  { %2101 = vmatpush1.bf16.msra.mxu0 %v8212_v16 }
 0xef0   :  { %2102 = vmatprep.subr.bf16.mxu0 %v8213_v34 }
 0xef3   :  { %2103 = vmatpush1.bf16.msra.mxu0 %v8214_v49  ;;  %v6889_v49 = vld [vmem:[%s7682_s11] sm:$0xff]  }
 0xef4   :  { %2104 = vmatprep.subr.bf16.mxu0 %v6712_v18  ;;  %8215 = vst [vmem:[#allocation30_spill] sm:$0xff] %v6889_v49 }
 0xef7   :  { %2105 = vmatpush1.bf16.msra.mxu0 %v6715_v31 }
 0xef8   :  { %4486 = vmatprep.subr.bf16.mxu0 %v8026_v55 }
 0xf8d   :  { %v4093_v50 = vpop.f32.mrb[36].mxu0 }
 0xf8e   :  { %v4094_v58 = vpop.f32.mrb[37].mxu0 }
 0xf8f   :  { %v4095_v2 = vadd.f32 %v4094_v58, %v4093_v50  ;;  %v4096_v54 = vpop.f32.mrb[38].mxu0  ;;  %v6947_v50 = vld [vmem:[%s7682_s11 + $0x30] sm:$0xff]  }
 0xf90   :  { %v4097_v39 = vpop.f32.mrb[39].mxu0  ;;  %8222 = vst [vmem:[#allocation56_spill] sm:$0xff] %v6947_v50  ;;  %v8224_v58 = vld [vmem:[#allocation86_spill] sm:$0xff]  ;;  %v6956_v54 = vld [vmem:[%s7682_s11 + $0x38] sm:$0xff]  }
 0xf91   :  { %v1999_v15 = vadd.f32 %v6719_v25, %v4095_v2  ;;  %v6902_v39 = vld [vmem:[%s7682_s11 + $0x8] sm:$0xff]   ;;  %v6920_v2 = vld [vmem:[%s7682_s11 + $0x18] sm:$0xff]  }
 0xf92   :  { %8216 = vst [vmem:[#allocation31_spill] sm:$0xff] %v6902_v39  ;;  %8218 = vst [vmem:[#allocation53_spill] sm:$0xff] %v6920_v2 }
 0xf93   :  { %v2004_v33 = vmax.f32 %v1999_v15, 0.0  ;;  %v2024_v15 = vpop.xlane.xlu0 %2023 }
 0xf95   :  { %v2031_v48 = vpack.c.bf16 %v2004_v33, %v2004_v33  ;;  %v2025_v33 = vmul.f32 0.0078125, %v2024_v15 }
 0xf97   :  { %2066 = vmatmul.mubr.bf16.vlgmr.msra.gmra.mrb[44].mxu1 %v2031_v48  ;;  %2107 = vmatmul.mubr.bf16.vlgmr.msra.gmra.mrb[40].mxu0 %v2031_v48 }
 0xf98   :  { %4467 = vmatpush3.bf16.msra.mxu1 %v6889_v49  ;;  %4482 = vmatprep.mubr.msk.bf16.mxu1 %vm5509_vm0, %v8026_v55 }
 0xf99   :  { %4468 = vmatprep.subr.bf16.mxu1 %v8026_v55  ;;  %4487 = vmatpush3.bf16.msra.mxu0 %v6337_v57  ;;  %v6911_v57 = vld [vmem:[%s7682_s11 + $0x10] sm:$0xff]  }
 0xf9a   :  { %4488 = vmatprep.subr.bf16.mxu0 %v8026_v55  ;;  %4500 = vmatprep.mubr.msk.bf16.mxu0 %vm5509_vm0, %v8026_v55  ;;  %8217 = vst [vmem:[#allocation32_spill] sm:$0xff] %v6911_v57 }
 0xf9c   :  { %4469 = vmatpush3.bf16.msra.mxu1 %v6902_v39  ;;  %v2026_v39 = vadd.f32 1e-05, %v2025_v33 }
 0xf9d   :  { %4470 = vmatprep.subr.bf16.mxu1 %v8026_v55  ;;  %4489 = vmatpush3.bf16.msra.mxu0 %v6345_v63  ;;  %v6929_v63 = vld [vmem:[%s7682_s11 + $0x20] sm:$0xff]  }
 0xf9e   :  { %4490 = vmatprep.subr.bf16.mxu0 %v8026_v55  ;;  %8219 = vst [vmem:[#allocation54_spill] sm:$0xff] %v6929_v63 }
 0xfa0   :  { %4471 = vmatpush3.bf16.msra.mxu1 %v6911_v57 }
 0xfa1   :  { %4472 = vmatprep.subr.bf16.mxu1 %v8026_v55  ;;  %4491 = vmatpush3.bf16.msra.mxu0 %v6351_v11  ;;  %v6938_v11 = vld [vmem:[%s7682_s11 + $0x28] sm:$0xff]  }
 0xfa2   :  { %4492 = vmatprep.subr.bf16.mxu0 %v8026_v55  ;;  %8220 = vst [vmem:[#allocation55_spill] sm:$0xff] %v6938_v11 }
 0xfa4   :  { %4473 = vmatpush3.bf16.msra.mxu1 %v6920_v2 }
 0xfa5   :  { %4474 = vmatprep.subr.bf16.mxu1 %v8026_v55  ;;  %4493 = vmatpush3.bf16.msra.mxu0 %v6357_v13  ;;  %v8221_v13 = vld [vmem:[#allocation25_spill] sm:$0xff] }
 0xfa6   :  { %4494 = vmatprep.subr.bf16.mxu0 %v8026_v55  ;;  %8225 = vst [vmem:[#allocation25_spill] sm:$0xff] %v6956_v54 }
 0xfa8   :  { %4475 = vmatpush3.bf16.msra.mxu1 %v6929_v63 }
 0xfa9   :  { %4476 = vmatprep.subr.bf16.mxu1 %v8026_v55  ;;  %4495 = vmatpush3.bf16.msra.mxu0 %v6363_v60  ;;  %v8223_v60 = vld [vmem:[#allocation26_spill] sm:$0xff] }
 0xfaa   :  { %4496 = vmatprep.subr.bf16.mxu0 %v8026_v55 }
 0xfac   :  { %4477 = vmatpush3.bf16.msra.mxu1 %v6938_v11 }
 0xfad   :  { %4478 = vmatprep.subr.bf16.mxu1 %v8026_v55  ;;  %4497 = vmatpush3.bf16.msra.mxu0 %v8221_v13 }
 0xfae   :  { %4498 = vmatprep.subr.bf16.mxu0 %v8026_v55 }
 0xfb0   :  { %4479 = vmatpush3.bf16.msra.mxu1 %v6947_v50  ;;  %v8226_v50 = vld [vmem:[#allocation84_spill] sm:$0xff] }
 0xfb1   :  { %4480 = vmatprep.subr.bf16.mxu1 %v8026_v55  ;;  %4499 = vmatpush3.bf16.msra.mxu0 %v8223_v60 }
 0xfb2   :  { %4124 = vmatprep.subr.bf16.mxu0 %v8224_v58 }
 0xfb4   :  { %4481 = vmatpush3.bf16.msra.mxu1 %v6956_v54 }
 0xfb5   :  { %4504 = vmatprep.subr.bf16.mxu1 %v8026_v55 }
0x106a   :  { %v2067_v48 = vpop.f32.mrb[44].mxu1  ;;  %v2108_v13 = vpop.f32.mrb[40].mxu0 }
0x106b   :  { %v2068_v11 = vadd.f32 %v2067_v48, %v8226_v50  ;;  %v2069_v63 = vpop.f32.mrb[45].mxu1  ;;  %v2110_v2 = vpop.f32.mrb[41].mxu0  ;;  %v2109_v34 = vadd.f32 %v2108_v13, %v6195_v61 }
0x106c   :  { %v2070_v60 = vadd.f32 %v2069_v63, %v6188_v56  ;;  %v2071_v58 = vpop.f32.mrb[46].mxu1  ;;  %v2112_v57 = vpop.f32.mrb[42].mxu0  ;;  %v2111_v15 = vadd.f32 %v2110_v2, %v6192_v10 }
0x106d   :  { %v3833_v49 = vmul.f32 -1.442695, %v2068_v11  ;;  %v2072_v25 = vpop.f32.mrb[47].mxu1  ;;  %v2113_v31 = vpop.f32.mrb[43].mxu0  ;;  %v6974_v11 = vld [vmem:[%s7681_s10] ss:$0 sm:$0xff] }
0x106e   :  { %v3834_v18 = vmul.f32 -1.442695, %v2070_v60  ;;  %v3835_v54 = vmul.f32 -1.442695, %v2111_v15 }
0x106f   :  { %4952 = vpow2.f32 %v3833_v49 }
0x1070   :  { %4954 = vpow2.f32 %v3834_v18  ;;  %v6968_v18 = vld [vmem:[%s7680_s9] ss:$0 sm:$0xff] }
0x1071   :  { %4956 = vrsqrt.f32 %v2026_v39 }
0x1072   :  { %4958 = vpow2.f32 %v3835_v54 }
0x1073   :  { %4960 = vtanh.f32 %v2109_v34 }
0x1079   :  { %v4953_v48 = vpop.eup %4952 }
0x107a   :  { %v4955_v50 = vpop.eup %4954  ;;  %v2118_v16 = vadd.f32 1.0, %v4953_v48 }
0x107b   :  { %v4957_v63 = vpop.eup %4956  ;;  %v2124_v57 = vadd.f32 1.0, %v4955_v50 }
0x107c   :  { %4962 = vrcp.f32 %v2118_v16  ;;  %v2028_v25 = vmul.f32 %v4957_v63, %v6786_v17  ;;  %v4959_v49 = vpop.eup %4958 }
0x107d   :  { %4964 = vrcp.f32 %v2124_v57  ;;  %v4961_v39 = vpop.eup %4960  ;;  %v2131_v17 = vadd.f32 1.0, %v4959_v49 }
0x107e   :  { %v2029_v31 = vmul.f32 %v6968_v18, %v2028_v25 }
0x107f   :  { %4966 = vrcp.f32 %v2131_v17 }
0x1080   :  { %v2030_v16 = vadd.f32 %v6974_v11, %v2029_v31 }
0x1086   :  { %v4963_v2 = vpop.eup %4962 }
0x1087   :  { %v4965_v34 = vpop.eup %4964  ;;  %v2135_v50 = vmul.f32 %v4963_v2, %v4961_v39 }
0x1088   :  { %v2134_v58 = vmul.f32 %v4965_v34, %v2030_v16 }
0x1089   :  { %v4967_v33 = vpop.eup %4966 }
0x108a   :  { %v2136_v54 = vadd.f32 %v2135_v50, %v2134_v58 }
0x108c   :  { %4968 = vtanh.f32 %v2136_v54 }
0x1096   :  { %v4969_v13 = vpop.eup %4968 }
0x1097   :  { %v2138_v60 = vmul.f32 %v4969_v13, %v4967_v33 }
0x1099   :  { %2326 = vadd.xlane.f32.xlu0 %v2138_v60  ;;  %v2139_v15 = vpack.c.bf16 %v2138_v60, %v2138_v60 }
0x109b   :  { %4483 = vmatmul.mubr.bf16.vlgmr.msra.gmra.mrb[48].mxu1 %v2139_v15 }
0x109c   :  { %4505 = vmatpush3.bf16.msra.mxu1 %v6388_v40  ;;  %4518 = vmatprep.mubr.msk.bf16.mxu1 %vm5509_vm0, %v8026_v55 }
0x109d   :  { %2339 = vadd.xlane.f32.xlu0 %v2136_v54  ;;  %4506 = vmatprep.subr.bf16.mxu1 %v8026_v55 }
0x10a0   :  { %4507 = vmatpush3.bf16.msra.mxu1 %v6394_v19  ;;  %v6996_v19 = vld [vmem:[%s7683_s12] ss:$0 sm:$0xff] }
0x10a1   :  { %4508 = vmatprep.subr.bf16.mxu1 %v8026_v55 }
0x10a4   :  { %4509 = vmatpush3.bf16.msra.mxu1 %v6398_v53 }
0x10a5   :  { %4510 = vmatprep.subr.bf16.mxu1 %v8026_v55 }
0x10a8   :  { %4511 = vmatpush3.bf16.msra.mxu1 %v6402_v3 }
0x10a9   :  { %4512 = vmatprep.subr.bf16.mxu1 %v8026_v55 }
0x10ac   :  { %4513 = vmatpush3.bf16.msra.mxu1 %v6406_v59 }
0x10ad   :  { %4514 = vmatprep.subr.bf16.mxu1 %v8026_v55 }
0x10b0   :  { %4515 = vmatpush3.bf16.msra.mxu1 %v6410_v5 }
0x10b1   :  { %4516 = vmatprep.subr.bf16.mxu1 %v8026_v55 }
0x10b4   :  { %4517 = vmatpush3.bf16.msra.mxu1 %v6414_v6 }
0x10b5   :  { %2354 = vmatprep.subr.bf16.mxu1 %v6417_v14 }
0x1126   :  { %v2327_v25 = vpop.xlane.xlu0 %2326 }
0x1127   :  { %v2328_v6 = vmul.f32 0.0078125, %v2327_v25  ;;  %v8248_v25 = vld [vmem:[#allocation51_spill] sm:$0xff] }
0x1129   :  { %v2329_v49 = vsub.f32 %v2138_v60, %v2328_v6  ;;  %v8249_v6 = vld [vmem:[#allocation52_spill] sm:$0xff] }
0x112a   :  { %v2340_v31 = vpop.xlane.xlu0 %2339 }
0x112b   :  { %v2341_v39 = vmul.f32 0.0078125, %v2340_v31  ;;  %v2330_v34 = vmul.f32 %v2329_v49, %v2329_v49  ;;  %v8250_v31 = vld [vmem:[#allocation27_spill] sm:$0xff] }
0x112d   :  { %v7000_v16 = vsub.f32 %v2136_v54, %v2341_v39 }
0x112f   :  { %v2343_v50 = vmul.f32 %v7000_v16, %v7000_v16 }
0x116e   :  { %v2174_v40 = vpop.f32.mrb[48].mxu1 }
0x116f   :  { %v2175_v53 = vadd.f32 %v6996_v19, %v2174_v40  ;;  %v4484_v3 = vpop.f32.mrb[49].mxu1 }
0x1170   :  { %v2177_v59 = vpop.f32.mrb[50].mxu1 }
0x1171   :  { %v3836_v48 = vmul.f32 -1.442695, %v2175_v53  ;;  %v4485_v63 = vpop.f32.mrb[51].mxu1 }
0x1173   :  { %4970 = vpow2.f32 %v3836_v48 }
0x117d   :  { %v4971_v5 = vpop.eup %4970 }
0x117e   :  { %v2183_v57 = vadd.f32 1.0, %v4971_v5  ;;  %v8246_v5 = vld [vmem:[#allocation49_spill] sm:$0xff] }
0x1180   :  { %4972 = vrcp.f32 %v2183_v57  ;;  %v8247_v57 = vld [vmem:[#allocation50_spill] sm:$0xff] }
0x118a   :  { %v4973_v14 = vpop.eup %4972 }
0x118b   :  { %v2186_v2 = vsel %vm377_vm1, %v4973_v14, 0.0 }
0x118c   :  { %2187 = vadd.xlane.f32.xlu1 %v2186_v2 }
0x1190   :  { %2331 = vadd.xlane.f32.xlu1 %v2330_v34 }
0x1194   :  { %2344 = vadd.xlane.f32.xlu1 %v2343_v50 }
0x1219   :  { %v2188_v17 = vpop.xlane.xlu1 %2187 }
0x121a   :  { %v2189_v58 = vmul.f32 0.0625, %v2188_v17 }
0x121c   :  { %4974 = vrcp.f32 %v2189_v58 }
0x121d   :  { %v2332_v33 = vpop.xlane.xlu1 %2331 }
0x121e   :  { %v2333_v13 = vmul.f32 0.0078125, %v2332_v33 }
0x1220   :  { %v2334_v15 = vadd.f32 1e-05, %v2333_v13 }
0x1222   :  { %4976 = vrsqrt.f32 %v2334_v15 }
0x1226   :  { %v4975_v60 = vpop.eup %4974 }
0x1227   :  { %v2191_v40 = vmul.f32 %v4975_v60, %v4973_v14  ;;  %v8251_v14 = vld [vmem:[#allocation28_spill] sm:$0xff] }
0x1229   :  { %v2193_v53 = vpack.c.bf16 %v2191_v40, %v2191_v40  ;;  %v2192_v3 = vmul.f32 %v6429_v51, %v2191_v40 }
0x122b   :  { %4501 = vmatmul.mubr.msk.bf16.vlgmr.msra.gmra.mrb[44].mxu0 %vm377_vm1, %v2193_v53  ;;  %v2238_v54 = vpack.c.bf16 %v2192_v3, %v2192_v3 }
0x122c   :  { %v4977_v59 = vpop.eup %4976  ;;  %4125 = vmatpush3.bf16.msra.mxu0 %v6436_v21 }
0x122d   :  { %4519 = vmatmul.mubr.msk.bf16.vlgmr.msra.gmra.mrb[52].mxu1 %vm377_vm1, %v2238_v54  ;;  %v2336_v48 = vmul.f32 %v4977_v59, %v2329_v49  ;;  %4126 = vmatprep.subr.bf16.mxu0 %v6443_v23  ;;  %v8227_v23 = vld [vmem:[#allocation33_spill] sm:$0xff]  ;;  %v8255_v59 = vld [vmem:[#allocation59_spill] sm:$0xff] }
0x122e   :  { %2355 = vmatpush1.bf16.msra.mxu1 %v6446_v24  ;;  %v8228_v24 = vld [vmem:[#allocation34_spill] sm:$0xff]  ;;  %v8252_v49 = vld [vmem:[#allocation29_spill] sm:$0xff] }
0x122f   :  { %v2337_v63 = vmul.f32 %v6968_v18, %v2336_v48  ;;  %2356 = vmatprep.subr.bf16.mxu1 %v6450_v26  ;;  %v8229_v26 = vld [vmem:[#allocation35_spill] sm:$0xff]  ;;  %v8264_v48 = vld [vmem:[#allocation70_spill] sm:$0xff] }
0x1230   :  { %4127 = vmatpush3.bf16.msra.mxu0 %v6456_v27  ;;  %v8230_v27 = vld [vmem:[#allocation36_spill] sm:$0xff] }
0x1231   :  { %v2338_v51 = vadd.f32 %v6974_v11, %v2337_v63  ;;  %4128 = vmatprep.subr.bf16.mxu0 %v6463_v29  ;;  %v8231_v29 = vld [vmem:[#allocation67_spill] sm:$0xff]  ;;  %v8265_v63 = vld [vmem:[#allocation72_spill] sm:$0xff] }
0x1232   :  { %2357 = vmatpush1.bf16.msra.mxu1 %v6466_v30  ;;  %v8232_v30 = vld [vmem:[#allocation69_spill] sm:$0xff] }
0x1233   :  { %v2353_v21 = vpack.c.bf16 %v2338_v51, %v2338_v51  ;;  %2358 = vmatprep.subr.bf16.mxu1 %v6471_v36  ;;  %v8233_v36 = vld [vmem:[#allocation71_spill] sm:$0xff]  ;;  %v8266_v51 = vld [vmem:[#allocation73_spill] sm:$0xff] }
0x1234   :  { %4129 = vmatpush3.bf16.msra.mxu0 %v6477_v37  ;;  %v8234_v37 = vld [vmem:[#allocation37_spill] sm:$0xff] }
0x1235   :  { %2386 = vmatprep.mubr.bf16.mxu1 %v2353_v21  ;;  %4130 = vmatprep.subr.bf16.mxu0 %v6484_v38  ;;  %v8235_v38 = vld [vmem:[#allocation38_spill] sm:$0xff] }
0x1236   :  { %2359 = vmatpush1.bf16.msra.mxu1 %v6487_v41  ;;  %v8236_v41 = vld [vmem:[#allocation39_spill] sm:$0xff] }
0x1237   :  { %2360 = vmatprep.subr.bf16.mxu1 %v6490_v42  ;;  %v8237_v42 = vld [vmem:[#allocation40_spill] sm:$0xff] }
0x1238   :  { %4131 = vmatpush3.bf16.msra.mxu0 %v6496_v44  ;;  %v8238_v44 = vld [vmem:[#allocation41_spill] sm:$0xff] }
0x1239   :  { %4132 = vmatprep.subr.bf16.mxu0 %v6502_v46  ;;  %v8239_v46 = vld [vmem:[#allocation42_spill] sm:$0xff] }
0x123a   :  { %2361 = vmatpush1.bf16.msra.mxu1 %v8158_v43  ;;  %v8240_v43 = vld [vmem:[#allocation43_spill] sm:$0xff] }
0x123b   :  { %2362 = vmatprep.subr.bf16.mxu1 %v8159_v45  ;;  %v8241_v45 = vld [vmem:[#allocation44_spill] sm:$0xff] }
0x123c   :  { %4133 = vmatpush3.bf16.msra.mxu0 %v8160_v0  ;;  %v8242_v0 = vld [vmem:[#allocation45_spill] sm:$0xff] }
0x123d   :  { %4134 = vmatprep.subr.bf16.mxu0 %v8161_v28  ;;  %v8243_v28 = vld [vmem:[#allocation46_spill] sm:$0xff] }
0x123e   :  { %2363 = vmatpush1.bf16.msra.mxu1 %v8162_v32  ;;  %v8244_v32 = vld [vmem:[#allocation47_spill] sm:$0xff] }
0x123f   :  { %2364 = vmatprep.subr.bf16.mxu1 %v8163_v8  ;;  %v8245_v8 = vld [vmem:[#allocation48_spill] sm:$0xff] }
0x1240   :  { %4135 = vmatpush3.bf16.msra.mxu0 %v8227_v23  ;;  %v8268_v23 = vld [vmem:[#allocation75_spill] sm:$0xff] }
0x1241   :  { %4136 = vmatprep.subr.bf16.mxu0 %v8228_v24  ;;  %v8269_v24 = vld [vmem:[#allocation76_spill] sm:$0xff] }
0x1242   :  { %2365 = vmatpush1.bf16.msra.mxu1 %v8229_v26  ;;  %v8270_v26 = vld [vmem:[#allocation77_spill] sm:$0xff] }
0x1243   :  { %2366 = vmatprep.subr.bf16.mxu1 %v8230_v27  ;;  %v8271_v27 = vld [vmem:[#allocation78_spill] sm:$0xff] }
0x1244   :  { %4137 = vmatpush3.bf16.msra.mxu0 %v8231_v29  ;;  %v8272_v29 = vld [vmem:[#allocation79_spill] sm:$0xff] }
0x1245   :  { %4138 = vmatprep.subr.bf16.mxu0 %v8232_v30  ;;  %v8273_v30 = vld [vmem:[#allocation80_spill] sm:$0xff] }
0x1246   :  { %2367 = vmatpush1.bf16.msra.mxu1 %v8233_v36  ;;  %v8274_v36 = vld [vmem:[#allocation24_spill] sm:$0xff] }
0x1247   :  { %2368 = vmatprep.subr.bf16.mxu1 %v8234_v37  ;;  %v8275_v37 = vld [vmem:[#allocation81_spill] sm:$0xff] }
0x1248   :  { %4139 = vmatpush3.bf16.msra.mxu0 %v8235_v38 }
0x1249   :  { %2395 = vmatprep.subr.bf16.mxu0 %v8236_v41 }
0x124a   :  { %2369 = vmatpush1.bf16.msra.mxu1 %v8237_v42 }
0x124b   :  { %2370 = vmatprep.subr.bf16.mxu1 %v8238_v44 }
0x124e   :  { %2371 = vmatpush1.bf16.msra.mxu1 %v8239_v46 }
0x124f   :  { %2372 = vmatprep.subr.bf16.mxu1 %v8240_v43  ;;  %v8276_v43 = vld [vmem:[#allocation85_spill] sm:$0xff] }
0x1252   :  { %2373 = vmatpush1.bf16.msra.mxu1 %v8241_v45 }
0x1253   :  { %2374 = vmatprep.subr.bf16.mxu1 %v8242_v0 }
0x1256   :  { %2375 = vmatpush1.bf16.msra.mxu1 %v8243_v28 }
0x1257   :  { %2376 = vmatprep.subr.bf16.mxu1 %v8244_v32  ;;  %v8277_v32 = vld [vmem:[#allocation30_spill] sm:$0xff] }
0x125a   :  { %2377 = vmatpush1.bf16.msra.mxu1 %v8245_v8  ;;  %v7096_v8 = vld [vmem:[#allocation2] sm:$0xff]  }
0x125b   :  { %2378 = vmatprep.subr.bf16.mxu1 %v8246_v5  ;;  %v8278_v5 = vld [vmem:[#allocation31_spill] sm:$0xff] }
0x125e   :  { %2379 = vmatpush1.bf16.msra.mxu1 %v8247_v57  ;;  %v7104_v57 = vld [vmem:[#allocation2 + $0x8] sm:$0xff]  }
0x125f   :  { %2380 = vmatprep.subr.bf16.mxu1 %v8248_v25  ;;  %v8279_v25 = vld [vmem:[#allocation32_spill] sm:$0xff] }
0x1262   :  { %2381 = vmatpush1.bf16.msra.mxu1 %v8249_v6  ;;  %v7110_v6 = vld [vmem:[#allocation2 + $0x10] sm:$0xff]  }
0x1263   :  { %2382 = vmatprep.subr.bf16.mxu1 %v8250_v31 }
0x1266   :  { %2383 = vmatpush1.bf16.msra.mxu1 %v8251_v14 }
0x1267   :  { %2384 = vmatprep.subr.bf16.mxu1 %v8252_v49 }
0x126a   :  { %2385 = vmatpush1.bf16.msra.mxu1 %v6847_v47 }
0x126b   :  { %4522 = vmatprep.subr.bf16.mxu1 %v8026_v55 }
0x12fe   :  { %v2231_v39 = vpop.f32.mrb[44].mxu0 }
0x12ff   :  { %v2232_v2 = vadd.f32 %v6618_v22, %v2231_v39  ;;  %v4502_v34 = vpop.f32.mrb[45].mxu0  ;;  %v8254_v22 = vld [vmem:[#allocation58_spill] sm:$0xff]  ;;  %v8280_v39 = vld [vmem:[#allocation53_spill] sm:$0xff] }
0x1300   :  { %v2234_v50 = vpop.f32.mrb[46].mxu0  ;;  %v2276_v17 = vpop.f32.mrb[52].mxu1  ;;  %v8281_v34 = vld [vmem:[#allocation54_spill] sm:$0xff] }
0x1301   :  { %v2277_v58 = vadd.f32 %v6621_v7, %v2276_v17  ;;  %v4503_v33 = vpop.f32.mrb[47].mxu0  ;;  %v4520_v13 = vpop.f32.mrb[53].mxu1  ;;  %v2237_v15 = vmax.f32 %v2232_v2, 0.0  ;;  %v8253_v7 = vld [vmem:[#allocation57_spill] sm:$0xff]  ;;  %v7116_v2 = vld [vmem:[#allocation2 + $0x18] sm:$0xff]  }
0x1302   :  { %v2279_v60 = vpop.f32.mrb[54].mxu1  ;;  %v7122_v50 = vld [vmem:[#allocation2 + $0x20] sm:$0xff]   ;;  %v8282_v17 = vld [vmem:[#allocation55_spill] sm:$0xff] }
0x1303   :  { %v2282_v40 = vmax.f32 %v2277_v58, 0.0  ;;  %v4521_v53 = vpop.f32.mrb[55].mxu1  ;;  %v2283_v54 = vpack.c.bf16 %v2237_v15, %v2237_v15  ;;  %v7128_v58 = vld [vmem:[#allocation2 + $0x28] sm:$0xff]   ;;  %v8283_v33 = vld [vmem:[#allocation56_spill] sm:$0xff]  ;;  %v7134_v13 = vld [vmem:[#allocation2 + $0x30] sm:$0xff]  }
0x1304   :  { %v8284_v15 = vld [vmem:[#allocation86_spill] sm:$0xff]  ;;  %v8285_v60 = vld [vmem:[#allocation25_spill] sm:$0xff] }
0x1305   :  { %v2284_v3 = vpack.c.bf16 %v2282_v40, %v2282_v40  ;;  %v2345_v40 = vpop.xlane.xlu1 %2344 }
0x1306   :  { %v2346_v53 = vmul.f32 0.0078125, %v2345_v40 }
0x1307   :  { %2317 = vmatprep.mubr.bf16.mxu0 %v2284_v3 }
0x1308   :  { %2318 = vmatmul.mubr.bf16.vlgmr.msra.gmra.mrb[48].mxu0 %v2283_v54 }
0x1309   :  { %2427 = vmatprep.mubr.bf16.mxu0 %v2353_v21  ;;  %2396 = vmatpush1.bf16.msra.mxu0 %v6625_v4  ;;  %v8256_v4 = vld [vmem:[#allocation60_spill] sm:$0xff]  ;;  %v8267_v21 = vld [vmem:[#allocation74_spill] sm:$0xff] }
0x130a   :  { %2397 = vmatprep.subr.bf16.mxu0 %v6628_v1  ;;  %v8257_v1 = vld [vmem:[#allocation61_spill] sm:$0xff] }
0x130d   :  { %2398 = vmatpush1.bf16.msra.mxu0 %v6631_v35  ;;  %v8258_v35 = vld [vmem:[#allocation62_spill] sm:$0xff] }
0x130e   :  { %2399 = vmatprep.subr.bf16.mxu0 %v6634_v20  ;;  %v8259_v20 = vld [vmem:[#allocation63_spill] sm:$0xff] }
0x1311   :  { %2400 = vmatpush1.bf16.msra.mxu0 %v8190_v9  ;;  %v8260_v9 = vld [vmem:[#allocation64_spill] sm:$0xff] }
0x1312   :  { %2401 = vmatprep.subr.bf16.mxu0 %v8191_v12  ;;  %v8261_v12 = vld [vmem:[#allocation65_spill] sm:$0xff] }
0x1315   :  { %2402 = vmatpush1.bf16.msra.mxu0 %v8192_v52  ;;  %v8262_v52 = vld [vmem:[#allocation66_spill] sm:$0xff] }
0x1316   :  { %2403 = vmatprep.subr.bf16.mxu0 %v8193_v62  ;;  %v8263_v62 = vld [vmem:[#allocation68_spill] sm:$0xff] }
0x1319   :  { %2404 = vmatpush1.bf16.msra.mxu0 %v8253_v7  ;;  %v8286_v7 = vld [vmem:[#allocation84_spill] sm:$0xff] }
0x131a   :  { %2405 = vmatprep.subr.bf16.mxu0 %v8254_v22 }
0x131d   :  { %2406 = vmatpush1.bf16.msra.mxu0 %v8255_v59 }
0x131e   :  { %2407 = vmatprep.subr.bf16.mxu0 %v8256_v4 }
0x1321   :  { %2408 = vmatpush1.bf16.msra.mxu0 %v8257_v1 }
0x1322   :  { %2409 = vmatprep.subr.bf16.mxu0 %v8258_v35 }
0x1325   :  { %2410 = vmatpush1.bf16.msra.mxu0 %v8259_v20 }
0x1326   :  { %2411 = vmatprep.subr.bf16.mxu0 %v8260_v9  ;;  %v2347_v9 = vadd.f32 1e-05, %v2346_v53 }
0x1329   :  { %2412 = vmatpush1.bf16.msra.mxu0 %v8261_v12 }
0x132a   :  { %2413 = vmatprep.subr.bf16.mxu0 %v8262_v52 }
0x132d   :  { %2414 = vmatpush1.bf16.msra.mxu0 %v8263_v62 }
0x132e   :  { %2415 = vmatprep.subr.bf16.mxu0 %v8264_v48 }
0x1331   :  { %2416 = vmatpush1.bf16.msra.mxu0 %v8265_v63 }
0x1332   :  { %2417 = vmatprep.subr.bf16.mxu0 %v8266_v51 }
0x1335   :  { %2418 = vmatpush1.bf16.msra.mxu0 %v8267_v21 }
0x1336   :  { %2419 = vmatprep.subr.bf16.mxu0 %v8268_v23 }
0x1339   :  { %2420 = vmatpush1.bf16.msra.mxu0 %v8269_v24 }
0x133a   :  { %2421 = vmatprep.subr.bf16.mxu0 %v8270_v26 }
0x133d   :  { %2422 = vmatpush1.bf16.msra.mxu0 %v8271_v27 }
0x133e   :  { %2423 = vmatprep.subr.bf16.mxu0 %v8272_v29 }
0x1341   :  { %2424 = vmatpush1.bf16.msra.mxu0 %v8273_v30 }
0x1342   :  { %2425 = vmatprep.subr.bf16.mxu0 %v8274_v36 }
0x1345   :  { %2426 = vmatpush1.bf16.msra.mxu0 %v8275_v37 }
0x1346   :  { %4542 = vmatprep.subr.bf16.mxu0 %v8026_v55 }
0x13db   :  { %v4140_v38 = vpop.f32.mrb[48].mxu0 }
0x13dc   :  { %v4141_v41 = vpop.f32.mrb[49].mxu0 }
0x13dd   :  { %v4142_v42 = vadd.f32 %v4141_v41, %v4140_v38  ;;  %v4143_v44 = vpop.f32.mrb[50].mxu0 }
0x13de   :  { %v4144_v46 = vpop.f32.mrb[51].mxu0 }
0x13df   :  { %v2320_v45 = vadd.f32 %v8276_v43, %v4142_v42 }
0x13e1   :  { %v2325_v0 = vmax.f32 %v2320_v45, 0.0 }
0x13e3   :  { %v2352_v28 = vpack.c.bf16 %v2325_v0, %v2325_v0 }
0x13e5   :  { %2387 = vmatmul.mubr.bf16.vlgmr.msra.gmra.mrb[56].mxu1 %v2352_v28  ;;  %2428 = vmatmul.mubr.bf16.vlgmr.msra.gmra.mrb[52].mxu0 %v2352_v28 }
0x13e6   :  { %4523 = vmatpush3.bf16.msra.mxu1 %v8277_v32  ;;  %4538 = vmatprep.mubr.msk.bf16.mxu1 %vm5509_vm0, %v8026_v55 }
0x13e7   :  { %4524 = vmatprep.subr.bf16.mxu1 %v8026_v55  ;;  %4543 = vmatpush3.bf16.msra.mxu0 %v7096_v8 }
0x13e8   :  { %4544 = vmatprep.subr.bf16.mxu0 %v8026_v55  ;;  %4556 = vmatprep.mubr.msk.bf16.mxu0 %vm5509_vm0, %v8026_v55 }
0x13ea   :  { %4525 = vmatpush3.bf16.msra.mxu1 %v8278_v5 }
0x13eb   :  { %4526 = vmatprep.subr.bf16.mxu1 %v8026_v55  ;;  %4545 = vmatpush3.bf16.msra.mxu0 %v7104_v57 }
0x13ec   :  { %4546 = vmatprep.subr.bf16.mxu0 %v8026_v55 }
0x13ee   :  { %4527 = vmatpush3.bf16.msra.mxu1 %v8279_v25 }
0x13ef   :  { %4528 = vmatprep.subr.bf16.mxu1 %v8026_v55  ;;  %4547 = vmatpush3.bf16.msra.mxu0 %v7110_v6 }
0x13f0   :  { %4548 = vmatprep.subr.bf16.mxu0 %v8026_v55 }
0x13f2   :  { %4529 = vmatpush3.bf16.msra.mxu1 %v8280_v39 }
0x13f3   :  { %4530 = vmatprep.subr.bf16.mxu1 %v8026_v55  ;;  %4549 = vmatpush3.bf16.msra.mxu0 %v7116_v2 }
0x13f4   :  { %4550 = vmatprep.subr.bf16.mxu0 %v8026_v55 }
0x13f6   :  { %4531 = vmatpush3.bf16.msra.mxu1 %v8281_v34 }
0x13f7   :  { %4532 = vmatprep.subr.bf16.mxu1 %v8026_v55  ;;  %4551 = vmatpush3.bf16.msra.mxu0 %v7122_v50 }
0x13f8   :  { %4552 = vmatprep.subr.bf16.mxu0 %v8026_v55 }
0x13fa   :  { %4533 = vmatpush3.bf16.msra.mxu1 %v8282_v17 }
0x13fb   :  { %4534 = vmatprep.subr.bf16.mxu1 %v8026_v55  ;;  %4553 = vmatpush3.bf16.msra.mxu0 %v7128_v58 }
0x13fc   :  { %4554 = vmatprep.subr.bf16.mxu0 %v8026_v55 }
0x13fe   :  { %4535 = vmatpush3.bf16.msra.mxu1 %v8283_v33 }
0x13ff   :  { %4536 = vmatprep.subr.bf16.mxu1 %v8026_v55  ;;  %4555 = vmatpush3.bf16.msra.mxu0 %v7134_v13 }
0x1400   :  { %4171 = vmatprep.subr.bf16.mxu0 %v8284_v15 }
0x1402   :  { %4537 = vmatpush3.bf16.msra.mxu1 %v8285_v60 }
0x1403   :  { %4560 = vmatprep.subr.bf16.mxu1 %v8026_v55 }
0x14b8   :  { %v2388_v3 = vpop.f32.mrb[56].mxu1  ;;  %v2429_v54 = vpop.f32.mrb[52].mxu0 }
0x14b9   :  { %v2389_v22 = vadd.f32 %v2388_v3, %v8286_v7  ;;  %v2390_v59 = vpop.f32.mrb[57].mxu1  ;;  %v2431_v4 = vpop.f32.mrb[53].mxu0  ;;  %v2430_v21 = vadd.f32 %v2429_v54, %v6195_v61  ;;  %v7153_v3 = vld [vmem:[#allocation7 + $0x8] sm:$0xff]   ;;  %v7157_v54 = vld [vmem:[#allocation7 + $0x10] sm:$0xff]  }
0x14ba   :  { %v2391_v1 = vadd.f32 %v2390_v59, %v6188_v56  ;;  %v2392_v35 = vpop.f32.mrb[58].mxu1  ;;  %v2433_v20 = vpop.f32.mrb[54].mxu0  ;;  %v2432_v63 = vadd.f32 %v2431_v4, %v6192_v10  ;;  %v7165_v59 = vld [vmem:[#allocation7 + $0x20] sm:$0xff]   ;;  %v7169_v4 = vld [vmem:[#allocation7 + $0x28] sm:$0xff]  }
0x14bb   :  { %v3839_v12 = vmul.f32 -1.442695, %v2389_v22  ;;  %v2393_v52 = vpop.f32.mrb[59].mxu1  ;;  %v2434_v62 = vpop.f32.mrb[55].mxu0  ;;  %v7161_v22 = vld [vmem:[#allocation7 + $0x18] sm:$0xff]  }
0x14bc   :  { %v3840_v48 = vmul.f32 -1.442695, %v2391_v1  ;;  %v3841_v51 = vmul.f32 -1.442695, %v2432_v63  ;;  %v7173_v1 = vld [vmem:[#allocation7 + $0x30] sm:$0xff]  }
0x14bd   :  { %4978 = vpow2.f32 %v3839_v12  ;;  %v7176_v35 = vld [vmem:[#allocation11 + $0x4] ss:$16 sps:$4 sm:$0xff]  }
0x14be   :  { %4980 = vpow2.f32 %v3840_v48 }
0x14bf   :  { %4982 = vrsqrt.f32 %v2347_v9 }
0x14c0   :  { %4984 = vpow2.f32 %v3841_v51 }
0x14c1   :  { %4986 = vtanh.f32 %v2430_v21 }
0x14c7   :  { %v4979_v23 = vpop.eup %4978 }
0x14c8   :  { %v4981_v24 = vpop.eup %4980  ;;  %v2439_v26 = vadd.f32 1.0, %v4979_v23 }
0x14c9   :  { %v4983_v27 = vpop.eup %4982  ;;  %v2445_v29 = vadd.f32 1.0, %v4981_v24 }
0x14ca   :  { %4988 = vrcp.f32 %v2439_v26  ;;  %v2349_v30 = vmul.f32 %v4983_v27, %v7000_v16  ;;  %v4985_v37 = vpop.eup %4984  ;;  %v7147_v16 = vld [vmem:[#allocation7] sm:$0xff]  }
0x14cb   :  { %4990 = vrcp.f32 %v2445_v29  ;;  %v4987_v38 = vpop.eup %4986  ;;  %v2452_v43 = vadd.f32 1.0, %v4985_v37 }
0x14cc   :  { %v2350_v36 = vmul.f32 %v6968_v18, %v2349_v30 }
0x14cd   :  { %4992 = vrcp.f32 %v2452_v43 }
0x14ce   :  { %v2351_v42 = vadd.f32 %v6974_v11, %v2350_v36 }
0x14d4   :  { %v4989_v41 = vpop.eup %4988 }
0x14d5   :  { %v4991_v44 = vpop.eup %4990  ;;  %v2456_v46 = vmul.f32 %v4989_v41, %v4987_v38 }
0x14d6   :  { %v2455_v45 = vmul.f32 %v4991_v44, %v2351_v42 }
0x14d7   :  { %v4993_v28 = vpop.eup %4992 }
0x14d8   :  { %v2457_v0 = vadd.f32 %v2456_v46, %v2455_v45 }
0x14da   :  { %4994 = vtanh.f32 %v2457_v0 }
0x14e4   :  { %v4995_v15 = vpop.eup %4994 }
0x14e5   :  { %v2459_v40 = vmul.f32 %v4995_v15, %v4993_v28 }
0x14e7   :  { %2647 = vadd.xlane.f32.xlu1 %v2459_v40  ;;  %v2460_v53 = vpack.c.bf16 %v2459_v40, %v2459_v40 }
0x14e9   :  { %4539 = vmatmul.mubr.bf16.vlgmr.msra.gmra.mrb[60].mxu1 %v2460_v53 }
0x14ea   :  { %4561 = vmatpush3.bf16.msra.mxu1 %v7147_v16  ;;  %4574 = vmatprep.mubr.msk.bf16.mxu1 %vm5509_vm0, %v8026_v55 }
0x14eb   :  { %2660 = vadd.xlane.f32.xlu1 %v2457_v0  ;;  %4562 = vmatprep.subr.bf16.mxu1 %v8026_v55 }
0x14ee   :  { %4563 = vmatpush3.bf16.msra.mxu1 %v7153_v3 }
0x14ef   :  { %4564 = vmatprep.subr.bf16.mxu1 %v8026_v55 }
0x14f2   :  { %4565 = vmatpush3.bf16.msra.mxu1 %v7157_v54 }
0x14f3   :  { %4566 = vmatprep.subr.bf16.mxu1 %v8026_v55 }
0x14f6   :  { %4567 = vmatpush3.bf16.msra.mxu1 %v7161_v22 }
0x14f7   :  { %4568 = vmatprep.subr.bf16.mxu1 %v8026_v55 }
0x14fa   :  { %4569 = vmatpush3.bf16.msra.mxu1 %v7165_v59 }
0x14fb   :  { %4570 = vmatprep.subr.bf16.mxu1 %v8026_v55 }
0x14fe   :  { %4571 = vmatpush3.bf16.msra.mxu1 %v7169_v4 }
0x14ff   :  { %4572 = vmatprep.subr.bf16.mxu1 %v8026_v55 }
0x1502   :  { %4573 = vmatpush3.bf16.msra.mxu1 %v7173_v1 }
0x1503   :  { %2675 = vmatprep.subr.bf16.mxu1 %v7176_v35 }
0x1574   :  { %v2648_v21 = vpop.xlane.xlu1 %2647 }
0x1575   :  { %v2649_v23 = vmul.f32 0.0078125, %v2648_v21 }
0x1577   :  { %v2650_v27 = vsub.f32 %v2459_v40, %v2649_v23  ;;  %v7222_v23 = vld [vmem:[%s7676_s5 + $0x50] sm:$0xff]  }
0x1578   :  { %v2661_v24 = vpop.xlane.xlu1 %2660 }
0x1579   :  { %v2662_v29 = vmul.f32 0.0078125, %v2661_v24  ;;  %v2651_v37 = vmul.f32 %v2650_v27, %v2650_v27  ;;  %v7225_v24 = vld [vmem:[#allocation11 + $0x20] ss:$16 sps:$4 sm:$0xff]  }
0x157b   :  { %v7181_v36 = vsub.f32 %v2457_v0, %v2662_v29  ;;  %v7188_v0 = vld [vmem:[%s7976_s2] sm:$0xff]  ;;  %v7236_v29 = vld [vmem:[%s7676_s5 + $0x10] sm:$0xff]  }
0x157d   :  { %v2664_v38 = vmul.f32 %v7181_v36, %v7181_v36 }
0x15bc   :  { %v2495_v20 = vpop.f32.mrb[60].mxu1 }
0x15bd   :  { %v2496_v9 = vadd.f32 %v6996_v19, %v2495_v20  ;;  %v4540_v12 = vpop.f32.mrb[61].mxu1 }
0x15be   :  { %v2498_v52 = vpop.f32.mrb[62].mxu1 }
0x15bf   :  { %v3842_v62 = vmul.f32 -1.442695, %v2496_v9  ;;  %v4541_v48 = vpop.f32.mrb[63].mxu1  ;;  %v7195_v9 = vld [vmem:[%s7676_s5] sm:$0xff]   ;;  %v7202_v52 = vld [vmem:[%s7676_s5 + $0x48] sm:$0xff]  }
0x15c1   :  { %4996 = vpow2.f32 %v3842_v62  ;;  %v7205_v62 = vld [vmem:[#allocation11] ss:$16 sps:$4 sm:$0xff]  }
0x15cb   :  { %v4997_v63 = vpop.eup %4996 }
0x15cc   :  { %v2504_v51 = vadd.f32 1.0, %v4997_v63  ;;  %v7209_v63 = vld [vmem:[#allocation11 + $0x24] ss:$16 sps:$4 sm:$0xff]  }
0x15ce   :  { %4998 = vrcp.f32 %v2504_v51  ;;  %v7215_v51 = vld [vmem:[%s7676_s5 + $0x8] sm:$0xff]  }
0x15d8   :  { %v4999_v26 = vpop.eup %4998 }
0x15d9   :  { %v2507_v30 = vsel %vm377_vm1, %v4999_v26, 0.0 }
0x15da   :  { %2508 = vadd.xlane.f32.xlu0 %v2507_v30  ;;  %v7243_v30 = vld [vmem:[%s7676_s5 + $0x58] sm:$0xff]  }
0x15de   :  { %2652 = vadd.xlane.f32.xlu0 %v2651_v37  ;;  %v7246_v37 = vld [vmem:[#allocation11 + $0x40] ss:$16 sps:$4 sm:$0xff]  }
0x15e2   :  { %2665 = vadd.xlane.f32.xlu0 %v2664_v38  ;;  %v7249_v38 = vld [vmem:[#allocation11 + $0x64] ss:$16 sps:$4 sm:$0xff]  }
0x1667   :  { %v2509_v41 = vpop.xlane.xlu0 %2508 }
0x1668   :  { %v2510_v42 = vmul.f32 0.0625, %v2509_v41  ;;  %v7255_v41 = vld [vmem:[%s7676_s5 + $0x18] sm:$0xff]  }
0x166a   :  { %5000 = vrcp.f32 %v2510_v42  ;;  %v7261_v42 = vld [vmem:[%s7676_s5 + $0x60] sm:$0xff]  }
0x166b   :  { %v2653_v44 = vpop.xlane.xlu0 %2652 }
0x166c   :  { %v2654_v46 = vmul.f32 0.0078125, %v2653_v44  ;;  %v7264_v44 = vld [vmem:[#allocation11 + $0x60] ss:$16 sps:$4 sm:$0xff]  }
0x166d   :  { %8287 = vst [vmem:[#allocation26_spill] sm:$0xff] %v7264_v44 }
0x166e   :  { %v2655_v43 = vadd.f32 1e-05, %v2654_v46  ;;  %v7267_v46 = vld [vmem:[#allocation11 + $0x84] ss:$16 sps:$4 sm:$0xff]  }
0x166f   :  { %8288 = vst [vmem:[#allocation33_spill] sm:$0xff] %v7267_v46 }
0x1670   :  { %5002 = vrsqrt.f32 %v2655_v43  ;;  %v7273_v43 = vld [vmem:[%s7676_s5 + $0x20] sm:$0xff]  }
0x1671   :  { %8289 = vst [vmem:[#allocation34_spill] sm:$0xff] %v7273_v43 }
0x1674   :  { %v5001_v45 = vpop.eup %5000 }
0x1675   :  { %v2512_v28 = vmul.f32 %v5001_v45, %v4999_v26  ;;  %v7279_v45 = vld [vmem:[%s7676_s5 + $0x68] sm:$0xff]  }
0x1676   :  { %8290 = vst [vmem:[#allocation35_spill] sm:$0xff] %v7279_v45 }
0x1677   :  { %v2514_v15 = vpack.c.bf16 %v2512_v28, %v2512_v28  ;;  %v2513_v40 = vmul.f32 %v7188_v0, %v2512_v28  ;;  %v7282_v28 = vld [vmem:[#allocation11 + $0x80] ss:$16 sps:$4 sm:$0xff]  }
0x1678   :  { %8291 = vst [vmem:[#allocation36_spill] sm:$0xff] %v7282_v28 }
0x1679   :  { %4557 = vmatmul.mubr.msk.bf16.vlgmr.msra.gmra.mrb[56].mxu0 %vm377_vm1, %v2514_v15  ;;  %v2559_v53 = vpack.c.bf16 %v2513_v40, %v2513_v40  ;;  %v7285_v15 = vld [vmem:[#allocation11 + $0xa4] ss:$16 sps:$4 sm:$0xff]  }
0x167a   :  { %v5003_v20 = vpop.eup %5002  ;;  %4172 = vmatpush3.bf16.msra.mxu0 %v7195_v9  ;;  %8292 = vst [vmem:[#allocation67_spill] sm:$0xff] %v7285_v15  ;;  %v7291_v40 = vld [vmem:[%s7676_s5 + $0x28] sm:$0xff]  }
0x167b   :  { %4575 = vmatmul.mubr.msk.bf16.vlgmr.msra.gmra.mrb[64].mxu1 %vm377_vm1, %v2559_v53  ;;  %v2657_v12 = vmul.f32 %v5003_v20, %v2650_v27  ;;  %4173 = vmatprep.subr.bf16.mxu0 %v7202_v52  ;;  %v7230_v27 = vld [vmem:[#allocation11 + $0x44] ss:$16 sps:$4 sm:$0xff]   ;;  %8293 = vst [vmem:[#allocation69_spill] sm:$0xff] %v7291_v40  ;;  %v7297_v53 = vld [vmem:[%s7676_s5 + $0x70] sm:$0xff]  }
0x167c   :  { %2676 = vmatpush1.bf16.msra.mxu1 %v7205_v62  ;;  %8294 = vst [vmem:[#allocation71_spill] sm:$0xff] %v7297_v53  ;;  %v7300_v20 = vld [vmem:[#allocation11 + $0xa0] ss:$16 sps:$4 sm:$0xff]  }
0x167d   :  { %v2658_v48 = vmul.f32 %v6968_v18, %v2657_v12  ;;  %2677 = vmatprep.subr.bf16.mxu1 %v7209_v63  ;;  %8295 = vst [vmem:[#allocation37_spill] sm:$0xff] %v7300_v20  ;;  %v7303_v12 = vld [vmem:[#allocation11 + $0xc4] ss:$16 sps:$4 sm:$0xff]  }
0x167e   :  { %4174 = vmatpush3.bf16.msra.mxu0 %v7215_v51  ;;  %8296 = vst [vmem:[#allocation38_spill] sm:$0xff] %v7303_v12 }
0x167f   :  { %v2659_v21 = vadd.f32 %v6974_v11, %v2658_v48  ;;  %4175 = vmatprep.subr.bf16.mxu0 %v7222_v23  ;;  %v7309_v48 = vld [vmem:[%s7676_s5 + $0x30] sm:$0xff]  }
0x1680   :  { %2678 = vmatpush1.bf16.msra.mxu1 %v7225_v24  ;;  %8297 = vst [vmem:[#allocation39_spill] sm:$0xff] %v7309_v48 }
0x1681   :  { %v7228_v26 = vpack.c.bf16 %v2659_v21, %v2659_v21  ;;  %2679 = vmatprep.subr.bf16.mxu1 %v7230_v27  ;;  %v7315_v21 = vld [vmem:[%s7676_s5 + $0x78] sm:$0xff]  }
0x1682   :  { %4176 = vmatpush3.bf16.msra.mxu0 %v7236_v29  ;;  %8298 = vst [vmem:[#allocation40_spill] sm:$0xff] %v7315_v21 }
0x1683   :  { %2707 = vmatprep.mubr.bf16.mxu1 %v7228_v26  ;;  %4177 = vmatprep.subr.bf16.mxu0 %v7243_v30 }
0x1684   :  { %2680 = vmatpush1.bf16.msra.mxu1 %v7246_v37 }
0x1685   :  { %2681 = vmatprep.subr.bf16.mxu1 %v7249_v38 }
0x1686   :  { %4178 = vmatpush3.bf16.msra.mxu0 %v7255_v41 }
0x1687   :  { %4179 = vmatprep.subr.bf16.mxu0 %v7261_v42 }
0x1688   :  { %2682 = vmatpush1.bf16.msra.mxu1 %v7264_v44 }
0x1689   :  { %2683 = vmatprep.subr.bf16.mxu1 %v7267_v46 }
0x168a   :  { %4180 = vmatpush3.bf16.msra.mxu0 %v7273_v43 }
0x168b   :  { %4181 = vmatprep.subr.bf16.mxu0 %v7279_v45 }
0x168c   :  { %2684 = vmatpush1.bf16.msra.mxu1 %v7282_v28  ;;  %v7380_v28 = vld [vmem:[#allocation8] ss:$0 sm:$0xff] }
0x168d   :  { %2685 = vmatprep.subr.bf16.mxu1 %v7285_v15 }
0x168e   :  { %4182 = vmatpush3.bf16.msra.mxu0 %v7291_v40  ;;  %v7342_v40 = vld [vmem:[#allocation11 + $0x124] ss:$16 sps:$4 sm:$0xff]  }
0x168f   :  { %4183 = vmatprep.subr.bf16.mxu0 %v7297_v53  ;;  %v7318_v53 = vld [vmem:[#allocation11 + $0xc0] ss:$16 sps:$4 sm:$0xff]   ;;  %8306 = vst [vmem:[#allocation48_spill] sm:$0xff] %v7342_v40 }
0x1690   :  { %2686 = vmatpush1.bf16.msra.mxu1 %v7300_v20  ;;  %8299 = vst [vmem:[#allocation41_spill] sm:$0xff] %v7318_v53  ;;  %v7321_v20 = vld [vmem:[#allocation11 + $0xe4] ss:$16 sps:$4 sm:$0xff]  }
0x1691   :  { %2687 = vmatprep.subr.bf16.mxu1 %v7303_v12  ;;  %8300 = vst [vmem:[#allocation42_spill] sm:$0xff] %v7321_v20  ;;  %v7327_v12 = vld [vmem:[%s7676_s5 + $0x38] sm:$0xff]  }
0x1692   :  { %4184 = vmatpush3.bf16.msra.mxu0 %v7309_v48  ;;  %8301 = vst [vmem:[#allocation43_spill] sm:$0xff] %v7327_v12  ;;  %v7330_v48 = vld [vmem:[#allocation11 + $0xc] ss:$16 sps:$4 sm:$0xff]  }
0x1693   :  { %4185 = vmatprep.subr.bf16.mxu0 %v7315_v21  ;;  %8302 = vst [vmem:[#allocation44_spill] sm:$0xff] %v7330_v48  ;;  %v7333_v21 = vld [vmem:[#allocation11 + $0xe0] ss:$16 sps:$4 sm:$0xff]  }
0x1694   :  { %2688 = vmatpush1.bf16.msra.mxu1 %v7318_v53  ;;  %8303 = vst [vmem:[#allocation45_spill] sm:$0xff] %v7333_v21  ;;  %v7336_v53 = vld [vmem:[#allocation11 + $0x104] ss:$16 sps:$4 sm:$0xff]  }
0x1695   :  { %2689 = vmatprep.subr.bf16.mxu1 %v7321_v20  ;;  %8304 = vst [vmem:[#allocation46_spill] sm:$0xff] %v7336_v53  ;;  %v7339_v20 = vld [vmem:[#allocation11 + $0x100] ss:$16 sps:$4 sm:$0xff]  }
0x1696   :  { %4186 = vmatpush3.bf16.msra.mxu0 %v7327_v12  ;;  %8305 = vst [vmem:[#allocation47_spill] sm:$0xff] %v7339_v20  ;;  %v7345_v12 = vld [vmem:[#allocation11 + $0x120] ss:$16 sps:$4 sm:$0xff]  }
0x1697   :  { %2716 = vmatprep.subr.bf16.mxu0 %v7330_v48  ;;  %8307 = vst [vmem:[#allocation49_spill] sm:$0xff] %v7345_v12  ;;  %v7348_v48 = vld [vmem:[#allocation11 + $0x144] ss:$16 sps:$4 sm:$0xff]  }
0x1698   :  { %2690 = vmatpush1.bf16.msra.mxu1 %v7333_v21  ;;  %8308 = vst [vmem:[#allocation50_spill] sm:$0xff] %v7348_v48  ;;  %v7351_v21 = vld [vmem:[#allocation11 + $0x140] ss:$16 sps:$4 sm:$0xff]  }
0x1699   :  { %2691 = vmatprep.subr.bf16.mxu1 %v7336_v53  ;;  %8309 = vst [vmem:[#allocation51_spill] sm:$0xff] %v7351_v21  ;;  %v7354_v53 = vld [vmem:[#allocation11 + $0x164] ss:$16 sps:$4 sm:$0xff]  }
0x169a   :  { %8310 = vst [vmem:[#allocation52_spill] sm:$0xff] %v7354_v53 }
0x169c   :  { %2692 = vmatpush1.bf16.msra.mxu1 %v7339_v20  ;;  %v7357_v20 = vld [vmem:[#allocation11 + $0x160] ss:$16 sps:$4 sm:$0xff]  }
0x169d   :  { %2693 = vmatprep.subr.bf16.mxu1 %v7342_v40  ;;  %8311 = vst [vmem:[#allocation27_spill] sm:$0xff] %v7357_v20  ;;  %v7360_v40 = vld [vmem:[#allocation11 + $0x184] ss:$16 sps:$4 sm:$0xff]  }
0x169e   :  { %8312 = vst [vmem:[#allocation28_spill] sm:$0xff] %v7360_v40 }
0x16a0   :  { %2694 = vmatpush1.bf16.msra.mxu1 %v7345_v12  ;;  %v7363_v12 = vld [vmem:[#allocation11 + $0x180] ss:$16 sps:$4 sm:$0xff]  }
0x16a1   :  { %2695 = vmatprep.subr.bf16.mxu1 %v7348_v48  ;;  %8313 = vst [vmem:[#allocation29_spill] sm:$0xff] %v7363_v12  ;;  %v7366_v48 = vld [vmem:[#allocation11 + $0x1a4] ss:$16 sps:$4 sm:$0xff]  }
0x16a2   :  { %8314 = vst [vmem:[#allocation57_spill] sm:$0xff] %v7366_v48 }
0x16a4   :  { %2696 = vmatpush1.bf16.msra.mxu1 %v7351_v21  ;;  %v7369_v21 = vld [vmem:[#allocation11 + $0x1a0] ss:$16 sps:$4 sm:$0xff]  }
0x16a5   :  { %2697 = vmatprep.subr.bf16.mxu1 %v7354_v53  ;;  %8315 = vst [vmem:[#allocation58_spill] sm:$0xff] %v7369_v21 }
0x16a8   :  { %2698 = vmatpush1.bf16.msra.mxu1 %v7357_v20 }
0x16a9   :  { %2699 = vmatprep.subr.bf16.mxu1 %v7360_v40 }
0x16ac   :  { %2700 = vmatpush1.bf16.msra.mxu1 %v7363_v12  ;;  %v7377_v12 = vld [vmem:[#allocation5] ss:$0 sm:$0xff] }
0x16ad   :  { %2701 = vmatprep.subr.bf16.mxu1 %v7366_v48 }
0x16b0   :  { %2702 = vmatpush1.bf16.msra.mxu1 %v7369_v21 }
0x16b1   :  { %2703 = vmatprep.subr.bf16.mxu1 %v8250_v31 }
0x16b4   :  { %2704 = vmatpush1.bf16.msra.mxu1 %v8251_v14 }
0x16b5   :  { %2705 = vmatprep.subr.bf16.mxu1 %v8252_v49 }
0x16b8   :  { %2706 = vmatpush1.bf16.msra.mxu1 %v6847_v47 }
0x16b9   :  { %4578 = vmatprep.subr.bf16.mxu1 %v8026_v55 }
0x174c   :  { %v2552_v40 = vpop.f32.mrb[56].mxu0 }
0x174d   :  { %v2553_v20 = vadd.f32 %v7377_v12, %v2552_v40  ;;  %v4558_v48 = vpop.f32.mrb[57].mxu0  ;;  %v7384_v40 = vld [vmem:[#allocation11 + $0x8] ss:$16 sps:$4 sm:$0xff]  }
0x174e   :  { %v2555_v53 = vpop.f32.mrb[58].mxu0  ;;  %v2597_v15 = vpop.f32.mrb[64].mxu1  ;;  %v7411_v48 = vld [vmem:[#allocation11 + $0xac] ss:$16 sps:$4 sm:$0xff]  }
0x174f   :  { %v2598_v31 = vadd.f32 %v7380_v28, %v2597_v15  ;;  %v4559_v21 = vpop.f32.mrb[59].mxu0  ;;  %v4576_v14 = vpop.f32.mrb[65].mxu1  ;;  %v2558_v45 = vmax.f32 %v2553_v20, 0.0  ;;  %v7387_v53 = vld [vmem:[#allocation11 + $0x2c] ss:$16 sps:$4 sm:$0xff]   ;;  %8321 = vst [vmem:[#allocation64_spill] sm:$0xff] %v7411_v48 }
0x1750   :  { %v2600_v49 = vpop.f32.mrb[66].mxu1  ;;  %v7390_v15 = vld [vmem:[#allocation11 + $0x28] ss:$16 sps:$4 sm:$0xff]   ;;  %v7393_v20 = vld [vmem:[#allocation11 + $0x4c] ss:$16 sps:$4 sm:$0xff]  }
0x1751   :  { %v2603_v43 = vmax.f32 %v2598_v31, 0.0  ;;  %v4577_v47 = vpop.f32.mrb[67].mxu1  ;;  %v2604_v44 = vpack.c.bf16 %v2558_v45, %v2558_v45  ;;  %v7408_v45 = vld [vmem:[#allocation11 + $0x88] ss:$16 sps:$4 sm:$0xff]   ;;  %v7417_v31 = vld [vmem:[#allocation11 + $0xcc] ss:$16 sps:$4 sm:$0xff]  }
0x1752   :  { %8320 = vst [vmem:[#allocation63_spill] sm:$0xff] %v7408_v45  ;;  %v7414_v21 = vld [vmem:[#allocation11 + $0xa8] ss:$16 sps:$4 sm:$0xff]   ;;  %8323 = vst [vmem:[#allocation66_spill] sm:$0xff] %v7417_v31  ;;  %v7423_v49 = vld [vmem:[#allocation11 + $0xec] ss:$16 sps:$4 sm:$0xff]  }
0x1753   :  { %v2605_v46 = vpack.c.bf16 %v2603_v43, %v2603_v43  ;;  %v7405_v43 = vld [vmem:[#allocation11 + $0x8c] ss:$16 sps:$4 sm:$0xff]   ;;  %8322 = vst [vmem:[#allocation65_spill] sm:$0xff] %v7414_v21  ;;  %v7420_v14 = vld [vmem:[#allocation11 + $0xc8] ss:$16 sps:$4 sm:$0xff]   ;;  %8325 = vst [vmem:[#allocation70_spill] sm:$0xff] %v7423_v49 }
0x1754   :  { %8319 = vst [vmem:[#allocation62_spill] sm:$0xff] %v7405_v43  ;;  %8324 = vst [vmem:[#allocation68_spill] sm:$0xff] %v7420_v14  ;;  %v7426_v47 = vld [vmem:[#allocation11 + $0xe8] ss:$16 sps:$4 sm:$0xff]  }
0x1755   :  { %2638 = vmatprep.mubr.bf16.mxu0 %v2605_v46  ;;  %v7396_v46 = vld [vmem:[#allocation11 + $0x48] ss:$16 sps:$4 sm:$0xff]   ;;  %8326 = vst [vmem:[#allocation72_spill] sm:$0xff] %v7426_v47 }
0x1756   :  { %2639 = vmatmul.mubr.bf16.vlgmr.msra.gmra.mrb[60].mxu0 %v2604_v44  ;;  %8316 = vst [vmem:[#allocation59_spill] sm:$0xff] %v7396_v46  ;;  %v7402_v44 = vld [vmem:[#allocation11 + $0x68] ss:$16 sps:$4 sm:$0xff]  }
0x1757   :  { %2748 = vmatprep.mubr.bf16.mxu0 %v7228_v26  ;;  %2717 = vmatpush1.bf16.msra.mxu0 %v7384_v40  ;;  %v7399_v26 = vld [vmem:[#allocation11 + $0x6c] ss:$16 sps:$4 sm:$0xff]   ;;  %8318 = vst [vmem:[#allocation61_spill] sm:$0xff] %v7402_v44 }
0x1758   :  { %2718 = vmatprep.subr.bf16.mxu0 %v7387_v53  ;;  %8317 = vst [vmem:[#allocation60_spill] sm:$0xff] %v7399_v26 }
0x175b   :  { %2719 = vmatpush1.bf16.msra.mxu0 %v7390_v15 }
0x175c   :  { %2720 = vmatprep.subr.bf16.mxu0 %v7393_v20 }
0x175f   :  { %2721 = vmatpush1.bf16.msra.mxu0 %v7396_v46 }
0x1760   :  { %2722 = vmatprep.subr.bf16.mxu0 %v7399_v26 }
0x1763   :  { %2723 = vmatpush1.bf16.msra.mxu0 %v7402_v44 }
0x1764   :  { %2724 = vmatprep.subr.bf16.mxu0 %v7405_v43 }
0x1767   :  { %2725 = vmatpush1.bf16.msra.mxu0 %v7408_v45 }
0x1768   :  { %2726 = vmatprep.subr.bf16.mxu0 %v7411_v48  ;;  %v7429_v48 = vld [vmem:[#allocation11 + $0x10c] ss:$16 sps:$4 sm:$0xff]  }
0x1769   :  { %8327 = vst [vmem:[#allocation73_spill] sm:$0xff] %v7429_v48 }
0x176b   :  { %2727 = vmatpush1.bf16.msra.mxu0 %v7414_v21  ;;  %v7432_v21 = vld [vmem:[#allocation11 + $0x108] ss:$16 sps:$4 sm:$0xff]  }
0x176c   :  { %2728 = vmatprep.subr.bf16.mxu0 %v7417_v31  ;;  %8328 = vst [vmem:[#allocation74_spill] sm:$0xff] %v7432_v21  ;;  %v7435_v31 = vld [vmem:[#allocation11 + $0x12c] ss:$16 sps:$4 sm:$0xff]  }
0x176d   :  { %8329 = vst [vmem:[#allocation75_spill] sm:$0xff] %v7435_v31 }
0x176f   :  { %2729 = vmatpush1.bf16.msra.mxu0 %v7420_v14  ;;  %v7438_v14 = vld [vmem:[#allocation11 + $0x128] ss:$16 sps:$4 sm:$0xff]  }
0x1770   :  { %2730 = vmatprep.subr.bf16.mxu0 %v7423_v49  ;;  %8330 = vst [vmem:[#allocation76_spill] sm:$0xff] %v7438_v14  ;;  %v7441_v49 = vld [vmem:[#allocation11 + $0x14c] ss:$16 sps:$4 sm:$0xff]  }
0x1771   :  { %8331 = vst [vmem:[#allocation77_spill] sm:$0xff] %v7441_v49 }
0x1773   :  { %2731 = vmatpush1.bf16.msra.mxu0 %v7426_v47  ;;  %v7444_v47 = vld [vmem:[#allocation11 + $0x148] ss:$16 sps:$4 sm:$0xff]  }
0x1774   :  { %2732 = vmatprep.subr.bf16.mxu0 %v7429_v48  ;;  %8332 = vst [vmem:[#allocation78_spill] sm:$0xff] %v7444_v47  ;;  %v7447_v48 = vld [vmem:[#allocation11 + $0x16c] ss:$16 sps:$4 sm:$0xff]  }
0x1775   :  { %8333 = vst [vmem:[#allocation79_spill] sm:$0xff] %v7447_v48 }
0x1777   :  { %2733 = vmatpush1.bf16.msra.mxu0 %v7432_v21  ;;  %v7450_v21 = vld [vmem:[#allocation11 + $0x168] ss:$16 sps:$4 sm:$0xff]  }
0x1778   :  { %2734 = vmatprep.subr.bf16.mxu0 %v7435_v31  ;;  %8334 = vst [vmem:[#allocation80_spill] sm:$0xff] %v7450_v21  ;;  %v7453_v31 = vld [vmem:[#allocation11 + $0x18c] ss:$16 sps:$4 sm:$0xff]  }
0x1779   :  { %8335 = vst [vmem:[#allocation24_spill] sm:$0xff] %v7453_v31 }
0x177b   :  { %2735 = vmatpush1.bf16.msra.mxu0 %v7438_v14  ;;  %v7456_v14 = vld [vmem:[#allocation11 + $0x188] ss:$16 sps:$4 sm:$0xff]  }
0x177c   :  { %2736 = vmatprep.subr.bf16.mxu0 %v7441_v49  ;;  %8336 = vst [vmem:[#allocation81_spill] sm:$0xff] %v7456_v14  ;;  %v7459_v49 = vld [vmem:[#allocation11 + $0x1ac] ss:$16 sps:$4 sm:$0xff]  }
0x177d   :  { %8337 = vst [vmem:[#allocation85_spill] sm:$0xff] %v7459_v49 }
0x177f   :  { %2737 = vmatpush1.bf16.msra.mxu0 %v7444_v47  ;;  %v7462_v47 = vld [vmem:[#allocation11 + $0x1a8] ss:$16 sps:$4 sm:$0xff]  }
0x1780   :  { %2738 = vmatprep.subr.bf16.mxu0 %v7447_v48  ;;  %8338 = vst [vmem:[#allocation30_spill] sm:$0xff] %v7462_v47  ;;  %v7465_v48 = vld [vmem:[#allocation11 + $0x1cc] ss:$16 sps:$4 sm:$0xff]  }
0x1781   :  { %8339 = vst [vmem:[#allocation31_spill] sm:$0xff] %v7465_v48 }
0x1783   :  { %2739 = vmatpush1.bf16.msra.mxu0 %v7450_v21  ;;  %v7468_v21 = vld [vmem:[#allocation11 + $0x1c8] ss:$16 sps:$4 sm:$0xff]  }
0x1784   :  { %2740 = vmatprep.subr.bf16.mxu0 %v7453_v31  ;;  %8340 = vst [vmem:[#allocation32_spill] sm:$0xff] %v7468_v21  ;;  %v7471_v31 = vld [vmem:[#allocation11 + $0x1ec] ss:$16 sps:$4 sm:$0xff]  }
0x1787   :  { %2741 = vmatpush1.bf16.msra.mxu0 %v7456_v14  ;;  %v7474_v14 = vld [vmem:[#allocation11 + $0x1e8] ss:$16 sps:$4 sm:$0xff]  }
0x1788   :  { %2742 = vmatprep.subr.bf16.mxu0 %v7459_v49 }
0x178b   :  { %2743 = vmatpush1.bf16.msra.mxu0 %v7462_v47 }
0x178c   :  { %2744 = vmatprep.subr.bf16.mxu0 %v7465_v48  ;;  %v7478_v48 = vld [vmem:[#allocation10] ss:$0 sm:$0xff] }
0x178f   :  { %2745 = vmatpush1.bf16.msra.mxu0 %v7468_v21 }
0x1790   :  { %2746 = vmatprep.subr.bf16.mxu0 %v7471_v31 }
0x1793   :  { %2747 = vmatpush1.bf16.msra.mxu0 %v7474_v14 }
0x1794   :  { %4598 = vmatprep.subr.bf16.mxu0 %v8026_v55 }
0x1829   :  { %v4187_v49 = vpop.f32.mrb[60].mxu0 }
0x182a   :  { %v4188_v47 = vpop.f32.mrb[61].mxu0 }
0x182b   :  { %v4189_v45 = vadd.f32 %v4188_v47, %v4187_v49  ;;  %v4190_v43 = vpop.f32.mrb[62].mxu0 }
0x182c   :  { %v4191_v44 = vpop.f32.mrb[63].mxu0 }
0x182d   :  { %v2641_v26 = vadd.f32 %v7478_v48, %v4189_v45 }
0x182f   :  { %v2646_v21 = vmax.f32 %v2641_v26, 0.0 }
0x1831   :  { %v2673_v46 = vpack.c.bf16 %v2646_v21, %v2646_v21 }
0x1833   :  { %2708 = vmatmul.mubr.bf16.vlgmr.msra.gmra.mrb[68].mxu1 %v2673_v46  ;;  %2749 = vmatmul.mubr.bf16.vlgmr.msra.gmra.mrb[64].mxu0 %v2673_v46 }
0x1834   :  { %4579 = vmatpush3.bf16.msra.mxu1 %v8277_v32  ;;  %4594 = vmatprep.mubr.msk.bf16.mxu1 %vm5509_vm0, %v8026_v55  ;;  %v5254_v32 = vld [vmem:[%s7676_s5 + $0x40] sm:$0xff]  }
0x1835   :  { %4580 = vmatprep.subr.bf16.mxu1 %v8026_v55  ;;  %4599 = vmatpush3.bf16.msra.mxu0 %v7096_v8  ;;  %v2666_v8 = vpop.xlane.xlu0 %2665 }
0x1836   :  { %4600 = vmatprep.subr.bf16.mxu0 %v8026_v55  ;;  %4612 = vmatprep.mubr.msk.bf16.mxu0 %vm5509_vm0, %v8026_v55 }
0x1838   :  { %4581 = vmatpush3.bf16.msra.mxu1 %v8278_v5  ;;  %v2667_v5 = vmul.f32 0.0078125, %v2666_v8 }
0x1839   :  { %4582 = vmatprep.subr.bf16.mxu1 %v8026_v55  ;;  %4601 = vmatpush3.bf16.msra.mxu0 %v7104_v57 }
0x183a   :  { %4602 = vmatprep.subr.bf16.mxu0 %v8026_v55 }
0x183c   :  { %4583 = vmatpush3.bf16.msra.mxu1 %v8279_v25 }
0x183d   :  { %4584 = vmatprep.subr.bf16.mxu1 %v8026_v55  ;;  %4603 = vmatpush3.bf16.msra.mxu0 %v7110_v6 }
0x183e   :  { %4604 = vmatprep.subr.bf16.mxu0 %v8026_v55 }
0x1840   :  { %4585 = vmatpush3.bf16.msra.mxu1 %v8280_v39 }
0x1841   :  { %4586 = vmatprep.subr.bf16.mxu1 %v8026_v55  ;;  %4605 = vmatpush3.bf16.msra.mxu0 %v7116_v2 }
0x1842   :  { %4606 = vmatprep.subr.bf16.mxu0 %v8026_v55 }
0x1844   :  { %4587 = vmatpush3.bf16.msra.mxu1 %v8281_v34 }
0x1845   :  { %4588 = vmatprep.subr.bf16.mxu1 %v8026_v55  ;;  %4607 = vmatpush3.bf16.msra.mxu0 %v7122_v50 }
0x1846   :  { %4608 = vmatprep.subr.bf16.mxu0 %v8026_v55 }
0x1848   :  { %4589 = vmatpush3.bf16.msra.mxu1 %v8282_v17 }
0x1849   :  { %4590 = vmatprep.subr.bf16.mxu1 %v8026_v55  ;;  %4609 = vmatpush3.bf16.msra.mxu0 %v7128_v58  ;;  %v2668_v58 = vadd.f32 1e-05, %v2667_v5 }
0x184a   :  { %4610 = vmatprep.subr.bf16.mxu0 %v8026_v55 }
0x184c   :  { %4591 = vmatpush3.bf16.msra.mxu1 %v8283_v33 }
0x184d   :  { %4592 = vmatprep.subr.bf16.mxu1 %v8026_v55  ;;  %4611 = vmatpush3.bf16.msra.mxu0 %v7134_v13 }
0x184e   :  { %4218 = vmatprep.subr.bf16.mxu0 %v5254_v32 }
0x1850   :  { %4593 = vmatpush3.bf16.msra.mxu1 %v8285_v60 }
0x1851   :  { %4616 = vmatprep.subr.bf16.mxu1 %v8026_v55 }
0x1906   :  { %v2709_v57 = vpop.f32.mrb[68].mxu1  ;;  %v2750_v25 = vpop.f32.mrb[64].mxu0 }
0x1907   :  { %v2710_v6 = vadd.f32 %v2709_v57, %v8286_v7  ;;  %v2711_v39 = vpop.f32.mrb[69].mxu1  ;;  %v2752_v2 = vpop.f32.mrb[65].mxu0  ;;  %v2751_v43 = vadd.f32 %v2750_v25, %v6195_v61 }
0x1908   :  { %v2712_v34 = vadd.f32 %v2711_v39, %v6188_v56  ;;  %v2713_v50 = vpop.f32.mrb[70].mxu1  ;;  %v2754_v17 = vpop.f32.mrb[66].mxu0  ;;  %v2753_v60 = vadd.f32 %v2752_v2, %v6192_v10 }
0x1909   :  { %v3845_v33 = vmul.f32 -1.442695, %v2710_v6  ;;  %v2714_v13 = vpop.f32.mrb[71].mxu1  ;;  %v2755_v46 = vpop.f32.mrb[67].mxu0 }
0x190a   :  { %v3846_v26 = vmul.f32 -1.442695, %v2712_v34  ;;  %v3847_v44 = vmul.f32 -1.442695, %v2753_v60 }
0x190b   :  { %5004 = vpow2.f32 %v3845_v33 }
0x190c   :  { %5006 = vpow2.f32 %v3846_v26 }
0x190d   :  { %5008 = vrsqrt.f32 %v2668_v58 }
0x190e   :  { %5010 = vpow2.f32 %v3847_v44 }
0x190f   :  { %5012 = vtanh.f32 %v2751_v43 }
0x1915   :  { %v5005_v45 = vpop.eup %5004 }
0x1916   :  { %v5007_v21 = vpop.eup %5006  ;;  %v2760_v49 = vadd.f32 1.0, %v5005_v45 }
0x1917   :  { %v5009_v47 = vpop.eup %5008  ;;  %v2766_v32 = vadd.f32 1.0, %v5007_v21 }
0x1918   :  { %5014 = vrcp.f32 %v2760_v49  ;;  %v2670_v8 = vmul.f32 %v5009_v47, %v7181_v36  ;;  %v5011_v57 = vpop.eup %5010 }
0x1919   :  { %5016 = vrcp.f32 %v2766_v32  ;;  %v5013_v6 = vpop.eup %5012  ;;  %v2773_v50 = vadd.f32 1.0, %v5011_v57 }
0x191a   :  { %v2671_v5 = vmul.f32 %v6968_v18, %v2670_v8 }
0x191b   :  { %5018 = vrcp.f32 %v2773_v50 }
0x191c   :  { %v2672_v2 = vadd.f32 %v6974_v11, %v2671_v5 }
0x1922   :  { %v5015_v39 = vpop.eup %5014 }
0x1923   :  { %v5017_v34 = vpop.eup %5016  ;;  %v2777_v25 = vmul.f32 %v5015_v39, %v5013_v6 }
0x1924   :  { %v2776_v17 = vmul.f32 %v5017_v34, %v2672_v2 }
0x1925   :  { %v5019_v33 = vpop.eup %5018 }
0x1926   :  { %v2778_v58 = vadd.f32 %v2777_v25, %v2776_v17  ;;  %v7555_v17 = vld [vmem:[%s7680_s9] ss:$0 sm:$0xff] }
0x1928   :  { %5020 = vtanh.f32 %v2778_v58 }
0x1932   :  { %v5021_v13 = vpop.eup %5020 }
0x1933   :  { %v2780_v46 = vmul.f32 %v5021_v13, %v5019_v33  ;;  %v8353_v33 = vld [vmem:[#allocation41_spill] sm:$0xff]  ;;  %v8354_v13 = vld [vmem:[#allocation42_spill] sm:$0xff] }
0x1935   :  { %2968 = vadd.xlane.f32.xlu0 %v2780_v46  ;;  %v2781_v26 = vpack.c.bf16 %v2780_v46, %v2780_v46 }
0x1937   :  { %4595 = vmatmul.mubr.bf16.vlgmr.msra.gmra.mrb[72].mxu1 %v2781_v26  ;;  %v8356_v26 = vld [vmem:[#allocation44_spill] sm:$0xff] }
0x1938   :  { %4617 = vmatpush3.bf16.msra.mxu1 %v7147_v16  ;;  %4630 = vmatprep.mubr.msk.bf16.mxu1 %vm5509_vm0, %v8026_v55 }
0x1939   :  { %2981 = vadd.xlane.f32.xlu0 %v2778_v58  ;;  %4618 = vmatprep.subr.bf16.mxu1 %v8026_v55 }
0x193c   :  { %4619 = vmatpush3.bf16.msra.mxu1 %v7153_v3 }
0x193d   :  { %4620 = vmatprep.subr.bf16.mxu1 %v8026_v55 }
0x1940   :  { %4621 = vmatpush3.bf16.msra.mxu1 %v7157_v54 }
0x1941   :  { %4622 = vmatprep.subr.bf16.mxu1 %v8026_v55 }
0x1944   :  { %4623 = vmatpush3.bf16.msra.mxu1 %v7161_v22 }
0x1945   :  { %4624 = vmatprep.subr.bf16.mxu1 %v8026_v55 }
0x1948   :  { %4625 = vmatpush3.bf16.msra.mxu1 %v7165_v59 }
0x1949   :  { %4626 = vmatprep.subr.bf16.mxu1 %v8026_v55 }
0x194c   :  { %4627 = vmatpush3.bf16.msra.mxu1 %v7169_v4 }
0x194d   :  { %4628 = vmatprep.subr.bf16.mxu1 %v8026_v55 }
0x1950   :  { %4629 = vmatpush3.bf16.msra.mxu1 %v7173_v1 }
0x1951   :  { %2996 = vmatprep.subr.bf16.mxu1 %v7176_v35 }
0x19c2   :  { %v2969_v60 = vpop.xlane.xlu0 %2968 }
0x19c3   :  { %v2970_v44 = vmul.f32 0.0078125, %v2969_v60  ;;  %v8365_v60 = vld [vmem:[#allocation27_spill] sm:$0xff] }
0x19c5   :  { %v2971_v55 = vsub.f32 %v2780_v46, %v2970_v44  ;;  %v8355_v46 = vld [vmem:[#allocation43_spill] sm:$0xff]  ;;  %v8366_v44 = vld [vmem:[#allocation28_spill] sm:$0xff] }
0x19c6   :  { %v2982_v4 = vpop.xlane.xlu0 %2981 }
0x19c7   :  { %v2983_v45 = vmul.f32 0.0078125, %v2982_v4  ;;  %v8367_v4 = vld [vmem:[#allocation29_spill] sm:$0xff] }
0x19c9   :  { %v7542_v35 = vsub.f32 %v2778_v58, %v2983_v45  ;;  %v8352_v58 = vld [vmem:[#allocation40_spill] sm:$0xff]  ;;  %v5257_v45 = vld [vmem:[#allocation11 + $0x1c4] ss:$16 sps:$4 sm:$0xff]  }
0x19cb   :  { %v2985_v21 = vmul.f32 %v7542_v35, %v7542_v35 }
0x1a0a   :  { %v2816_v18 = vpop.f32.mrb[72].mxu1 }
0x1a0b   :  { %v2817_v11 = vadd.f32 %v6996_v19, %v2816_v18  ;;  %v4596_v16 = vpop.f32.mrb[73].mxu1  ;;  %v2972_v19 = vmul.f32 %v2971_v55, %v2971_v55  ;;  %v8357_v18 = vld [vmem:[#allocation45_spill] sm:$0xff] }
0x1a0c   :  { %v2819_v3 = vpop.f32.mrb[74].mxu1  ;;  %v8359_v16 = vld [vmem:[#allocation47_spill] sm:$0xff] }
0x1a0d   :  { %v3848_v54 = vmul.f32 -1.442695, %v2817_v11  ;;  %v4597_v22 = vpop.f32.mrb[75].mxu1  ;;  %v8358_v11 = vld [vmem:[#allocation46_spill] sm:$0xff]  ;;  %v8360_v3 = vld [vmem:[#allocation48_spill] sm:$0xff] }
0x1a0e   :  { %v8362_v22 = vld [vmem:[#allocation50_spill] sm:$0xff] }
0x1a0f   :  { %5022 = vpow2.f32 %v3848_v54  ;;  %v8361_v54 = vld [vmem:[#allocation49_spill] sm:$0xff] }
0x1a19   :  { %v5023_v36 = vpop.eup %5022 }
0x1a1a   :  { %v2825_v59 = vadd.f32 1.0, %v5023_v36  ;;  %v8363_v36 = vld [vmem:[#allocation51_spill] sm:$0xff] }
0x1a1c   :  { %5024 = vrcp.f32 %v2825_v59  ;;  %v8364_v59 = vld [vmem:[#allocation52_spill] sm:$0xff] }
0x1a26   :  { %v5025_v43 = vpop.eup %5024 }
0x1a27   :  { %v2828_v1 = vsel %vm377_vm1, %v5025_v43, 0.0 }
0x1a28   :  { %2829 = vadd.xlane.f32.xlu1 %v2828_v1  ;;  %v5258_v1 = vld [vmem:[#allocation11 + $0x1c0] ss:$16 sps:$4 sm:$0xff]  }
0x1a2c   :  { %2973 = vadd.xlane.f32.xlu1 %v2972_v19  ;;  %v5259_v19 = vld [vmem:[#allocation11 + $0x1e4] ss:$16 sps:$4 sm:$0xff]  }
0x1a30   :  { %2986 = vadd.xlane.f32.xlu1 %v2985_v21  ;;  %v5260_v21 = vld [vmem:[#allocation11 + $0x1e0] ss:$16 sps:$4 sm:$0xff]  }
0x1ab5   :  { %v2830_v49 = vpop.xlane.xlu1 %2829 }
0x1ab6   :  { %v2831_v47 = vmul.f32 0.0625, %v2830_v49 }
0x1ab8   :  { %5026 = vrcp.f32 %v2831_v47 }
0x1ab9   :  { %v2974_v32 = vpop.xlane.xlu1 %2973 }
0x1aba   :  { %v2975_v8 = vmul.f32 0.0078125, %v2974_v32 }
0x1abc   :  { %v2976_v5 = vadd.f32 1e-05, %v2975_v8 }
0x1abe   :  { %5028 = vrsqrt.f32 %v2976_v5 }
0x1ac2   :  { %v5027_v57 = vpop.eup %5026 }
0x1ac3   :  { %v2833_v6 = vmul.f32 %v5027_v57, %v5025_v43  ;;  %v8368_v43 = vld [vmem:[#allocation57_spill] sm:$0xff] }
0x1ac5   :  { %v2835_v39 = vpack.c.bf16 %v2833_v6, %v2833_v6  ;;  %v2834_v2 = vmul.f32 %v7188_v0, %v2833_v6 }
0x1ac7   :  { %4613 = vmatmul.mubr.msk.bf16.vlgmr.msra.gmra.mrb[68].mxu0 %vm377_vm1, %v2835_v39  ;;  %v2880_v34 = vpack.c.bf16 %v2834_v2, %v2834_v2 }
0x1ac8   :  { %v5029_v25 = vpop.eup %5028  ;;  %4219 = vmatpush3.bf16.msra.mxu0 %v7195_v9  ;;  %v7563_v9 = vld [vmem:[%s7681_s10] ss:$0 sm:$0xff] }
0x1ac9   :  { %4631 = vmatmul.mubr.msk.bf16.vlgmr.msra.gmra.mrb[76].mxu1 %vm377_vm1, %v2880_v34  ;;  %v2978_v50 = vmul.f32 %v5029_v25, %v2971_v55  ;;  %4220 = vmatprep.subr.bf16.mxu0 %v7202_v52  ;;  %v8369_v55 = vld [vmem:[#allocation58_spill] sm:$0xff] }
0x1aca   :  { %2997 = vmatpush1.bf16.msra.mxu1 %v7205_v62 }
0x1acb   :  { %v2979_v0 = vmul.f32 %v7555_v17, %v2978_v50  ;;  %2998 = vmatprep.subr.bf16.mxu1 %v7209_v63  ;;  %v8341_v63 = vld [vmem:[#allocation26_spill] sm:$0xff] }
0x1acc   :  { %4221 = vmatpush3.bf16.msra.mxu0 %v7215_v51  ;;  %v8342_v51 = vld [vmem:[#allocation33_spill] sm:$0xff] }
0x1acd   :  { %v2980_v52 = vadd.f32 %v7563_v9, %v2979_v0  ;;  %4222 = vmatprep.subr.bf16.mxu0 %v7222_v23  ;;  %v8343_v23 = vld [vmem:[#allocation34_spill] sm:$0xff] }
0x1ace   :  { %2999 = vmatpush1.bf16.msra.mxu1 %v7225_v24  ;;  %v8344_v24 = vld [vmem:[#allocation35_spill] sm:$0xff] }
0x1acf   :  { %v2995_v62 = vpack.c.bf16 %v2980_v52, %v2980_v52  ;;  %3000 = vmatprep.subr.bf16.mxu1 %v7230_v27  ;;  %v8345_v27 = vld [vmem:[#allocation36_spill] sm:$0xff] }
0x1ad0   :  { %4223 = vmatpush3.bf16.msra.mxu0 %v7236_v29  ;;  %v8346_v29 = vld [vmem:[#allocation67_spill] sm:$0xff] }
0x1ad1   :  { %3028 = vmatprep.mubr.bf16.mxu1 %v2995_v62  ;;  %4224 = vmatprep.subr.bf16.mxu0 %v7243_v30  ;;  %v8347_v30 = vld [vmem:[#allocation69_spill] sm:$0xff] }
0x1ad2   :  { %3001 = vmatpush1.bf16.msra.mxu1 %v7246_v37  ;;  %v8348_v37 = vld [vmem:[#allocation71_spill] sm:$0xff] }
0x1ad3   :  { %3002 = vmatprep.subr.bf16.mxu1 %v7249_v38  ;;  %v8349_v38 = vld [vmem:[#allocation37_spill] sm:$0xff] }
0x1ad4   :  { %4225 = vmatpush3.bf16.msra.mxu0 %v7255_v41  ;;  %v8350_v41 = vld [vmem:[#allocation38_spill] sm:$0xff] }
0x1ad5   :  { %4226 = vmatprep.subr.bf16.mxu0 %v7261_v42  ;;  %v8351_v42 = vld [vmem:[#allocation39_spill] sm:$0xff] }
0x1ad6   :  { %3003 = vmatpush1.bf16.msra.mxu1 %v8341_v63  ;;  %v8372_v63 = vld [vmem:[#allocation61_spill] sm:$0xff] }
0x1ad7   :  { %3004 = vmatprep.subr.bf16.mxu1 %v8342_v51  ;;  %v8373_v51 = vld [vmem:[#allocation62_spill] sm:$0xff] }
0x1ad8   :  { %4227 = vmatpush3.bf16.msra.mxu0 %v8343_v23  ;;  %v8374_v23 = vld [vmem:[#allocation63_spill] sm:$0xff] }
0x1ad9   :  { %4228 = vmatprep.subr.bf16.mxu0 %v8344_v24  ;;  %v8375_v24 = vld [vmem:[#allocation64_spill] sm:$0xff] }
0x1ada   :  { %3005 = vmatpush1.bf16.msra.mxu1 %v8345_v27  ;;  %v8381_v27 = vld [vmem:[#allocation73_spill] sm:$0xff] }
0x1adb   :  { %3006 = vmatprep.subr.bf16.mxu1 %v8346_v29  ;;  %v8382_v29 = vld [vmem:[#allocation74_spill] sm:$0xff] }
0x1adc   :  { %4229 = vmatpush3.bf16.msra.mxu0 %v8347_v30  ;;  %v8383_v30 = vld [vmem:[#allocation75_spill] sm:$0xff] }
0x1add   :  { %4230 = vmatprep.subr.bf16.mxu0 %v8348_v37  ;;  %v8384_v37 = vld [vmem:[#allocation76_spill] sm:$0xff] }
0x1ade   :  { %3007 = vmatpush1.bf16.msra.mxu1 %v8349_v38  ;;  %v8385_v38 = vld [vmem:[#allocation77_spill] sm:$0xff] }
0x1adf   :  { %3008 = vmatprep.subr.bf16.mxu1 %v8350_v41  ;;  %v8386_v41 = vld [vmem:[#allocation78_spill] sm:$0xff] }
0x1ae0   :  { %4231 = vmatpush3.bf16.msra.mxu0 %v8351_v42  ;;  %v8387_v42 = vld [vmem:[#allocation79_spill] sm:$0xff] }
0x1ae1   :  { %4232 = vmatprep.subr.bf16.mxu0 %v8352_v58  ;;  %v8388_v58 = vld [vmem:[#allocation80_spill] sm:$0xff] }
0x1ae2   :  { %3009 = vmatpush1.bf16.msra.mxu1 %v8353_v33  ;;  %v8389_v33 = vld [vmem:[#allocation24_spill] sm:$0xff] }
0x1ae3   :  { %3010 = vmatprep.subr.bf16.mxu1 %v8354_v13  ;;  %v8390_v13 = vld [vmem:[#allocation81_spill] sm:$0xff] }
0x1ae4   :  { %4233 = vmatpush3.bf16.msra.mxu0 %v8355_v46  ;;  %v8391_v46 = vld [vmem:[#allocation85_spill] sm:$0xff] }
0x1ae5   :  { %3037 = vmatprep.subr.bf16.mxu0 %v8356_v26  ;;  %v8392_v26 = vld [vmem:[#allocation30_spill] sm:$0xff] }
0x1ae6   :  { %3011 = vmatpush1.bf16.msra.mxu1 %v8357_v18  ;;  %v8393_v18 = vld [vmem:[#allocation31_spill] sm:$0xff] }
0x1ae7   :  { %3012 = vmatprep.subr.bf16.mxu1 %v8358_v11  ;;  %v8394_v11 = vld [vmem:[#allocation32_spill] sm:$0xff] }
0x1aea   :  { %3013 = vmatpush1.bf16.msra.mxu1 %v8359_v16 }
0x1aeb   :  { %3014 = vmatprep.subr.bf16.mxu1 %v8360_v3 }
0x1aee   :  { %3015 = vmatpush1.bf16.msra.mxu1 %v8361_v54 }
0x1aef   :  { %3016 = vmatprep.subr.bf16.mxu1 %v8362_v22 }
0x1af2   :  { %3017 = vmatpush1.bf16.msra.mxu1 %v8363_v36 }
0x1af3   :  { %3018 = vmatprep.subr.bf16.mxu1 %v8364_v59 }
0x1af6   :  { %3019 = vmatpush1.bf16.msra.mxu1 %v8365_v60 }
0x1af7   :  { %3020 = vmatprep.subr.bf16.mxu1 %v8366_v44 }
0x1afa   :  { %3021 = vmatpush1.bf16.msra.mxu1 %v8367_v4  ;;  %v8395_v4 = vmov 0  }
0x1afb   :  { %3022 = vmatprep.subr.bf16.mxu1 %v8368_v43  ;;  %v4790_v43 = vld [vmem:[#allocation13 + $0x4] ss:$8 sps:$4 sm:$0xff]  }
0x1afe   :  { %3023 = vmatpush1.bf16.msra.mxu1 %v8369_v55  ;;  %v4788_v55 = vld [vmem:[#allocation13] ss:$8 sps:$4 sm:$0xff]  }
0x1aff   :  { %3024 = vmatprep.subr.bf16.mxu1 %v5257_v45  ;;  %v4791_v45 = vld [vmem:[#allocation13 + $0x10] ss:$8 sps:$4 sm:$0xff]  }
0x1b02   :  { %3025 = vmatpush1.bf16.msra.mxu1 %v5258_v1  ;;  %v4794_v1 = vld [vmem:[#allocation13 + $0x20] ss:$8 sps:$4 sm:$0xff]  }
0x1b03   :  { %3026 = vmatprep.subr.bf16.mxu1 %v5259_v19  ;;  %v4799_v19 = vld [vmem:[#allocation13 + $0x34] ss:$8 sps:$4 sm:$0xff]  }
0x1b06   :  { %3027 = vmatpush1.bf16.msra.mxu1 %v5260_v21  ;;  %v4802_v21 = vld [vmem:[#allocation13 + $0x44] ss:$8 sps:$4 sm:$0xff]  }
0x1b07   :  { %3211 = vmatprep.subr.bf16.mxu1 %v4790_v43 }
0x1b9a   :  { %v2873_v49 = vpop.f32.mrb[68].mxu0 }
0x1b9b   :  { %v2874_v47 = vadd.f32 %v7377_v12, %v2873_v49  ;;  %v4614_v32 = vpop.f32.mrb[69].mxu0  ;;  %v8371_v12 = vld [vmem:[#allocation60_spill] sm:$0xff] }
0x1b9c   :  { %v2876_v8 = vpop.f32.mrb[70].mxu0  ;;  %v2918_v5 = vpop.f32.mrb[76].mxu1  ;;  %v4800_v49 = vld [vmem:[#allocation13 + $0x40] ss:$8 sps:$4 sm:$0xff]   ;;  %v4803_v32 = vld [vmem:[#allocation13 + $0x50] ss:$8 sps:$4 sm:$0xff]  }
0x1b9d   :  { %v2919_v57 = vadd.f32 %v7380_v28, %v2918_v5  ;;  %v4615_v6 = vpop.f32.mrb[71].mxu0  ;;  %v4632_v39 = vpop.f32.mrb[77].mxu1  ;;  %v2879_v2 = vmax.f32 %v2874_v47, 0.0  ;;  %v8370_v28 = vld [vmem:[#allocation59_spill] sm:$0xff]  ;;  %v4805_v47 = vld [vmem:[#allocation13 + $0x54] ss:$8 sps:$4 sm:$0xff]  }
0x1b9e   :  { %v2921_v34 = vpop.f32.mrb[78].mxu1  ;;  %v4808_v8 = vld [vmem:[#allocation13 + $0x64] ss:$8 sps:$4 sm:$0xff]   ;;  %v4806_v5 = vld [vmem:[#allocation13 + $0x60] ss:$8 sps:$4 sm:$0xff]  }
0x1b9f   :  { %v2924_v25 = vmax.f32 %v2919_v57, 0.0  ;;  %v4633_v50 = vpop.f32.mrb[79].mxu1  ;;  %v2925_v52 = vpack.c.bf16 %v2879_v2, %v2879_v2  ;;  %v4811_v57 = vld [vmem:[#allocation13 + $0x74] ss:$8 sps:$4 sm:$0xff]   ;;  %v4809_v6 = vld [vmem:[#allocation13 + $0x70] ss:$8 sps:$4 sm:$0xff]  }
0x1ba0   :  { %v4812_v39 = vld [vmem:[#allocation14] ss:$8 sps:$4 sm:$0xff]   ;;  %v4814_v2 = vld [vmem:[#allocation14 + $0x4] ss:$8 sps:$4 sm:$0xff]   ;;  %v4817_v34 = vld [vmem:[#allocation14 + $0x14] ss:$8 sps:$4 sm:$0xff]  }
0x1ba1   :  { %v2926_v0 = vpack.c.bf16 %v2924_v25, %v2924_v25  ;;  %v4815_v25 = vld [vmem:[#allocation14 + $0x10] ss:$8 sps:$4 sm:$0xff]   ;;  %v4820_v50 = vld [vmem:[#allocation14 + $0x24] ss:$8 sps:$4 sm:$0xff]  }
0x1ba3   :  { %2959 = vmatprep.mubr.bf16.mxu0 %v2926_v0  ;;  %v4818_v0 = vld [vmem:[#allocation14 + $0x20] ss:$8 sps:$4 sm:$0xff]  }
0x1ba4   :  { %2960 = vmatmul.mubr.bf16.vlgmr.msra.gmra.mrb[72].mxu0 %v2925_v52  ;;  %v4823_v52 = vld [vmem:[#allocation14 + $0x34] ss:$8 sps:$4 sm:$0xff]  }
0x1ba5   :  { %3069 = vmatprep.mubr.bf16.mxu0 %v2995_v62  ;;  %3038 = vmatpush1.bf16.msra.mxu0 %v7384_v40  ;;  %v8376_v62 = vld [vmem:[#allocation65_spill] sm:$0xff]  ;;  %v8377_v40 = vld [vmem:[#allocation66_spill] sm:$0xff] }
0x1ba6   :  { %3039 = vmatprep.subr.bf16.mxu0 %v7387_v53  ;;  %v8378_v53 = vld [vmem:[#allocation68_spill] sm:$0xff] }
0x1ba9   :  { %3040 = vmatpush1.bf16.msra.mxu0 %v7390_v15  ;;  %v8379_v15 = vld [vmem:[#allocation70_spill] sm:$0xff] }
0x1baa   :  { %3041 = vmatprep.subr.bf16.mxu0 %v7393_v20  ;;  %v8380_v20 = vld [vmem:[#allocation72_spill] sm:$0xff] }
0x1bad   :  { %3042 = vmatpush1.bf16.msra.mxu0 %v8370_v28  ;;  %v4821_v28 = vld [vmem:[#allocation14 + $0x30] ss:$8 sps:$4 sm:$0xff]  }
0x1bae   :  { %3043 = vmatprep.subr.bf16.mxu0 %v8371_v12  ;;  %v4826_v12 = vld [vmem:[#allocation14 + $0x44] ss:$8 sps:$4 sm:$0xff]  }
0x1bb1   :  { %3044 = vmatpush1.bf16.msra.mxu0 %v8372_v63  ;;  %v4824_v63 = vld [vmem:[#allocation14 + $0x40] ss:$8 sps:$4 sm:$0xff]  }
0x1bb2   :  { %3045 = vmatprep.subr.bf16.mxu0 %v8373_v51  ;;  %v4829_v51 = vld [vmem:[#allocation14 + $0x54] ss:$8 sps:$4 sm:$0xff]  }
0x1bb5   :  { %3046 = vmatpush1.bf16.msra.mxu0 %v8374_v23  ;;  %v4827_v23 = vld [vmem:[#allocation14 + $0x50] ss:$8 sps:$4 sm:$0xff]  }
0x1bb6   :  { %3047 = vmatprep.subr.bf16.mxu0 %v8375_v24  ;;  %v4832_v24 = vld [vmem:[#allocation14 + $0x64] ss:$8 sps:$4 sm:$0xff]  }
0x1bb9   :  { %3048 = vmatpush1.bf16.msra.mxu0 %v8376_v62  ;;  %v4830_v62 = vld [vmem:[#allocation14 + $0x60] ss:$8 sps:$4 sm:$0xff]  }
0x1bba   :  { %3049 = vmatprep.subr.bf16.mxu0 %v8377_v40  ;;  %v4835_v40 = vld [vmem:[#allocation14 + $0x74] ss:$8 sps:$4 sm:$0xff]  }
0x1bbd   :  { %3050 = vmatpush1.bf16.msra.mxu0 %v8378_v53  ;;  %v4833_v53 = vld [vmem:[#allocation14 + $0x70] ss:$8 sps:$4 sm:$0xff]  }
0x1bbe   :  { %3051 = vmatprep.subr.bf16.mxu0 %v8379_v15  ;;  %v4838_v15 = vld [vmem:[#allocation14 + $0x84] ss:$8 sps:$4 sm:$0xff]  }
0x1bc1   :  { %3052 = vmatpush1.bf16.msra.mxu0 %v8380_v20  ;;  %v4836_v20 = vld [vmem:[#allocation14 + $0x80] ss:$8 sps:$4 sm:$0xff]  }
0x1bc2   :  { %3053 = vmatprep.subr.bf16.mxu0 %v8381_v27  ;;  %v4841_v27 = vld [vmem:[#allocation14 + $0x94] ss:$8 sps:$4 sm:$0xff]  }
0x1bc5   :  { %3054 = vmatpush1.bf16.msra.mxu0 %v8382_v29  ;;  %v4839_v29 = vld [vmem:[#allocation14 + $0x90] ss:$8 sps:$4 sm:$0xff]  }
0x1bc6   :  { %3055 = vmatprep.subr.bf16.mxu0 %v8383_v30  ;;  %v4844_v30 = vld [vmem:[#allocation14 + $0xa4] ss:$8 sps:$4 sm:$0xff]  }
0x1bc9   :  { %3056 = vmatpush1.bf16.msra.mxu0 %v8384_v37  ;;  %v4842_v37 = vld [vmem:[#allocation14 + $0xa0] ss:$8 sps:$4 sm:$0xff]  }
0x1bca   :  { %3057 = vmatprep.subr.bf16.mxu0 %v8385_v38  ;;  %v4847_v38 = vld [vmem:[#allocation14 + $0xb4] ss:$8 sps:$4 sm:$0xff]  }
0x1bcd   :  { %3058 = vmatpush1.bf16.msra.mxu0 %v8386_v41  ;;  %v4845_v41 = vld [vmem:[#allocation14 + $0xb0] ss:$8 sps:$4 sm:$0xff]  }
0x1bce   :  { %3059 = vmatprep.subr.bf16.mxu0 %v8387_v42  ;;  %v4850_v42 = vld [vmem:[#allocation14 + $0xc4] ss:$8 sps:$4 sm:$0xff]  }
0x1bd1   :  { %3060 = vmatpush1.bf16.msra.mxu0 %v8388_v58  ;;  %v4848_v58 = vld [vmem:[#allocation14 + $0xc0] ss:$8 sps:$4 sm:$0xff]  }
0x1bd2   :  { %3061 = vmatprep.subr.bf16.mxu0 %v8389_v33  ;;  %v4853_v33 = vld [vmem:[#allocation14 + $0xd4] ss:$8 sps:$4 sm:$0xff]  }
0x1bd5   :  { %3062 = vmatpush1.bf16.msra.mxu0 %v8390_v13  ;;  %v4851_v13 = vld [vmem:[#allocation14 + $0xd0] ss:$8 sps:$4 sm:$0xff]  }
0x1bd6   :  { %3063 = vmatprep.subr.bf16.mxu0 %v8391_v46  ;;  %v2987_v46 = vpop.xlane.xlu1 %2986 }
0x1bd9   :  { %3064 = vmatpush1.bf16.msra.mxu0 %v8392_v26  ;;  %v2988_v26 = vmul.f32 0.0078125, %v2987_v46 }
0x1bda   :  { %3065 = vmatprep.subr.bf16.mxu0 %v8393_v18 }
0x1bdd   :  { %3066 = vmatpush1.bf16.msra.mxu0 %v8394_v11 }
0x1bde   :  { %3067 = vmatprep.subr.bf16.mxu0 %v7471_v31  ;;  %v4793_v31 = vld [vmem:[#allocation13 + $0x14] ss:$8 sps:$4 sm:$0xff]  }
0x1be1   :  { %3068 = vmatpush1.bf16.msra.mxu0 %v7474_v14  ;;  %v4796_v14 = vld [vmem:[#allocation13 + $0x24] ss:$8 sps:$4 sm:$0xff]  }
0x1be2   :  { %3460 = vmatprep.subr.bf16.mxu0 %v4814_v2 }
0x1c77   :  { %v4234_v16 = vpop.f32.mrb[72].mxu0 }
0x1c78   :  { %v4235_v3 = vpop.f32.mrb[73].mxu0 }
0x1c79   :  { %v4236_v54 = vadd.f32 %v4235_v3, %v4234_v16  ;;  %v4237_v22 = vpop.f32.mrb[74].mxu0 }
0x1c7a   :  { %v4238_v36 = vpop.f32.mrb[75].mxu0 }
0x1c7b   :  { %v2962_v59 = vadd.f32 %v7478_v48, %v4236_v54  ;;  %v4797_v48 = vld [vmem:[#allocation13 + $0x30] ss:$8 sps:$4 sm:$0xff]  }
0x1c7d   :  { %v2967_v60 = vmax.f32 %v2962_v59, 0.0 }
0x1c7f   :  { %v2994_v44 = vpack.c.bf16 %v2967_v60, %v2967_v60  ;;  %v2989_v60 = vadd.f32 1e-05, %v2988_v26 }
0x1c81   :  { %3029 = vmatmul.mubr.bf16.vlgmr.msra.gmra.mrb[80].mxu1 %v2994_v44  ;;  %3070 = vmatmul.mubr.bf16.vlgmr.msra.gmra.mrb[76].mxu0 %v2994_v44 }
0x1c82   :  { %3243 = vmatprep.mubr.bf16.mxu1 %v8395_v4  ;;  %3212 = vmatpush1.bf16.msra.mxu1 %v4788_v55 }
0x1c83   :  { %3213 = vmatprep.subr.bf16.mxu1 %v4793_v31  ;;  %3461 = vmatpush1.bf16.msra.mxu0 %v4812_v39 }
0x1c84   :  { %3462 = vmatprep.subr.bf16.mxu0 %v4817_v34 }
0x1c86   :  { %3214 = vmatpush1.bf16.msra.mxu1 %v4791_v45 }
0x1c87   :  { %3215 = vmatprep.subr.bf16.mxu1 %v4796_v14  ;;  %3463 = vmatpush1.bf16.msra.mxu0 %v4815_v25 }
0x1c88   :  { %3464 = vmatprep.subr.bf16.mxu0 %v4820_v50 }
0x1c8a   :  { %3216 = vmatpush1.bf16.msra.mxu1 %v4794_v1 }
0x1c8b   :  { %3217 = vmatprep.subr.bf16.mxu1 %v4799_v19  ;;  %3465 = vmatpush1.bf16.msra.mxu0 %v4818_v0  ;;  %v4854_v0 = vld [vmem:[#allocation14 + $0xe0] ss:$8 sps:$4 sm:$0xff]  }
0x1c8c   :  { %3466 = vmatprep.subr.bf16.mxu0 %v4823_v52  ;;  %v4857_v52 = vld [vmem:[#allocation14 + $0xf0] ss:$8 sps:$4 sm:$0xff]  }
0x1c8e   :  { %3218 = vmatpush1.bf16.msra.mxu1 %v4797_v48 }
0x1c8f   :  { %3219 = vmatprep.subr.bf16.mxu1 %v4802_v21  ;;  %3467 = vmatpush1.bf16.msra.mxu0 %v4821_v28  ;;  %v4861_v28 = vld [vmem:[#allocation16] sm:$0xff]  }
0x1c90   :  { %3468 = vmatprep.subr.bf16.mxu0 %v4826_v12  ;;  %v4862_v12 = vld [vmem:[#allocation16 + $0x48] sm:$0xff]  }
0x1c92   :  { %3220 = vmatpush1.bf16.msra.mxu1 %v4800_v49 }
0x1c93   :  { %3221 = vmatprep.subr.bf16.mxu1 %v4805_v47  ;;  %3469 = vmatpush1.bf16.msra.mxu0 %v4824_v63  ;;  %v4863_v63 = vld [vmem:[#allocation16 + $0x8] sm:$0xff]  }
0x1c94   :  { %3470 = vmatprep.subr.bf16.mxu0 %v4829_v51  ;;  %v4864_v51 = vld [vmem:[#allocation16 + $0x50] sm:$0xff]  }
0x1c96   :  { %3222 = vmatpush1.bf16.msra.mxu1 %v4803_v32 }
0x1c97   :  { %3223 = vmatprep.subr.bf16.mxu1 %v4808_v8  ;;  %3471 = vmatpush1.bf16.msra.mxu0 %v4827_v23  ;;  %v4865_v23 = vld [vmem:[#allocation16 + $0x10] sm:$0xff]  }
0x1c98   :  { %3472 = vmatprep.subr.bf16.mxu0 %v4832_v24  ;;  %v4866_v24 = vld [vmem:[#allocation16 + $0x58] sm:$0xff]  }
0x1c9a   :  { %3224 = vmatpush1.bf16.msra.mxu1 %v4806_v5 }
0x1c9b   :  { %3225 = vmatprep.subr.bf16.mxu1 %v4811_v57  ;;  %3473 = vmatpush1.bf16.msra.mxu0 %v4830_v62  ;;  %v4867_v62 = vld [vmem:[#allocation16 + $0x18] sm:$0xff]  }
0x1c9c   :  { %3474 = vmatprep.subr.bf16.mxu0 %v4835_v40  ;;  %v4868_v40 = vld [vmem:[#allocation16 + $0x60] sm:$0xff]  }
0x1c9e   :  { %3226 = vmatpush1.bf16.msra.mxu1 %v4809_v6 }
0x1c9f   :  { %3475 = vmatpush1.bf16.msra.mxu0 %v4833_v53  ;;  %v4869_v53 = vld [vmem:[#allocation16 + $0x20] sm:$0xff]  }
0x1ca0   :  { %3476 = vmatprep.subr.bf16.mxu0 %v4838_v15  ;;  %v4870_v15 = vld [vmem:[#allocation16 + $0x68] sm:$0xff]  }
0x1ca3   :  { %3477 = vmatpush1.bf16.msra.mxu0 %v4836_v20  ;;  %v4871_v20 = vld [vmem:[#allocation16 + $0x28] sm:$0xff]  }
0x1ca4   :  { %3478 = vmatprep.subr.bf16.mxu0 %v4841_v27  ;;  %v3119_v27 = vld [vmem:[%s7685_s14] sm:$0x3] }
0x1ca7   :  { %3479 = vmatpush1.bf16.msra.mxu0 %v4839_v29  ;;  %v8396_v29 = vld [vmem:[#allocation82_spill] sm:$0xff] }
0x1ca8   :  { %3480 = vmatprep.subr.bf16.mxu0 %v4844_v30  ;;  %v3124_v30 = vrot.slane %v3119_v27, %v8396_v29 }
0x1cab   :  { %3481 = vmatpush1.bf16.msra.mxu0 %v4842_v37  ;;  %v8397_v37 = vld [vmem:[#allocation83_spill] sm:$0xff] }
0x1cac   :  { %3482 = vmatprep.subr.bf16.mxu0 %v4847_v38  ;;  %v3128_v38 = vrot.slane %v3119_v27, %v8397_v37 }
0x1caf   :  { %3483 = vmatpush1.bf16.msra.mxu0 %v4845_v41 }
0x1cb0   :  { %3484 = vmatprep.subr.bf16.mxu0 %v4850_v42 }
0x1cb3   :  { %3485 = vmatpush1.bf16.msra.mxu0 %v4848_v58 }
0x1cb4   :  { %3486 = vmatprep.subr.bf16.mxu0 %v4853_v33 }
0x1cb7   :  { %3487 = vmatpush1.bf16.msra.mxu0 %v4851_v13 }
0x1d54   :  { %v3030_v18 = vpop.f32.mrb[80].mxu1  ;;  %v3071_v11 = vpop.f32.mrb[76].mxu0 }
0x1d55   :  { %v3031_v16 = vadd.f32 %v3030_v18, %v8286_v7  ;;  %v3032_v3 = vpop.f32.mrb[81].mxu1  ;;  %v3073_v54 = vpop.f32.mrb[77].mxu0  ;;  %v3072_v14 = vadd.f32 %v3071_v11, %v6195_v61 }
0x1d56   :  { %v3033_v22 = vadd.f32 %v3032_v3, %v6188_v56  ;;  %v3034_v36 = vpop.f32.mrb[82].mxu1  ;;  %v3075_v59 = vpop.f32.mrb[78].mxu0  ;;  %v3074_v31 = vadd.f32 %v3073_v54, %v6192_v10  ;;  %v4872_v3 = vld [vmem:[#allocation16 + $0x70] sm:$0xff]  }
0x1d57   :  { %v3851_v44 = vmul.f32 -1.442695, %v3031_v16  ;;  %v3035_v4 = vpop.f32.mrb[83].mxu1  ;;  %v3076_v43 = vpop.f32.mrb[79].mxu0  ;;  %v4873_v54 = vld [vmem:[#allocation16 + $0x30] sm:$0xff]   ;;  %v4875_v36 = vld [vmem:[#allocation16 + $0x38] sm:$0xff]  }
0x1d58   :  { %v3852_v55 = vmul.f32 -1.442695, %v3033_v22  ;;  %v3853_v45 = vmul.f32 -1.442695, %v3074_v31  ;;  %v4874_v22 = vld [vmem:[#allocation16 + $0x78] sm:$0xff]  }
0x1d59   :  { %5030 = vpow2.f32 %v3851_v44  ;;  %v3288_v59 = vld [vmem:[%s7687_s16] sm:$0x3]  ;;  %s5512_s16 = smov [#allocation17]  }
0x1d5a   :  { %5032 = vpow2.f32 %v3852_v55  ;;  %v3297_v44 = vrot.slane %v3288_v59, %v8397_v37  ;;  %s3693_s20 = sshll.u32 %s5512_s16, 4  ;;  %s3694_s20 = int_to_ptr.vmem [resolvable:$true] %s3693_s20 }
0x1d5b   :  { %5034 = vrsqrt.f32 %v2989_v60  ;;  %v3293_v60 = vrot.slane %v3288_v59, %v8396_v29  ;;  %s5459_s1 = scalar_lea.vmem %s3694_s20, 128  ;;  %p5464_p3 = scmp.lt.s32.totalorder %s3694_s20, %s3694_s20 }
0x1d5c   :  { %5036 = vpow2.f32 %v3853_v45  ;;  %p5460_p2 = scmp.ne.s32.totalorder %s3694_s20, %s5459_s1  ;;  %p5465_p4 = scmp.lt.s32.totalorder %s5459_s1, %s5459_s1 }
0x1d5d   :  { %5038 = vtanh.f32 %v3072_v14 }
0x1d5e   :  { %p5466_p5 = por %p5465_p4, %p5464_p3 }
0x1d60   :  { %p5467_p6 = pnand %p5466_p5, %p5460_p2 }
0x1d63   :  { %v5031_v7 = vpop.eup %5030 }
0x1d64   :  { %v5033_v1 = vpop.eup %5032  ;;  %v3081_v19 = vadd.f32 1.0, %v5031_v7 }
0x1d65   :  { %v5035_v56 = vpop.eup %5034  ;;  %v3087_v48 = vadd.f32 1.0, %v5033_v1 }
0x1d66   :  { %5040 = vrcp.f32 %v3081_v19  ;;  %v2991_v21 = vmul.f32 %v5035_v56, %v7542_v35  ;;  %v5037_v47 = vpop.eup %5036  ;;  %v4856_v35 = vld [vmem:[#allocation14 + $0xe4] ss:$8 sps:$4 sm:$0xff]  }
0x1d67   :  { %5042 = vrcp.f32 %v3087_v48  ;;  %v5039_v32 = vpop.eup %5038  ;;  %v3094_v57 = vadd.f32 1.0, %v5037_v47  ;;  %3488 = vmatprep.subr.bf16.mxu0 %v4856_v35 }
0x1d68   :  { %v2992_v49 = vmul.f32 %v7555_v17, %v2991_v21  ;;  %3489 = vmatpush1.bf16.msra.mxu0 %v4854_v0  ;;  %v4859_v17 = vld [vmem:[#allocation14 + $0xf4] ss:$8 sps:$4 sm:$0xff]   ;;  %v3902_v21 = vld [vmem:[%s7689_s18] ss:$0 sm:$0xff] }
0x1d69   :  { %5044 = vrcp.f32 %v3094_v57  ;;  %3490 = vmatprep.subr.bf16.mxu0 %v4859_v17 }
0x1d6a   :  { %v2993_v10 = vadd.f32 %v7563_v9, %v2992_v49  ;;  %v4860_v9 = vld [vmem:[#allocation16 + $0x40] sm:$0xff]  }
0x1d6b   :  { %4240 = vmatprep.subr.bf16.mxu1 %v4860_v9 }
0x1d6c   :  { %3491 = vmatpush1.bf16.msra.mxu0 %v4857_v52 }
0x1d70   :  { %v5041_v8 = vpop.eup %5040 }
0x1d71   :  { %v5043_v5 = vpop.eup %5042  ;;  %v3098_v61 = vmul.f32 %v5041_v8, %v5039_v32 }
0x1d72   :  { %v3097_v6 = vmul.f32 %v5043_v5, %v2993_v10 }
0x1d73   :  { %v5045_v2 = vpop.eup %5044 }
0x1d74   :  { %v3099_v39 = vadd.f32 %v3098_v61, %v3097_v6 }
0x1d76   :  { %5046 = vtanh.f32 %v3099_v39 }
0x1d80   :  { %v5047_v34 = vpop.eup %5046 }
0x1d81   :  { %v3101_v25 = vmul.f32 %v5047_v34, %v5045_v2 }
0x1d83   :  { %v3118_v50 = vpack.c.bf16 %v3101_v25, %v3101_v25 }
0x1d85   :  { %3244 = vmatmul.mubr.bf16.vlgmr.msra.gmra.mrb[84].mxu1 %v3118_v50 }
0x1d86   :  { %4241 = vmatpush3.bf16.msra.mxu1 %v4861_v28 }
0x1d87   :  { %4242 = vmatprep.subr.bf16.mxu1 %v4862_v12 }
0x1d8a   :  { %4243 = vmatpush3.bf16.msra.mxu1 %v4863_v63 }
0x1d8b   :  { %4244 = vmatprep.subr.bf16.mxu1 %v4864_v51 }
0x1d8e   :  { %4245 = vmatpush3.bf16.msra.mxu1 %v4865_v23 }
0x1d8f   :  { %4246 = vmatprep.subr.bf16.mxu1 %v4866_v24 }
0x1d92   :  { %4247 = vmatpush3.bf16.msra.mxu1 %v4867_v62 }
0x1d93   :  { %4248 = vmatprep.subr.bf16.mxu1 %v4868_v40 }
0x1d96   :  { %4249 = vmatpush3.bf16.msra.mxu1 %v4869_v53 }
0x1d97   :  { %4250 = vmatprep.subr.bf16.mxu1 %v4870_v15 }
0x1d9a   :  { %4251 = vmatpush3.bf16.msra.mxu1 %v4871_v20 }
0x1d9b   :  { %4252 = vmatprep.subr.bf16.mxu1 %v4872_v3 }
0x1d9e   :  { %4253 = vmatpush3.bf16.msra.mxu1 %v4873_v54 }
0x1d9f   :  { %4254 = vmatprep.subr.bf16.mxu1 %v4874_v22 }
0x1da2   :  { %4255 = vmatpush3.bf16.msra.mxu1 %v4875_v36 }
0x1e58   :  { %v3245_v41 = vpop.f32.mrb[84].mxu1 }
0x1e59   :  { %v3246_v42 = vadd.f32 %v3245_v41, %v3124_v30  ;;  %v3247_v58 = vpop.f32.mrb[85].mxu1 }
0x1e5a   :  { %v3248_v33 = vadd.f32 %v3247_v58, %v3128_v38  ;;  %v3249_v13 = vpop.f32.mrb[86].mxu1 }
0x1e5b   :  { %v3252_v46 = vmax.f32 %v3246_v42, 0.0  ;;  %v3250_v26 = vpop.f32.mrb[87].mxu1 }
0x1e5c   :  { %v3253_v18 = vmax.f32 %v3248_v33, 0.0 }
0x1e5d   :  { %v3286_v16 = vpack.c.bf16 %v3252_v46, %v3252_v46 }
0x1e5e   :  { %v3287_v11 = vpack.c.bf16 %v3253_v18, %v3253_v18 }
0x1e60   :  { %3492 = vmatprep.mubr.bf16.mxu0 %v3287_v11 }
0x1e61   :  { %3493 = vmatmul.mubr.bf16.vlgmr.msra.gmra.mrb[80].mxu0 %v3286_v16 }
0x1f34   :  { %v3494_v4 = vpop.f32.mrb[80].mxu0 }
0x1f35   :  { %v3495_v43 = vadd.f32 %v3494_v4, %v3293_v60  ;;  %v3496_v55 = vpop.f32.mrb[81].mxu0 }
0x1f36   :  { %v3497_v31 = vadd.f32 %v3496_v55, %v3297_v44  ;;  %v3498_v45 = vpop.f32.mrb[82].mxu0 }
0x1f37   :  { %v3501_v14 = vmax.f32 %v3495_v43, 0.0  ;;  %v3499_v7 = vpop.f32.mrb[83].mxu0 }
0x1f38   :  { %v3502_v1 = vmax.f32 %v3497_v31, 0.0 }
0x1f39   :  { %v3535_v56 = vpack.c.bf16 %v3501_v14, %v3501_v14 }
0x1f3a   :  { %v3536_v19 = vpack.c.bf16 %v3502_v1, %v3502_v1 }
0x1f3c   :  { %3672 = vmatprep.mubr.bf16.mxu1 %v3536_v19 }
0x1f3d   :  { %3673 = vmatmul.mubr.bf16.vlgmr.msra.gmra.mrb[88].mxu1 %v3535_v56 }
0x2010   :  { %v4256_v48 = vpop.f32.mrb[88].mxu1 }
0x2011   :  { %v4257_v49 = vpop.f32.mrb[89].mxu1 }
0x2012   :  { %v4258_v47 = vadd.f32 %v4257_v49, %v4256_v48  ;;  %v4259_v32 = vpop.f32.mrb[90].mxu1 }
0x2013   :  { %v4260_v8 = vpop.f32.mrb[91].mxu1 }
0x2014   :  { %v3675_v10 = vadd.f32 %v4258_v47, %v3902_v21 }
0x2016   :  { %v3919_v5 = vmul.f32 -1.442695, %v3675_v10 }
0x2018   :  { %5048 = vpow2.f32 %v3919_v5 }
0x2022   :  { %v5049_v61 = vpop.eup %5048 }
0x2023   :  { %v3683_v57 = vadd.f32 1.0, %v5049_v61 }
0x2025   :  { %5050 = vrcp.f32 %v3683_v57 }
0x202f   :  { %v5051_v6 = vpop.eup %5050 }
0x2030   :  { %3686 = vst [vmem:[#allocation17] sm:$0xff] %v5051_v6 }
0x2031   :  { %5470 = shalt.err (!%p5467_p6)
}
0x2032   :  { %s5471_s6 = scalar_lea.hbm %s7690_s19, 128 }
0x2033   :  { %p5472_p7 = scmp.ne.s32.totalorder %s7690_s19, %s5471_s6  ;;  %p5475_p8 = scmp.lt.u32.totalorder %s5471_s6, %s7690_s19 }
0x2035   :  { %p5477_p9 = pnand %p5475_p8, %p5472_p7 }
0x2037   :  { %5480 = shalt.err (!%p5477_p9)
}
0x2038   :  { %3696 = dma.vmem_to_hbm [thread:$0]  %s3694_s20, 128, %s7690_s19, [#allocation4]  }
0x2039   :  { %5491 = dma.done.wait [#allocation4], 128  }
0x203a   :  { %5492 = vsyncadd [#allocation4], 4294967168 }
0x203b   :  { %3700 = vsyncpa [#allocation3], 1 }
0x203c   :  { %3701 = vsyncpa [#allocation6], 1 }
0x203d   :  { %3702 = vsyncpa [#allocation9], 1 }
0x203e   :  { %3703 = vsyncpa [#allocation12], 1 }
0x203f   :  { %3704 = vsyncpa [#allocation15], 1 }
0x2040   :  { %3705 = vsyncpa [#allocation4], 1 }

</bundles_post_ra>
